<compile_context>
chip_gen: v7x
topology: tpu7x:2x2x1
jax: 0.10.0
libtpu: 0.0.40
codegen_flags: <defaults>
</compile_context>

<pallas_src>
import jax
import jax.numpy as jnp
from jax import lax
from jax.experimental import pallas as pl
from jax.experimental.pallas import tpu as pltpu

EPS = 1e-5
LANES = 128  # final-layer / output lane padding -> dense vst + dense writeback DMA


def dqn_kernel(x_ref, w1_ref, w2_ref, w3_ref, pk_ref, alpha_ref, o_ref):
    n = x_ref.shape[0]
    in_dim = x_ref.shape[1]
    hidden = w1_ref.shape[1]
    inv_n = 1.0 / n

    # PReLU slopes from SMEM (scalar path; no vreg->scalar extraction).
    a1 = alpha_ref[0]
    a2 = alpha_ref[1]

    # Small per-layer vectors: sliced on the Ref (plain vld at sublane offset).
    g1 = pk_ref[0:1, :hidden]
    be1 = pk_ref[1:2, :hidden]
    g2 = pk_ref[2:3, :hidden]
    be2 = pk_ref[3:4, :hidden]
    b3 = pk_ref[4:5, :]                       # (1, LANES) zero-padded final bias

    # Ones row for MXU-routed batch-stat reductions (built once, reused 4x).
    ones_row = jnp.ones((1, n), jnp.float32)

    def bn_prelu(h, gamma, beta, alpha):
        # Training-mode BatchNorm1d (biased variance) + PReLU, fused affine form.
        # Batch (sublane) reductions go through the MXU, keeping the XLU free.
        mean = jnp.dot(ones_row, h, preferred_element_type=jnp.float32) * inv_n
        d = h - mean                                            # reused for var
        var = jnp.dot(ones_row, d * d, preferred_element_type=jnp.float32) * inv_n
        scale = lax.rsqrt(var + EPS) * gamma                    # (1, hidden), EUP rsqrt
        y = d * scale + beta                                    # 1 mul + 1 add / elem
        return jnp.where(y >= 0, y, alpha * y)

    # ---- layer1: Linear (K = in_dim, tiny) as broadcast FMAs on the VPU ----
    # (bias b1 dropped: exactly cancelled by the BN batch-mean subtraction)
    x = x_ref[...]
    h = x[:, 0:1] * w1_ref[0:1, :]
    for k in range(1, in_dim):
        h = h + x[:, k:k + 1] * w1_ref[k:k + 1, :]
    h = bn_prelu(h, g1, be1, a1)

    # ---- layer2: Linear (bias dropped, see above) -> BN -> PReLU ----
    h = jnp.dot(h, w2_ref[...], preferred_element_type=jnp.float32)
    h = bn_prelu(h, g2, be2, a2)

    # ---- final: Linear, lane-dense (w3 / b3 zero-padded to LANES columns) ----
    q = jnp.dot(h, w3_ref[...], preferred_element_type=jnp.float32) + b3
    o_ref[...] = q.astype(o_ref.dtype)        # unmasked 128-lane-dense store


def pack_params(params):
    """Pack small vectors into one (5, LANES) VMEM slab + one SMEM scalar array;
    zero-pad the final Linear to LANES output columns (done once, outside the kernel)."""
    hidden = params["w1"].shape[1]
    output_dim = params["w3"].shape[1]
    assert hidden <= LANES and output_dim <= LANES

    w3_pad = jnp.zeros((hidden, LANES), jnp.float32).at[:, :output_dim].set(params["w3"])
    b3_pad = jnp.zeros((1, LANES), jnp.float32).at[:, :output_dim].set(params["b3"])

    def row(v):
        return jnp.zeros((1, LANES), jnp.float32).at[:, :hidden].set(v)

    slab = jnp.concatenate(
        [row(params["g1"]), row(params["be1"]), row(params["g2"]), row(params["be2"]), b3_pad],
        axis=0,
    )  # (5, LANES)
    alphas = jnp.concatenate(
        [params["a1"].reshape(-1), params["a2"].reshape(-1)]
    ).astype(jnp.float32)  # (2,) -> SMEM

    return dict(w1=params["w1"], w2=params["w2"], w3=w3_pad, slab=slab,
                alphas=alphas, output_dim=output_dim)


def dqn_forward(x, packed):
    n = x.shape[0]
    n_out_pad = packed["w3"].shape[1]          # LANES
    output_dim = packed["output_dim"]

    def vmem_full(shape):
        # Whole-array block: tiny model, everything fits in VMEM at once, and a
        # single block keeps training-mode BN batch statistics trivially exact.
        return pl.BlockSpec(shape, lambda: (0,) * len(shape))

    in_specs = [
        vmem_full(x.shape),
        vmem_full(packed["w1"].shape),
        vmem_full(packed["w2"].shape),
        vmem_full(packed["w3"].shape),
        vmem_full(packed["slab"].shape),
        pl.BlockSpec(memory_space=pltpu.MemorySpace.SMEM),   # PReLU slopes
    ]
    out_specs = vmem_full((n, n_out_pad))

    q_pad = pl.pallas_call(
        dqn_kernel,
        out_shape=jax.ShapeDtypeStruct((n, n_out_pad), jnp.float32),
        grid=(),
        in_specs=in_specs,
        out_specs=out_specs,
    )(x, packed["w1"], packed["w2"], packed["w3"], packed["slab"], packed["alphas"])

    return q_pad[:, :output_dim]               # lane-dense slab -> real Q-values


def init_params(key, input_dim, hidden_dim, output_dim):
    """Deterministic init mirroring PyTorch defaults (Linear: U(+-1/sqrt(fan_in)),
    BatchNorm1d: gamma=1, beta=0, PReLU: a=0.25)."""
    ks = jax.random.split(key, 6)

    def linear(kw, kb, fan_in, fan_out):
        bound = 1.0 / (fan_in ** 0.5)
        w = jax.random.uniform(kw, (fan_in, fan_out), jnp.float32, -bound, bound)
        b = jax.random.uniform(kb, (1, fan_out), jnp.float32, -bound, bound)
        return w, b

    w1, b1 = linear(ks[0], ks[1], input_dim, hidden_dim)
    w2, b2 = linear(ks[2], ks[3], hidden_dim, hidden_dim)
    w3, b3 = linear(ks[4], ks[5], hidden_dim, output_dim)

    return dict(
        w1=w1, b1=b1,
        g1=jnp.ones((1, hidden_dim), jnp.float32),
        be1=jnp.zeros((1, hidden_dim), jnp.float32),
        a1=jnp.full((1, 1), 0.25, jnp.float32),
        w2=w2, b2=b2,
        g2=jnp.ones((1, hidden_dim), jnp.float32),
        be2=jnp.zeros((1, hidden_dim), jnp.float32),
        a2=jnp.full((1, 1), 0.25, jnp.float32),
        w3=w3, b3=b3,
    )


def dqn_reference(x, p):
    """Pure-JAX reference with full PyTorch semantics (incl. b1/b2 before BN)."""
    def bn_prelu(h, g, be, a):
        m = jnp.mean(h, axis=0, keepdims=True)
        v = jnp.mean((h - m) ** 2, axis=0, keepdims=True)
        h = (h - m) / jnp.sqrt(v + EPS) * g + be
        return jnp.where(h >= 0, h, a * h)

    h = x @ p["w1"] + p["b1"]
    h = bn_prelu(h, p["g1"], p["be1"], p["a1"][0, 0])
    h = h @ p["w2"] + p["b2"]
    h = bn_prelu(h, p["g2"], p["be2"], p["a2"][0, 0])
    return h @ p["w3"] + p["b3"]


if __name__ == "__main__":
    # CartPole-like shapes: state dim 4, 2 actions, hidden 32.  Batch raised to
    # 512 rows (stacked replay batches) so the single pallas_call is amortized.
    n, input_dim, hidden_dim, output_dim = 512, 4, 32, 2

    key = jax.random.PRNGKey(0)
    kx, kp = jax.random.split(key)
    x = jax.random.normal(kx, (n, input_dim), jnp.float32)
    params = init_params(kp, input_dim, hidden_dim, output_dim)
    packed = pack_params(params)

    q = dqn_forward(x, packed)
    q = jax.block_until_ready(q)

    q_ref = dqn_reference(x, params)
    assert q.shape == (n, output_dim)
    assert jnp.allclose(q, q_ref, atol=2e-4, rtol=2e-4), (
        float(jnp.max(jnp.abs(q - q_ref))))

    print("KERNEL_OK")
</pallas_src>

<mosaic_0001>
module attributes {stable_mosaic.version = 11 : i64} {
  func.func @dqn_kernel(%arg0: memref<512x4xf32, #tpu.memory_space<vmem>>, %arg1: memref<4x32xf32, #tpu.memory_space<vmem>>, %arg2: memref<32x32xf32, #tpu.memory_space<vmem>>, %arg3: memref<32x128xf32, #tpu.memory_space<vmem>>, %arg4: memref<5x128xf32, #tpu.memory_space<vmem>>, %arg5: memref<2xf32, #tpu.memory_space<smem>>, %arg6: memref<512x128xf32, #tpu.memory_space<vmem>>) attributes {dimension_semantics = [], scalar_prefetch = 0 : i64, scratch_operands = 0 : i64, tpu.core_type = #tpu.core_type<tc>} {
    %c0 = arith.constant 0 : index
    %0 = memref.load %arg5[%c0] : memref<2xf32, #tpu.memory_space<smem>>
    %c1 = arith.constant 1 : index
    %1 = memref.load %arg5[%c1] : memref<2xf32, #tpu.memory_space<smem>>
    %c0_0 = arith.constant 0 : index
    %c0_1 = arith.constant 0 : index
    %2 = vector.load %arg4[%c0_0, %c0_1] : memref<5x128xf32, #tpu.memory_space<vmem>>, vector<1x32xf32>
    %c1_2 = arith.constant 1 : index
    %c0_3 = arith.constant 0 : index
    %3 = vector.load %arg4[%c1_2, %c0_3] : memref<5x128xf32, #tpu.memory_space<vmem>>, vector<1x32xf32>
    %c2 = arith.constant 2 : index
    %c0_4 = arith.constant 0 : index
    %4 = vector.load %arg4[%c2, %c0_4] : memref<5x128xf32, #tpu.memory_space<vmem>>, vector<1x32xf32>
    %c3 = arith.constant 3 : index
    %c0_5 = arith.constant 0 : index
    %5 = vector.load %arg4[%c3, %c0_5] : memref<5x128xf32, #tpu.memory_space<vmem>>, vector<1x32xf32>
    %c4 = arith.constant 4 : index
    %c0_6 = arith.constant 0 : index
    %6 = vector.load %arg4[%c4, %c0_6] : memref<5x128xf32, #tpu.memory_space<vmem>>, vector<1x128xf32>
    %cst = arith.constant 1.000000e+00 : f32
    %7 = vector.broadcast %cst : f32 to vector<1x512xf32>
    %c0_7 = arith.constant 0 : index
    %c0_8 = arith.constant 0 : index
    %8 = vector.load %arg0[%c0_7, %c0_8] : memref<512x4xf32, #tpu.memory_space<vmem>>, vector<512x4xf32>
    %9 = vector.extract_strided_slice %8 {offsets = [0, 0], sizes = [512, 1], strides = [1, 1]} : vector<512x4xf32> to vector<512x1xf32>
    %c0_9 = arith.constant 0 : index
    %c0_10 = arith.constant 0 : index
    %10 = vector.load %arg1[%c0_9, %c0_10] : memref<4x32xf32, #tpu.memory_space<vmem>>, vector<1x32xf32>
    %11 = vector.broadcast %9 : vector<512x1xf32> to vector<512x32xf32>
    %12 = vector.broadcast %10 : vector<1x32xf32> to vector<512x32xf32>
    %13 = arith.mulf %11, %12 : vector<512x32xf32>
    %14 = vector.extract_strided_slice %8 {offsets = [0, 1], sizes = [512, 1], strides = [1, 1]} : vector<512x4xf32> to vector<512x1xf32>
    %c1_11 = arith.constant 1 : index
    %c0_12 = arith.constant 0 : index
    %15 = vector.load %arg1[%c1_11, %c0_12] : memref<4x32xf32, #tpu.memory_space<vmem>>, vector<1x32xf32>
    %16 = vector.broadcast %14 : vector<512x1xf32> to vector<512x32xf32>
    %17 = vector.broadcast %15 : vector<1x32xf32> to vector<512x32xf32>
    %18 = arith.mulf %16, %17 : vector<512x32xf32>
    %19 = arith.addf %13, %18 : vector<512x32xf32>
    %20 = vector.extract_strided_slice %8 {offsets = [0, 2], sizes = [512, 1], strides = [1, 1]} : vector<512x4xf32> to vector<512x1xf32>
    %c2_13 = arith.constant 2 : index
    %c0_14 = arith.constant 0 : index
    %21 = vector.load %arg1[%c2_13, %c0_14] : memref<4x32xf32, #tpu.memory_space<vmem>>, vector<1x32xf32>
    %22 = vector.broadcast %20 : vector<512x1xf32> to vector<512x32xf32>
    %23 = vector.broadcast %21 : vector<1x32xf32> to vector<512x32xf32>
    %24 = arith.mulf %22, %23 : vector<512x32xf32>
    %25 = arith.addf %19, %24 : vector<512x32xf32>
    %26 = vector.extract_strided_slice %8 {offsets = [0, 3], sizes = [512, 1], strides = [1, 1]} : vector<512x4xf32> to vector<512x1xf32>
    %c3_15 = arith.constant 3 : index
    %c0_16 = arith.constant 0 : index
    %27 = vector.load %arg1[%c3_15, %c0_16] : memref<4x32xf32, #tpu.memory_space<vmem>>, vector<1x32xf32>
    %28 = vector.broadcast %26 : vector<512x1xf32> to vector<512x32xf32>
    %29 = vector.broadcast %27 : vector<1x32xf32> to vector<512x32xf32>
    %30 = arith.mulf %28, %29 : vector<512x32xf32>
    %31 = arith.addf %25, %30 : vector<512x32xf32>
    %cst_17 = arith.constant dense<0.000000e+00> : vector<1x32xf32>
    %32 = tpu.matmul %7, %31, %cst_17 {dimension_numbers = #tpu.dot_dimension_numbers<[1], [0], [0], [1], [0, 0, 1, 1], [], []>} : vector<1x512xf32>, vector<512x32xf32>, vector<1x32xf32> -> vector<1x32xf32>
    %cst_18 = arith.constant 0.001953125 : f32
    %33 = vector.broadcast %cst_18 : f32 to vector<1x32xf32>
    %34 = arith.mulf %32, %33 : vector<1x32xf32>
    %35 = vector.broadcast %34 : vector<1x32xf32> to vector<512x32xf32>
    %36 = arith.subf %31, %35 : vector<512x32xf32>
    %37 = arith.mulf %36, %36 : vector<512x32xf32>
    %cst_19 = arith.constant dense<0.000000e+00> : vector<1x32xf32>
    %38 = tpu.matmul %7, %37, %cst_19 {dimension_numbers = #tpu.dot_dimension_numbers<[1], [0], [0], [1], [0, 0, 1, 1], [], []>} : vector<1x512xf32>, vector<512x32xf32>, vector<1x32xf32> -> vector<1x32xf32>
    %cst_20 = arith.constant 0.001953125 : f32
    %39 = vector.broadcast %cst_20 : f32 to vector<1x32xf32>
    %40 = arith.mulf %38, %39 : vector<1x32xf32>
    %cst_21 = arith.constant 9.99999974E-6 : f32
    %41 = vector.broadcast %cst_21 : f32 to vector<1x32xf32>
    %42 = arith.addf %40, %41 : vector<1x32xf32>
    %43 = math.rsqrt %42 : vector<1x32xf32>
    %44 = arith.mulf %43, %2 : vector<1x32xf32>
    %45 = vector.broadcast %44 : vector<1x32xf32> to vector<512x32xf32>
    %46 = arith.mulf %36, %45 : vector<512x32xf32>
    %47 = vector.broadcast %3 : vector<1x32xf32> to vector<512x32xf32>
    %48 = arith.addf %46, %47 : vector<512x32xf32>
    %cst_22 = arith.constant 0.000000e+00 : f32
    %49 = vector.broadcast %cst_22 : f32 to vector<512x32xf32>
    %50 = arith.cmpf oge, %48, %49 : vector<512x32xf32>
    %51 = vector.broadcast %0 : f32 to vector<512x32xf32>
    %52 = arith.mulf %51, %48 : vector<512x32xf32>
    %53 = arith.select %50, %48, %52 : vector<512x32xi1>, vector<512x32xf32>
    %c0_23 = arith.constant 0 : index
    %c0_24 = arith.constant 0 : index
    %54 = vector.load %arg2[%c0_23, %c0_24] : memref<32x32xf32, #tpu.memory_space<vmem>>, vector<32x32xf32>
    %cst_25 = arith.constant dense<0.000000e+00> : vector<512x32xf32>
    %55 = tpu.matmul %53, %54, %cst_25 {dimension_numbers = #tpu.dot_dimension_numbers<[1], [0], [0], [1], [0, 0, 1, 1], [], []>} : vector<512x32xf32>, vector<32x32xf32>, vector<512x32xf32> -> vector<512x32xf32>
    %cst_26 = arith.constant dense<0.000000e+00> : vector<1x32xf32>
    %56 = tpu.matmul %7, %55, %cst_26 {dimension_numbers = #tpu.dot_dimension_numbers<[1], [0], [0], [1], [0, 0, 1, 1], [], []>} : vector<1x512xf32>, vector<512x32xf32>, vector<1x32xf32> -> vector<1x32xf32>
    %cst_27 = arith.constant 0.001953125 : f32
    %57 = vector.broadcast %cst_27 : f32 to vector<1x32xf32>
    %58 = arith.mulf %56, %57 : vector<1x32xf32>
    %59 = vector.broadcast %58 : vector<1x32xf32> to vector<512x32xf32>
    %60 = arith.subf %55, %59 : vector<512x32xf32>
    %61 = arith.mulf %60, %60 : vector<512x32xf32>
    %cst_28 = arith.constant dense<0.000000e+00> : vector<1x32xf32>
    %62 = tpu.matmul %7, %61, %cst_28 {dimension_numbers = #tpu.dot_dimension_numbers<[1], [0], [0], [1], [0, 0, 1, 1], [], []>} : vector<1x512xf32>, vector<512x32xf32>, vector<1x32xf32> -> vector<1x32xf32>
    %cst_29 = arith.constant 0.001953125 : f32
    %63 = vector.broadcast %cst_29 : f32 to vector<1x32xf32>
    %64 = arith.mulf %62, %63 : vector<1x32xf32>
    %cst_30 = arith.constant 9.99999974E-6 : f32
    %65 = vector.broadcast %cst_30 : f32 to vector<1x32xf32>
    %66 = arith.addf %64, %65 : vector<1x32xf32>
    %67 = math.rsqrt %66 : vector<1x32xf32>
    %68 = arith.mulf %67, %4 : vector<1x32xf32>
    %69 = vector.broadcast %68 : vector<1x32xf32> to vector<512x32xf32>
    %70 = arith.mulf %60, %69 : vector<512x32xf32>
    %71 = vector.broadcast %5 : vector<1x32xf32> to vector<512x32xf32>
    %72 = arith.addf %70, %71 : vector<512x32xf32>
    %cst_31 = arith.constant 0.000000e+00 : f32
    %73 = vector.broadcast %cst_31 : f32 to vector<512x32xf32>
    %74 = arith.cmpf oge, %72, %73 : vector<512x32xf32>
    %75 = vector.broadcast %1 : f32 to vector<512x32xf32>
    %76 = arith.mulf %75, %72 : vector<512x32xf32>
    %77 = arith.select %74, %72, %76 : vector<512x32xi1>, vector<512x32xf32>
    %c0_32 = arith.constant 0 : index
    %c0_33 = arith.constant 0 : index
    %78 = vector.load %arg3[%c0_32, %c0_33] : memref<32x128xf32, #tpu.memory_space<vmem>>, vector<32x128xf32>
    %cst_34 = arith.constant dense<0.000000e+00> : vector<512x128xf32>
    %79 = tpu.matmul %77, %78, %cst_34 {dimension_numbers = #tpu.dot_dimension_numbers<[1], [0], [0], [1], [0, 0, 1, 1], [], []>} : vector<512x32xf32>, vector<32x128xf32>, vector<512x128xf32> -> vector<512x128xf32>
    %80 = vector.broadcast %6 : vector<1x128xf32> to vector<512x128xf32>
    %81 = arith.addf %79, %80 : vector<512x128xf32>
    %c0_35 = arith.constant 0 : index
    %c0_36 = arith.constant 0 : index
    %82 = vector.load %arg6[%c0_35, %c0_36] : memref<512x128xf32, #tpu.memory_space<vmem>>, vector<512x128xf32>
    tpu.vector_store %arg6[%c0_35, %c0_36], %81 {strides = array<i32>} : memref<512x128xf32, #tpu.memory_space<vmem>>, vector<512x128xf32>,
    return
  }
}

</mosaic_0001>

<bundles_post_ra>
// kernel: tpu_custom_call.1
= control target key start
LH: loop header
LB: loop body
LE: loop exit
PB: predicated region body
PF: predicated region fallthrough
CT: control target
= control target key end

     0   :  { %11 = vsyncpa [#allocation4], 0  ;;  %s9803_s0 = inlined_call_operand.vmem [shape: f32[512,4], index: 0, kind: input, shape index: {}]   ;;  %s9804_s1 = inlined_call_operand.vmem [shape: f32[4,32], index: 1, kind: input, shape index: {}]   ;;  %s9805_s2 = inlined_call_operand.vmem [shape: f32[32,32], index: 2, kind: input, shape index: {}]   ;;  %s9806_s3 = inlined_call_operand.vmem [shape: f32[32,128], index: 3, kind: input, shape index: {}]   ;;  %s9807_s4 = inlined_call_operand.vmem [shape: f32[5,128], index: 4, kind: input, shape index: {}]   ;;  %s9808_s5 = inlined_call_operand.vmem [shape: f32[2], index: 5, kind: input, shape index: {}]   ;;  %s9809_s6 = inlined_call_operand.hbm [shape: f32[512,128], index: 6, kind: output, shape index: {}]  }
   0x1   :  { %12 = vsyncpa [#allocation3], 0  ;;  %s29_s23 = sshll.u32 %s9808_s5, 4  ;;  %s30_s23 = int_to_ptr.vmem [resolvable:$true] %s29_s23 }
   0x2   :  { %s5535_s24 = scalar_lea.vmem %s30_s23, 16  ;;  %p5540_p1 = scmp.lt.s32.totalorder %s30_s23, %s30_s23 }
   0x3   :  { %p5536_p0 = scmp.ne.s32.totalorder %s30_s23, %s5535_s24  ;;  %p5541_p2 = scmp.lt.s32.totalorder %s5535_s24, %s5535_s24 }
   0x5   :  { %p5542_p3 = por %p5541_p2, %p5540_p1 }
   0x7   :  { %p5543_p4 = pnand %p5542_p3, %p5536_p0 }
   0x9   :  { %5546 = shalt.err (!%p5543_p4)
}
   0xa   :  { %s5573_s25 = smov [#allocation2]  }
   0xb   :  { %32 = dma.vmem_to_smem %s30_s23, 16, %s5573_s25, [#allocation4]  }
   0xc   :  { %5569 = dma.done.wait [#allocation4], 16  }
   0xd   :  { %5570 = vsyncadd [#allocation4], 4294967280 }
   0xe   :  { %36 = sfence }
   0xf   :  { %v5623_v0 = vld [vmem:[%s9803_s0 + $0x180] sm:$0xff]  ;;  %v9814_v2 = vmov 0   ;;  %v5637_v3 = vld [vmem:[%s9803_s0 + $0x188] sm:$0xff]  ;;  %v9812_v6 = vmov 1   ;;  %v5657_v7 = vld [vmem:[%s9803_s0 + $0x90] sm:$0xff]  ;;  %v9810_v18 = vmov 2  }
  0x10   :  { %v5628_v1 = vld [vmem:[%s9803_s0 + $0x80] sm:$0xff]  ;;  %5450 = vset.pattern.permute.xlu1 %v9814_v2  ;;  %5449 = vset.pattern.permute.xlu0 %v9814_v2  ;;  %v5642_v4 = vld [vmem:[%s9803_s0 + $0x88] sm:$0xff]  ;;  %v5664_v8 = vld [vmem:[%s9803_s0 + $0x198] sm:$0xff]  ;;  %v9816_v32 = vmov 3   ;;  %s37_s14 = sld [smem:[#allocation2]]  ;;  %vm2414_vm0 = vcmask 261120  }
  0x11   :  { %351 = vperm.xlu1 %5450, %v5623_v0   ;;  %191 = vperm.xlu0 %5449, %v5628_v1   ;;  %v5649_v5 = vld [vmem:[%s9803_s0 + $0x8] sm:$0xff]  ;;  %v5669_v9 = vld [vmem:[%s9803_s0] sm:$0xff]  ;;  %v5676_v10 = vld [vmem:[%s9803_s0 + $0x18] sm:$0xff] }
  0x12   :  { %v5682_v11 = vld [vmem:[%s9803_s0 + $0x100] sm:$0xff]  ;;  %v5688_v12 = vld [vmem:[%s9803_s0 + $0xa8] sm:$0xff]  ;;  %v5715_v16 = vld [vmem:[%s9803_s0 + $0xb0] sm:$0xff] }
  0x13   :  { %v5694_v13 = vld [vmem:[%s9803_s0 + $0x108] sm:$0xff]  ;;  %v5700_v14 = vld [vmem:[%s9803_s0 + $0x20] sm:$0xff]  ;;  %v5722_v17 = vld [vmem:[%s9803_s0 + $0x1b8] sm:$0xff] }
  0x14   :  { %v5707_v15 = vld [vmem:[%s9803_s0 + $0x128] sm:$0xff]  ;;  %v5730_v19 = vld [vmem:[%s9803_s0 + $0x38] sm:$0xff]  ;;  %v5744_v21 = vld [vmem:[%s9803_s0 + $0x40] sm:$0xff] }
  0x15   :  { %356 = vperm.xlu1 %5450, %v5637_v3   ;;  %196 = vperm.xlu0 %5449, %v5642_v4   ;;  %v5737_v20 = vld [vmem:[%s9803_s0 + $0xc8] sm:$0xff]  ;;  %v5758_v23 = vld [vmem:[%s9803_s0 + $0xd0] sm:$0xff]  ;;  %v5763_v24 = vld [vmem:[%s9803_s0 + $0x98] sm:$0xff] }
  0x16   :  { %v5751_v22 = vld [vmem:[%s9803_s0 + $0x148] sm:$0xff]  ;;  %v5771_v25 = vld [vmem:[%s9803_s0 + $0x1d8] sm:$0xff]  ;;  %v5776_v26 = vld [vmem:[%s9803_s0 + $0x190] sm:$0xff] }
  0x17   :  { %v5783_v27 = vld [vmem:[%s9803_s0 + $0x58] sm:$0xff]  ;;  %v5790_v28 = vld [vmem:[%s9803_s0 + $0xe8] sm:$0xff]  ;;  %v5797_v29 = vld [vmem:[%s9803_s0 + $0x60] sm:$0xff] }
  0x18   :  { %v89_v30 = vld [vmem:[%s9803_s0 + $0x168] sm:$0xff]  ;;  %v5808_v31 = vld [vmem:[%s9803_s0 + $0xf0] sm:$0xff]  ;;  %v5816_v33 = vld [vmem:[%s9803_s0 + $0x1f8] sm:$0xff] }
  0x19   :  { %5451 = vset.pattern.permute.xlu1 %v9812_v6  ;;  %116 = vperm.xlu0 %5449, %v5649_v5   ;;  %v5823_v34 = vld [vmem:[%s9803_s0 + $0x78] sm:$0xff]  ;;  %v5828_v35 = vld [vmem:[%s9803_s0 + $0x10] sm:$0xff]  ;;  %v5863_v38 = vld [vmem:[%s9803_s0 + $0xa0] sm:$0xff] }
  0x1a   :  { %567 = vperm.xlu1 %5451, %v5642_v4   ;;  %v5836_v36 = vld [vmem:[%s9803_s0 + $0x110] sm:$0xff]  ;;  %v5844_v37 = vld [vmem:[%s9803_s0 + $0x118] sm:$0xff]  ;;  %v5870_v39 = vld [vmem:[%s9803_s0 + $0x1a8] sm:$0xff] }
  0x1b   :  { %v5881_v42 = vld [vmem:[%s9803_s0 + $0x28] sm:$0xff]  ;;  %v5892_v45 = vld [vmem:[%s9803_s0 + $0xb8] sm:$0xff]  ;;  %v5903_v48 = vld [vmem:[%s9803_s0 + $0x30] sm:$0xff] }
  0x1c   :  { %v5914_v51 = vld [vmem:[%s9803_s0 + $0x138] sm:$0xff]  ;;  %v5926_v54 = vld [vmem:[%s9803_s0 + $0x1a0] sm:$0xff]  ;;  %v5942_v58 = vld [vmem:[%s9803_s0 + $0x1c8] sm:$0xff] }
  0x1d   :  { %201 = vperm.xlu0 %5449, %v5657_v7   ;;  %v5931_v55 = vld [vmem:[%s9803_s0 + $0xc0] sm:$0xff]  ;;  %v5953_v61 = vld [vmem:[%s9803_s0 + $0x48] sm:$0xff] }
  0x1e   :  { %691 = vperm.xlu1 %5451, %v5623_v0  }
  0x21   :  { %366 = vperm.xlu0 %5449, %v5664_v8  }
  0x22   :  { %5452 = vset.pattern.permute.xlu1 %v9814_v2 }
  0x23   :  { %111 = vperm.xlu1 %5452, %v5669_v9  }
  0x25   :  { %126 = vperm.xlu0 %5449, %v5676_v10  }
  0x27   :  { %271 = vperm.xlu1 %5452, %v5682_v11  }
  0x29   :  { %216 = vperm.xlu0 %5449, %v5688_v12  }
  0x2b   :  { %276 = vperm.xlu1 %5452, %v5694_v13  }
  0x2d   :  { %131 = vperm.xlu0 %5449, %v5700_v14  }
  0x2f   :  { %5453 = vset.pattern.permute.xlu1 %v9812_v6 }
  0x30   :  { %503 = vperm.xlu1 %5453, %v5649_v5  }
  0x31   :  { %296 = vperm.xlu0 %5449, %v5707_v15  }
  0x34   :  { %627 = vperm.xlu1 %5453, %v5682_v11  }
  0x35   :  { %221 = vperm.xlu0 %5449, %v5715_v16  }
  0x38   :  { %5454 = vset.pattern.permute.xlu1 %v9810_v18 }
  0x39   :  { %386 = vperm.xlu0 %5449, %v5722_v17   ;;  %952 = vperm.xlu1 %5454, %v5628_v1  }
  0x3d   :  { %146 = vperm.xlu0 %5449, %v5730_v19   ;;  %1080 = vperm.xlu1 %5454, %v5623_v0  }
  0x41   :  { %236 = vperm.xlu0 %5449, %v5737_v20   ;;  %1084 = vperm.xlu1 %5454, %v5637_v3  }
  0x45   :  { %151 = vperm.xlu0 %5449, %v5744_v21   ;;  %892 = vperm.xlu1 %5454, %v5649_v5  }
  0x49   :  { %316 = vperm.xlu0 %5449, %v5751_v22   ;;  %1020 = vperm.xlu1 %5454, %v5694_v13  }
  0x4d   :  { %241 = vperm.xlu0 %5449, %v5758_v23   ;;  %5455 = vset.pattern.permute.xlu1 %v9814_v2 }
  0x4e   :  { %206 = vperm.xlu1 %5455, %v5763_v24  }
  0x51   :  { %406 = vperm.xlu0 %5449, %v5771_v25  }
  0x52   :  { %361 = vperm.xlu1 %5455, %v5776_v26  }
  0x55   :  { %166 = vperm.xlu0 %5449, %v5783_v27  }
  0x56   :  { %5456 = vset.pattern.permute.xlu1 %v9812_v6 }
  0x57   :  { %571 = vperm.xlu1 %5456, %v5657_v7  }
  0x59   :  { %256 = vperm.xlu0 %5449, %v5790_v28  }
  0x5b   :  { %699 = vperm.xlu1 %5456, %v5776_v26  }
  0x5d   :  { %171 = vperm.xlu0 %5449, %v5797_v29  }
  0x5f   :  { %703 = vperm.xlu1 %5456, %v5664_v8  }
  0x61   :  { %336 = vperm.xlu0 %5449, %v89_v30  }
  0x63   :  { %5457 = vset.pattern.permute.xlu1 %v9816_v32 }
  0x64   :  { %1345 = vperm.xlu1 %5457, %v5642_v4  }
  0x65   :  { %261 = vperm.xlu0 %5449, %v5808_v31  }
  0x68   :  { %1469 = vperm.xlu1 %5457, %v5623_v0   ;;  %v5965_v0 = vld [vmem:[%s9803_s0 + $0xd8] sm:$0xff] }
  0x69   :  { %426 = vperm.xlu0 %5449, %v5816_v33   ;;  %9945 = vst [vmem:[#allocation19_spill] sm:$0xff] %v5965_v0 }
  0x6c   :  { %5458 = vset.pattern.permute.xlu1 %v9814_v2 }
  0x6d   :  { %186 = vperm.xlu0 %5449, %v5823_v34   ;;  %121 = vperm.xlu1 %5458, %v5828_v35  }
  0x71   :  { %5501 = vset.pattern.permute.xlu0 %v9812_v6  ;;  %281 = vperm.xlu1 %5458, %v5836_v36  }
  0x72   :  { %563 = vperm.xlu0 %5501, %v5628_v1  }
  0x75   :  { %286 = vperm.xlu1 %5458, %v5844_v37  }
  0x76   :  { %695 = vperm.xlu0 %5501, %v5637_v3  }
  0x79   :  { %5459 = vset.pattern.permute.xlu1 %v9812_v6 }
  0x7a   :  { %499 = vperm.xlu0 %5501, %v5669_v9   ;;  %511 = vperm.xlu1 %5459, %v5676_v10  }
  0x7e   :  { %631 = vperm.xlu0 %5501, %v5694_v13   ;;  %635 = vperm.xlu1 %5459, %v5836_v36  }
  0x82   :  { %575 = vperm.xlu0 %5501, %v5763_v24   ;;  %5460 = vset.pattern.permute.xlu1 %v9816_v32 }
  0x83   :  { %1277 = vperm.xlu1 %5460, %v5669_v9  }
  0x86   :  { %507 = vperm.xlu0 %5501, %v5828_v35  }
  0x87   :  { %1405 = vperm.xlu1 %5460, %v5682_v11  }
  0x8a   :  { %639 = vperm.xlu0 %5501, %v5844_v37  }
  0x8b   :  { %1409 = vperm.xlu1 %5460, %v5694_v13  }
  0x8e   :  { %579 = vperm.xlu0 %5501, %v5863_v38  }
  0x8f   :  { %5461 = vset.pattern.permute.xlu1 %v9810_v18  ;;  %v5976_v18 = vld [vmem:[%s9803_s0 + $0x50] sm:$0xff] }
  0x90   :  { %v5872_v40 = vpop.permute.xlu1 %351  ;;  %964 = vperm.xlu1 %5461, %v5763_v24   ;;  %v5875_v41 = vpop.permute.xlu0 %191 }
  0x92   :  { %711 = vperm.xlu0 %5501, %v5870_v39  }
  0x94   :  { %v5883_v43 = vpop.permute.xlu1 %356  ;;  %1088 = vperm.xlu1 %5461, %v5776_v26   ;;  %v5886_v44 = vpop.permute.xlu0 %196 }
  0x95   :  { %9934 = vst [vmem:[#allocation8_spill] sm:$0xff] %v5883_v43  ;;  %v9969_v43 = vmov 3  }
  0x96   :  { %519 = vperm.xlu0 %5501, %v5881_v42  }
  0x98   :  { %896 = vperm.xlu1 %5461, %v5828_v35   ;;  %v5895_v46 = vpop.permute.xlu0 %116 }
  0x99   :  { %9935 = vst [vmem:[#allocation9_spill] sm:$0xff] %v5895_v46  ;;  %v5897_v47 = vpop.permute.xlu1 %567 }
  0x9a   :  { %591 = vperm.xlu0 %5501, %v5892_v45  }
  0x9c   :  { %1024 = vperm.xlu1 %5461, %v5836_v36   ;;  %v5906_v49 = vpop.permute.xlu0 %201 }
  0x9d   :  { %9936 = vst [vmem:[#allocation10_spill] sm:$0xff] %v5906_v49  ;;  %v5908_v50 = vpop.permute.xlu1 %691 }
  0x9e   :  { %523 = vperm.xlu0 %5501, %v5903_v48  }
  0xa0   :  { %5462 = vset.pattern.permute.xlu1 %v9814_v2  ;;  %v5917_v52 = vpop.permute.xlu0 %366  ;;  %v5986_v2 = vld [vmem:[%s9803_s0 + $0x158] sm:$0xff] }
  0xa1   :  { %9937 = vst [vmem:[#allocation11_spill] sm:$0xff] %v5917_v52  ;;  %211 = vperm.xlu1 %5462, %v5863_v38  }
  0xa2   :  { %655 = vperm.xlu0 %5501, %v5914_v51   ;;  %v5921_v53 = vpop.permute.xlu1 %111 }
  0xa3   :  { %9938 = vst [vmem:[#allocation12_spill] sm:$0xff] %v5921_v53 }
  0xa4   :  { %v5933_v56 = vpop.permute.xlu0 %126 }
  0xa5   :  { %9939 = vst [vmem:[#allocation13_spill] sm:$0xff] %v5933_v56  ;;  %371 = vperm.xlu1 %5462, %v5926_v54  }
  0xa6   :  { %595 = vperm.xlu0 %5501, %v5931_v55   ;;  %v5937_v57 = vpop.permute.xlu1 %271 }
  0xa7   :  { %9940 = vst [vmem:[#allocation14_spill] sm:$0xff] %v5937_v57 }
  0xa8   :  { %v5944_v59 = vpop.permute.xlu0 %216 }
  0xa9   :  { %9941 = vst [vmem:[#allocation15_spill] sm:$0xff] %v5944_v59  ;;  %376 = vperm.xlu1 %5462, %v5870_v39   ;;  %v9955_v59 = vmov 0  }
  0xaa   :  { %727 = vperm.xlu0 %5501, %v5942_v58   ;;  %v5948_v60 = vpop.permute.xlu1 %276 }
  0xab   :  { %9942 = vst [vmem:[#allocation16_spill] sm:$0xff] %v5948_v60 }
  0xac   :  { %v5955_v62 = vpop.permute.xlu0 %131 }
  0xad   :  { %9943 = vst [vmem:[#allocation17_spill] sm:$0xff] %v5955_v62  ;;  %5463 = vset.pattern.permute.xlu1 %v9812_v6 }
  0xae   :  { %535 = vperm.xlu0 %5501, %v5953_v61   ;;  %583 = vperm.xlu1 %5463, %v5688_v12  }
  0xaf   :  { %v5960_v63 = vpop.permute.xlu1 %503 }
  0xb0   :  { %9944 = vst [vmem:[#allocation18_spill] sm:$0xff] %v5960_v63  ;;  %v5967_v13 = vpop.permute.xlu0 %296 }
  0xb1   :  { %9946 = vst [vmem:[#allocation20_spill] sm:$0xff] %v5967_v13 }
  0xb2   :  { %607 = vperm.xlu0 %5501, %v5965_v0   ;;  %707 = vperm.xlu1 %5463, %v5926_v54  }
  0xb3   :  { %v5971_v30 = vpop.permute.xlu1 %627 }
  0xb4   :  { %9947 = vst [vmem:[#allocation21_spill] sm:$0xff] %v5971_v30  ;;  %v5978_v6 = vpop.permute.xlu0 %221 }
  0xb5   :  { %9948 = vst [vmem:[#allocation22_spill] sm:$0xff] %v5978_v6  ;;  %v5997_v6 = vld [vmem:[%s9803_s0 + $0xe0] sm:$0xff] }
  0xb6   :  { %539 = vperm.xlu0 %5501, %v5976_v18   ;;  %5464 = vset.pattern.permute.xlu1 %v9816_v32 }
  0xb7   :  { %1349 = vperm.xlu1 %5464, %v5657_v7  }
  0xb8   :  { %v5988_v13 = vpop.permute.xlu1 %952  ;;  %v5990_v62 = vpop.permute.xlu0 %386 }
  0xb9   :  { %9949 = vst [vmem:[#allocation23_spill] sm:$0xff] %v5988_v13  ;;  %9950 = vst [vmem:[#allocation24_spill] sm:$0xff] %v5990_v62  ;;  %v6008_v62 = vld [vmem:[%s9803_s0 + $0x1e8] sm:$0xff] }
  0xba   :  { %671 = vperm.xlu0 %5501, %v5986_v2  }
  0xbb   :  { %1477 = vperm.xlu1 %5464, %v5776_v26  }
  0xbc   :  { %v5999_v32 = vpop.permute.xlu1 %1080  ;;  %v6001_v60 = vpop.permute.xlu0 %146 }
  0xbd   :  { %9951 = vst [vmem:[#allocation25_spill] sm:$0xff] %v5999_v32  ;;  %9952 = vst [vmem:[#allocation26_spill] sm:$0xff] %v6001_v60  ;;  %v6019_v60 = vld [vmem:[%s9803_s0 + $0x68] sm:$0xff] }
  0xbe   :  { %611 = vperm.xlu0 %5501, %v5997_v6  }
  0xbf   :  { %1481 = vperm.xlu1 %5464, %v5664_v8  }
  0xc0   :  { %v6010_v13 = vpop.permute.xlu1 %1084  ;;  %v6012_v26 = vpop.permute.xlu0 %236 }
  0xc1   :  { %9953 = vst [vmem:[#allocation27_spill] sm:$0xff] %v6010_v13  ;;  %9954 = vst [vmem:[#allocation28_spill] sm:$0xff] %v6012_v26  ;;  %v6029_v13 = vld [vmem:[%s9803_s0 + $0x120] sm:$0xff]  ;;  %v6035_v26 = vld [vmem:[%s9803_s0 + $0xf8] sm:$0xff] }
  0xc2   :  { %743 = vperm.xlu0 %5501, %v6008_v62  }
  0xc3   :  { %5465 = vset.pattern.permute.xlu1 %v9955_v59 }
  0xc4   :  { %136 = vperm.xlu1 %5465, %v5881_v42   ;;  %v6022_v32 = vpop.permute.xlu1 %892  ;;  %v6024_v57 = vpop.permute.xlu0 %151 }
  0xc5   :  { %9956 = vst [vmem:[#allocation29_spill] sm:$0xff] %v6022_v32  ;;  %9957 = vst [vmem:[#allocation30_spill] sm:$0xff] %v6024_v57  ;;  %v6046_v57 = vld [vmem:[%s9803_s0 + $0x70] sm:$0xff]  ;;  %v9960_v32 = vmov 1  }
  0xc6   :  { %551 = vperm.xlu0 %5501, %v6019_v60  }
  0xc8   :  { %291 = vperm.xlu1 %5465, %v6029_v13   ;;  %v6038_v56 = vpop.permute.xlu1 %1020  ;;  %v6040_v53 = vpop.permute.xlu0 %316 }
  0xc9   :  { %9958 = vst [vmem:[#allocation31_spill] sm:$0xff] %v6038_v56  ;;  %9959 = vst [vmem:[#allocation32_spill] sm:$0xff] %v6040_v53  ;;  %v6058_v53 = vld [vmem:[%s9803_s0 + $0x178] sm:$0xff] }
  0xca   :  { %623 = vperm.xlu0 %5501, %v6035_v26  }
  0xcc   :  { %5466 = vset.pattern.permute.xlu1 %v9960_v32  ;;  %v6049_v52 = vpop.permute.xlu0 %241 }
  0xcd   :  { %9961 = vst [vmem:[#allocation33_spill] sm:$0xff] %v6049_v52  ;;  %515 = vperm.xlu1 %5466, %v5700_v14   ;;  %v6052_v30 = vpop.permute.xlu1 %206 }
  0xce   :  { %9962 = vst [vmem:[#allocation34_spill] sm:$0xff] %v6052_v30  ;;  %555 = vperm.xlu0 %5501, %v6046_v57   ;;  %v9966_v30 = vmov 2  }
  0xd0   :  { %v6060_v56 = vpop.permute.xlu0 %406 }
  0xd1   :  { %9963 = vst [vmem:[#allocation35_spill] sm:$0xff] %v6060_v56  ;;  %643 = vperm.xlu1 %5466, %v6029_v13   ;;  %v6063_v49 = vpop.permute.xlu1 %361 }
  0xd2   :  { %9964 = vst [vmem:[#allocation36_spill] sm:$0xff] %v6063_v49  ;;  %687 = vperm.xlu0 %5501, %v6058_v53  }
  0xd4   :  { %v6066_v52 = vpop.permute.xlu0 %166 }
  0xd5   :  { %9965 = vst [vmem:[#allocation37_spill] sm:$0xff] %v6066_v52  ;;  %647 = vperm.xlu1 %5466, %v5707_v15  }
  0xd6   :  { %5503 = vset.pattern.permute.xlu0 %v9966_v30  ;;  %v6070_v63 = vpop.permute.xlu1 %571 }
  0xd7   :  { %9967 = vst [vmem:[#allocation38_spill] sm:$0xff] %v6070_v63  ;;  %956 = vperm.xlu0 %5503, %v5642_v4  }
  0xd8   :  { %v6073_v46 = vpop.permute.xlu0 %256 }
  0xd9   :  { %9968 = vst [vmem:[#allocation39_spill] sm:$0xff] %v6073_v46  ;;  %5467 = vset.pattern.permute.xlu1 %v9969_v43 }
  0xda   :  { %1289 = vperm.xlu1 %5467, %v5676_v10   ;;  %v6077_v56 = vpop.permute.xlu1 %699 }
  0xdb   :  { %888 = vperm.xlu0 %5503, %v5669_v9  }
  0xdc   :  { %v6080_v49 = vpop.permute.xlu0 %171 }
  0xdd   :  { %9970 = vst [vmem:[#allocation40_spill] sm:$0xff] %v6080_v49  ;;  %v6129_v49 = vld [vmem:[%s9803_s0 + $0x1b0] sm:$0xff] }
  0xde   :  { %1413 = vperm.xlu1 %5467, %v5836_v36   ;;  %v6083_v52 = vpop.permute.xlu1 %703 }
  0xdf   :  { %1016 = vperm.xlu0 %5503, %v5682_v11  }
  0xe0   :  { %v6086_v63 = vpop.permute.xlu0 %336 }
  0xe1   :  { %9971 = vst [vmem:[#allocation41_spill] sm:$0xff] %v6086_v63 }
  0xe2   :  { %5468 = vset.pattern.permute.xlu1 %v9966_v30 }
  0xe3   :  { %960 = vperm.xlu0 %5503, %v5657_v7   ;;  %968 = vperm.xlu1 %5468, %v5863_v38   ;;  %v6091_v4 = vpop.permute.xlu1 %1345 }
  0xe4   :  { %9972 = vst [vmem:[#allocation42_spill] sm:$0xff] %v6091_v4  ;;  %v6093_v46 = vpop.permute.xlu0 %261 }
  0xe5   :  { %9973 = vst [vmem:[#allocation43_spill] sm:$0xff] %v6093_v46 }
  0xe7   :  { %1092 = vperm.xlu0 %5503, %v5664_v8   ;;  %1096 = vperm.xlu1 %5468, %v5926_v54   ;;  %v6097_v9 = vpop.permute.xlu1 %1469 }
  0xe8   :  { %v6099_v36 = vpop.permute.xlu0 %426 }
  0xe9   :  { %9974 = vst [vmem:[#allocation44_spill] sm:$0xff] %v6099_v36 }
  0xeb   :  { %900 = vperm.xlu0 %5503, %v5676_v10   ;;  %1100 = vperm.xlu1 %5468, %v5870_v39  }
  0xec   :  { %v6103_v11 = vpop.permute.xlu1 %121  ;;  %v6105_v7 = vpop.permute.xlu0 %186 }
  0xed   :  { %9975 = vst [vmem:[#allocation45_spill] sm:$0xff] %v6103_v11  ;;  %9976 = vst [vmem:[#allocation46_spill] sm:$0xff] %v6105_v7 }
  0xef   :  { %1028 = vperm.xlu0 %5503, %v5844_v37   ;;  %908 = vperm.xlu1 %5468, %v5881_v42  }
  0xf0   :  { %v6109_v63 = vpop.permute.xlu1 %281 }
  0xf1   :  { %9977 = vst [vmem:[#allocation47_spill] sm:$0xff] %v6109_v63  ;;  %v6111_v8 = vpop.permute.xlu0 %563 }
  0xf3   :  { %972 = vperm.xlu0 %5503, %v5688_v12   ;;  %1036 = vperm.xlu1 %5468, %v5707_v15  }
  0xf4   :  { %v6115_v36 = vpop.permute.xlu1 %286 }
  0xf5   :  { %9978 = vst [vmem:[#allocation48_spill] sm:$0xff] %v6115_v36  ;;  %v6117_v10 = vpop.permute.xlu0 %695 }
  0xf7   :  { %904 = vperm.xlu0 %5503, %v5700_v14   ;;  %5469 = vset.pattern.permute.xlu1 %v9955_v59 }
  0xf8   :  { %226 = vperm.xlu1 %5469, %v5892_v45  }
  0xf9   :  { %v6122_v7 = vpop.permute.xlu0 %499  ;;  %v6124_v46 = vpop.permute.xlu1 %511 }
  0xfa   :  { %9979 = vst [vmem:[#allocation49_spill] sm:$0xff] %v6122_v7  ;;  %9980 = vst [vmem:[#allocation50_spill] sm:$0xff] %v6124_v46 }
  0xfb   :  { %1032 = vperm.xlu0 %5503, %v6029_v13  }
  0xfc   :  { %381 = vperm.xlu1 %5469, %v6129_v49  }
  0xfd   :  { %v6133_v36 = vpop.permute.xlu0 %631  ;;  %v6135_v63 = vpop.permute.xlu1 %635 }
  0xfe   :  { %9981 = vst [vmem:[#allocation51_spill] sm:$0xff] %v6133_v36  ;;  %9982 = vst [vmem:[#allocation52_spill] sm:$0xff] %v6135_v63 }
  0xff   :  { %976 = vperm.xlu0 %5503, %v5715_v16  }
 0x100   :  { %5470 = vset.pattern.permute.xlu1 %v9960_v32 }
 0x101   :  { %v6139_v11 = vpop.permute.xlu0 %575  ;;  %587 = vperm.xlu1 %5470, %v5715_v16  }
 0x102   :  { %9983 = vst [vmem:[#allocation53_spill] sm:$0xff] %v6139_v11  ;;  %v6142_v4 = vpop.permute.xlu1 %1277 }
 0x103   :  { %9984 = vst [vmem:[#allocation54_spill] sm:$0xff] %v6142_v4  ;;  %1108 = vperm.xlu0 %5503, %v5722_v17  }
 0x105   :  { %v6145_v46 = vpop.permute.xlu0 %507  ;;  %715 = vperm.xlu1 %5470, %v6129_v49  }
 0x106   :  { %9985 = vst [vmem:[#allocation55_spill] sm:$0xff] %v6145_v46  ;;  %v6148_v7 = vpop.permute.xlu1 %1405 }
 0x107   :  { %9986 = vst [vmem:[#allocation56_spill] sm:$0xff] %v6148_v7  ;;  %916 = vperm.xlu0 %5503, %v5730_v19  }
 0x109   :  { %v6151_v63 = vpop.permute.xlu0 %639  ;;  %719 = vperm.xlu1 %5470, %v5722_v17  }
 0x10a   :  { %9987 = vst [vmem:[#allocation57_spill] sm:$0xff] %v6151_v63  ;;  %v6154_v36 = vpop.permute.xlu1 %1409 }
 0x10b   :  { %9988 = vst [vmem:[#allocation58_spill] sm:$0xff] %v6154_v36  ;;  %1044 = vperm.xlu0 %5503, %v5914_v51   ;;  %v6173_v36 = vld [vmem:[%s9803_s0 + $0x140] sm:$0xff] }
 0x10c   :  { %9993 = vst [vmem:[#allocation63_spill] sm:$0xff] %v6173_v36 }
 0x10d   :  { %5471 = vset.pattern.permute.xlu1 %v9969_v43  ;;  %v6158_v4 = vpop.permute.xlu0 %579 }
 0x10e   :  { %9989 = vst [vmem:[#allocation59_spill] sm:$0xff] %v6158_v4  ;;  %1361 = vperm.xlu1 %5471, %v5688_v12  }
 0x10f   :  { %988 = vperm.xlu0 %5503, %v5737_v20   ;;  %v6162_v46 = vpop.permute.xlu1 %964 }
 0x110   :  { %9990 = vst [vmem:[#allocation60_spill] sm:$0xff] %v6162_v46 }
 0x111   :  { %v6164_v7 = vpop.permute.xlu0 %711 }
 0x112   :  { %9991 = vst [vmem:[#allocation61_spill] sm:$0xff] %v6164_v7  ;;  %1485 = vperm.xlu1 %5471, %v5926_v54   ;;  %v6185_v54 = vld [vmem:[%s9803_s0 + $0x130] sm:$0xff] }
 0x113   :  { %920 = vperm.xlu0 %5503, %v5744_v21   ;;  %v6168_v63 = vpop.permute.xlu1 %1088 }
 0x114   :  { %9992 = vst [vmem:[#allocation62_spill] sm:$0xff] %v6168_v63 }
 0x115   :  { %v6175_v4 = vpop.permute.xlu0 %519 }
 0x116   :  { %9994 = vst [vmem:[#allocation64_spill] sm:$0xff] %v6175_v4  ;;  %5472 = vset.pattern.permute.xlu1 %v9955_v59 }
 0x117   :  { %1048 = vperm.xlu0 %5503, %v6173_v36   ;;  %141 = vperm.xlu1 %5472, %v5903_v48   ;;  %v6180_v12 = vpop.permute.xlu1 %896 }
 0x118   :  { %9995 = vst [vmem:[#allocation65_spill] sm:$0xff] %v6180_v12 }
 0x119   :  { %v6187_v7 = vpop.permute.xlu0 %591 }
 0x11a   :  { %9996 = vst [vmem:[#allocation66_spill] sm:$0xff] %v6187_v7 }
 0x11b   :  { %992 = vperm.xlu0 %5503, %v5758_v23   ;;  %301 = vperm.xlu1 %5472, %v6185_v54   ;;  %v6191_v4 = vpop.permute.xlu1 %1024 }
 0x11c   :  { %9997 = vst [vmem:[#allocation67_spill] sm:$0xff] %v6191_v4 }
 0x11d   :  { %v6193_v46 = vpop.permute.xlu0 %523 }
 0x11e   :  { %9998 = vst [vmem:[#allocation68_spill] sm:$0xff] %v6193_v46 }
 0x11f   :  { %1124 = vperm.xlu0 %5503, %v5771_v25   ;;  %306 = vperm.xlu1 %5472, %v5914_v51  }
 0x120   :  { %v6197_v12 = vpop.permute.xlu1 %211 }
 0x121   :  { %9999 = vst [vmem:[#allocation69_spill] sm:$0xff] %v6197_v12  ;;  %v6199_v63 = vpop.permute.xlu0 %655 }
 0x122   :  { %10000 = vst [vmem:[#allocation70_spill] sm:$0xff] %v6199_v63 }
 0x123   :  { %932 = vperm.xlu0 %5503, %v5783_v27   ;;  %5473 = vset.pattern.permute.xlu1 %v9960_v32 }
 0x124   :  { %527 = vperm.xlu1 %5473, %v5730_v19   ;;  %v6204_v7 = vpop.permute.xlu1 %371 }
 0x125   :  { %v6206_v11 = vpop.permute.xlu0 %595 }
 0x126   :  { %10001 = vst [vmem:[#allocation71_spill] sm:$0xff] %v6206_v11  ;;  %v6225_v11 = vld [vmem:[%s9803_s0 + $0x160] sm:$0xff] }
 0x127   :  { %1060 = vperm.xlu0 %5503, %v5986_v2   ;;  %10004 = vst [vmem:[#allocation74_spill] sm:$0xff] %v6225_v11 }
 0x128   :  { %651 = vperm.xlu1 %5473, %v6185_v54   ;;  %v6210_v46 = vpop.permute.xlu1 %376 }
 0x129   :  { %v6212_v4 = vpop.permute.xlu0 %727 }
 0x12a   :  { %10002 = vst [vmem:[#allocation72_spill] sm:$0xff] %v6212_v4 }
 0x12b   :  { %1004 = vperm.xlu0 %5503, %v5790_v28  }
 0x12c   :  { %5474 = vset.pattern.permute.xlu1 %v9969_v43 }
 0x12d   :  { %1293 = vperm.xlu1 %5474, %v5700_v14   ;;  %v6217_v63 = vpop.permute.xlu1 %583  ;;  %v6219_v12 = vpop.permute.xlu0 %535 }
 0x12e   :  { %10003 = vst [vmem:[#allocation73_spill] sm:$0xff] %v6219_v12 }
 0x12f   :  { %936 = vperm.xlu0 %5503, %v5797_v29  }
 0x131   :  { %1421 = vperm.xlu1 %5474, %v6029_v13   ;;  %v6228_v4 = vpop.permute.xlu1 %707  ;;  %v6230_v28 = vpop.permute.xlu0 %607 }
 0x132   :  { %10005 = vst [vmem:[#allocation75_spill] sm:$0xff] %v6230_v28 }
 0x133   :  { %1064 = vperm.xlu0 %5503, %v6225_v11  }
 0x135   :  { %1425 = vperm.xlu1 %5474, %v5707_v15   ;;  %v6234_v14 = vpop.permute.xlu0 %539 }
 0x136   :  { %10006 = vst [vmem:[#allocation76_spill] sm:$0xff] %v6234_v14  ;;  %v6236_v12 = vpop.permute.xlu1 %1349 }
 0x137   :  { %1008 = vperm.xlu0 %5503, %v5808_v31  }
 0x139   :  { %5475 = vset.pattern.permute.xlu1 %v9966_v30  ;;  %v6240_v29 = vpop.permute.xlu0 %671 }
 0x13a   :  { %10007 = vst [vmem:[#allocation77_spill] sm:$0xff] %v6240_v29  ;;  %980 = vperm.xlu1 %5475, %v5892_v45   ;;  %v6243_v13 = vpop.permute.xlu1 %1477 }
 0x13b   :  { %1140 = vperm.xlu0 %5503, %v5816_v33  }
 0x13d   :  { %v6246_v28 = vpop.permute.xlu0 %611 }
 0x13e   :  { %10008 = vst [vmem:[#allocation78_spill] sm:$0xff] %v6246_v28  ;;  %1104 = vperm.xlu1 %5475, %v6129_v49   ;;  %v6249_v15 = vpop.permute.xlu1 %1481 }
 0x13f   :  { %948 = vperm.xlu0 %5503, %v5823_v34  }
 0x141   :  { %v6252_v14 = vpop.permute.xlu0 %743 }
 0x142   :  { %10009 = vst [vmem:[#allocation79_spill] sm:$0xff] %v6252_v14  ;;  %912 = vperm.xlu1 %5475, %v5903_v48  }
 0x143   :  { %1076 = vperm.xlu0 %5503, %v6058_v53   ;;  %v6256_v31 = vpop.permute.xlu1 %136  ;;  %v6275_v53 = vld [vmem:[%s9803_s0 + $0x1c0] sm:$0xff] }
 0x145   :  { %v6258_v29 = vpop.permute.xlu0 %551 }
 0x146   :  { %10010 = vst [vmem:[#allocation80_spill] sm:$0xff] %v6258_v29  ;;  %1040 = vperm.xlu1 %5475, %v6185_v54  }
 0x147   :  { %5506 = vset.pattern.permute.xlu0 %v9969_v43  ;;  %v6262_v33 = vpop.permute.xlu1 %291 }
 0x148   :  { %10011 = vst [vmem:[#allocation81_spill] sm:$0xff] %v6262_v33  ;;  %1341 = vperm.xlu0 %5506, %v5628_v1   ;;  %v10104_v33 = vld [vmem:[#allocation57_spill] sm:$0xff] }
 0x149   :  { %v6265_v28 = vpop.permute.xlu0 %623 }
 0x14a   :  { %10012 = vst [vmem:[#allocation82_spill] sm:$0xff] %v6265_v28  ;;  %5476 = vset.pattern.permute.xlu1 %v9955_v59 }
 0x14b   :  { %231 = vperm.xlu1 %5476, %v5931_v55  }
 0x14c   :  { %1473 = vperm.xlu0 %5506, %v5637_v3   ;;  %v6270_v34 = vpop.permute.xlu1 %515 }
 0x14d   :  { %10013 = vst [vmem:[#allocation83_spill] sm:$0xff] %v6270_v34  ;;  %v6277_v29 = vpop.permute.xlu0 %555  ;;  %v10103_v34 = vld [vmem:[#allocation54_spill] sm:$0xff] }
 0x14e   :  { %10014 = vst [vmem:[#allocation84_spill] sm:$0xff] %v6277_v29 }
 0x14f   :  { %391 = vperm.xlu1 %5476, %v6275_v53  }
 0x150   :  { %1281 = vperm.xlu0 %5506, %v5649_v5   ;;  %v6281_v1 = vpop.permute.xlu1 %643 }
 0x151   :  { %10015 = vst [vmem:[#allocation85_spill] sm:$0xff] %v6281_v1  ;;  %v6283_v28 = vpop.permute.xlu0 %687 }
 0x152   :  { %10016 = vst [vmem:[#allocation86_spill] sm:$0xff] %v6283_v28 }
 0x153   :  { %396 = vperm.xlu1 %5476, %v5942_v58  }
 0x154   :  { %1353 = vperm.xlu0 %5506, %v5763_v24   ;;  %v6287_v3 = vpop.permute.xlu1 %647 }
 0x155   :  { %10017 = vst [vmem:[#allocation87_spill] sm:$0xff] %v6287_v3 }
 0x156   :  { %v6289_v14 = vpop.permute.xlu0 %956 }
 0x157   :  { %5477 = vset.pattern.permute.xlu1 %v9960_v32 }
 0x158   :  { %1285 = vperm.xlu0 %5506, %v5828_v35   ;;  %599 = vperm.xlu1 %5477, %v5737_v20  }
 0x159   :  { %v6294_v29 = vpop.permute.xlu1 %1289 }
 0x15a   :  { %v6296_v5 = vpop.permute.xlu0 %888 }
 0x15c   :  { %1417 = vperm.xlu0 %5506, %v5844_v37   ;;  %723 = vperm.xlu1 %5477, %v6275_v53  }
 0x15d   :  { %v6300_v28 = vpop.permute.xlu1 %1413 }
 0x15e   :  { %10018 = vst [vmem:[#allocation88_spill] sm:$0xff] %v6300_v28  ;;  %v6302_v24 = vpop.permute.xlu0 %1016 }
 0x160   :  { %1357 = vperm.xlu0 %5506, %v5863_v38   ;;  %5478 = vset.pattern.permute.xlu1 %v9969_v43 }
 0x161   :  { %1365 = vperm.xlu1 %5478, %v5715_v16  }
 0x162   :  { %v6307_v35 = vpop.permute.xlu0 %960  ;;  %v6309_v11 = vpop.permute.xlu1 %968 }
 0x163   :  { %10019 = vst [vmem:[#allocation89_spill] sm:$0xff] %v6309_v11 }
 0x164   :  { %1489 = vperm.xlu0 %5506, %v5870_v39  }
 0x165   :  { %1493 = vperm.xlu1 %5478, %v6129_v49  }
 0x166   :  { %v6313_v37 = vpop.permute.xlu0 %1092  ;;  %v6315_v3 = vpop.permute.xlu1 %1096 }
 0x167   :  { %10020 = vst [vmem:[#allocation90_spill] sm:$0xff] %v6315_v3 }
 0x168   :  { %1297 = vperm.xlu0 %5506, %v5881_v42  }
 0x169   :  { %1497 = vperm.xlu1 %5478, %v5722_v17  }
 0x16a   :  { %v6319_v38 = vpop.permute.xlu0 %900  ;;  %v6321_v28 = vpop.permute.xlu1 %1100 }
 0x16b   :  { %10021 = vst [vmem:[#allocation91_spill] sm:$0xff] %v6321_v28 }
 0x16c   :  { %1369 = vperm.xlu0 %5506, %v5892_v45  }
 0x16d   :  { %5479 = vset.pattern.permute.xlu1 %v9955_v59 }
 0x16e   :  { %v6325_v16 = vpop.permute.xlu0 %1028  ;;  %156 = vperm.xlu1 %5479, %v5953_v61   ;;  %v6328_v39 = vpop.permute.xlu1 %908 }
 0x16f   :  { %10022 = vst [vmem:[#allocation92_spill] sm:$0xff] %v6328_v39 }
 0x170   :  { %1301 = vperm.xlu0 %5506, %v5903_v48  }
 0x172   :  { %v6331_v49 = vpop.permute.xlu0 %972  ;;  %311 = vperm.xlu1 %5479, %v6173_v36   ;;  %v6334_v17 = vpop.permute.xlu1 %1036 }
 0x173   :  { %10023 = vst [vmem:[#allocation93_spill] sm:$0xff] %v6331_v49  ;;  %10024 = vst [vmem:[#allocation94_spill] sm:$0xff] %v6334_v17 }
 0x174   :  { %1433 = vperm.xlu0 %5506, %v5914_v51  }
 0x176   :  { %v6337_v42 = vpop.permute.xlu0 %904  ;;  %5480 = vset.pattern.permute.xlu1 %v9960_v32 }
 0x177   :  { %10025 = vst [vmem:[#allocation95_spill] sm:$0xff] %v6337_v42  ;;  %531 = vperm.xlu1 %5480, %v5744_v21   ;;  %v6341_v45 = vpop.permute.xlu1 %226  ;;  %v10067_v42 = vld [vmem:[#allocation13_spill] sm:$0xff] }
 0x178   :  { %10026 = vst [vmem:[#allocation96_spill] sm:$0xff] %v6341_v45  ;;  %1373 = vperm.xlu0 %5506, %v5931_v55  }
 0x17a   :  { %v6344_v39 = vpop.permute.xlu0 %1032 }
 0x17b   :  { %10027 = vst [vmem:[#allocation97_spill] sm:$0xff] %v6344_v39  ;;  %659 = vperm.xlu1 %5480, %v6173_v36   ;;  %v6347_v48 = vpop.permute.xlu1 %381  ;;  %v10076_v39 = vld [vmem:[#allocation22_spill] sm:$0xff]  ;;  %v10088_v36 = vld [vmem:[#allocation31_spill] sm:$0xff] }
 0x17c   :  { %10028 = vst [vmem:[#allocation98_spill] sm:$0xff] %v6347_v48  ;;  %1505 = vperm.xlu0 %5506, %v5942_v58  }
 0x17e   :  { %v6350_v17 = vpop.permute.xlu0 %976 }
 0x17f   :  { %10029 = vst [vmem:[#allocation99_spill] sm:$0xff] %v6350_v17  ;;  %663 = vperm.xlu1 %5480, %v5751_v22  }
 0x180   :  { %v6353_v51 = vpop.permute.xlu1 %587  ;;  %1313 = vperm.xlu0 %5506, %v5953_v61  }
 0x181   :  { %10030 = vst [vmem:[#allocation100_spill] sm:$0xff] %v6353_v51 }
 0x182   :  { %v6356_v21 = vpop.permute.xlu0 %1108 }
 0x183   :  { %10031 = vst [vmem:[#allocation101_spill] sm:$0xff] %v6356_v21  ;;  %5481 = vset.pattern.permute.xlu1 %v9969_v43 }
 0x184   :  { %1305 = vperm.xlu1 %5481, %v5730_v19   ;;  %v6360_v45 = vpop.permute.xlu1 %715  ;;  %1385 = vperm.xlu0 %5506, %v5965_v0  }
 0x185   :  { %10032 = vst [vmem:[#allocation102_spill] sm:$0xff] %v6360_v45  ;;  %v10065_v45 = vld [vmem:[#allocation11_spill] sm:$0xff] }
 0x186   :  { %v6363_v48 = vpop.permute.xlu0 %916 }
 0x187   :  { %10033 = vst [vmem:[#allocation103_spill] sm:$0xff] %v6363_v48 }
 0x188   :  { %1429 = vperm.xlu1 %5481, %v6185_v54   ;;  %v6366_v17 = vpop.permute.xlu1 %719  ;;  %1317 = vperm.xlu0 %5506, %v5976_v18  }
 0x189   :  { %10034 = vst [vmem:[#allocation104_spill] sm:$0xff] %v6366_v17 }
 0x18a   :  { %v6369_v51 = vpop.permute.xlu0 %1044 }
 0x18b   :  { %10035 = vst [vmem:[#allocation105_spill] sm:$0xff] %v6369_v51 }
 0x18c   :  { %5482 = vset.pattern.permute.xlu1 %v9966_v30  ;;  %1449 = vperm.xlu0 %5506, %v5986_v2  }
 0x18d   :  { %984 = vperm.xlu1 %5482, %v5931_v55   ;;  %v6374_v19 = vpop.permute.xlu1 %1361 }
 0x18e   :  { %10036 = vst [vmem:[#allocation106_spill] sm:$0xff] %v6374_v19  ;;  %v6376_v21 = vpop.permute.xlu0 %988  ;;  %v10078_v19 = vld [vmem:[#allocation29_spill] sm:$0xff] }
 0x18f   :  { %10037 = vst [vmem:[#allocation107_spill] sm:$0xff] %v6376_v21 }
 0x190   :  { %1389 = vperm.xlu0 %5506, %v5997_v6  }
 0x191   :  { %1112 = vperm.xlu1 %5482, %v6275_v53   ;;  %v6380_v54 = vpop.permute.xlu1 %1485 }
 0x192   :  { %10038 = vst [vmem:[#allocation108_spill] sm:$0xff] %v6380_v54  ;;  %v6382_v48 = vpop.permute.xlu0 %920  ;;  %v10066_v54 = vld [vmem:[#allocation12_spill] sm:$0xff] }
 0x193   :  { %10039 = vst [vmem:[#allocation109_spill] sm:$0xff] %v6382_v48 }
 0x194   :  { %1521 = vperm.xlu0 %5506, %v6008_v62  }
 0x195   :  { %1116 = vperm.xlu1 %5482, %v5942_v58  }
 0x196   :  { %v6386_v51 = vpop.permute.xlu1 %141  ;;  %v6388_v30 = vpop.permute.xlu0 %1048 }
 0x197   :  { %10040 = vst [vmem:[#allocation110_spill] sm:$0xff] %v6386_v51  ;;  %10041 = vst [vmem:[#allocation111_spill] sm:$0xff] %v6388_v30  ;;  %v10059_v51 = vld [vmem:[#allocation9_spill] sm:$0xff] }
 0x198   :  { %1329 = vperm.xlu0 %5506, %v6019_v60  }
 0x199   :  { %924 = vperm.xlu1 %5482, %v5953_v61   ;;  %v6412_v61 = vld [vmem:[%s9803_s0 + $0x1d0] sm:$0xff] }
 0x19a   :  { %v6392_v55 = vpop.permute.xlu1 %301  ;;  %v6394_v6 = vpop.permute.xlu0 %992  ;;  %10048 = vst [vmem:[#allocation118_spill] sm:$0xff] %v6412_v61 }
 0x19b   :  { %10042 = vst [vmem:[#allocation112_spill] sm:$0xff] %v6392_v55  ;;  %10043 = vst [vmem:[#allocation113_spill] sm:$0xff] %v6394_v6 }
 0x19c   :  { %1401 = vperm.xlu0 %5506, %v6035_v26  }
 0x19d   :  { %1052 = vperm.xlu1 %5482, %v5751_v22  }
 0x19e   :  { %v6398_v48 = vpop.permute.xlu1 %306  ;;  %v6400_v62 = vpop.permute.xlu0 %1124 }
 0x19f   :  { %10044 = vst [vmem:[#allocation114_spill] sm:$0xff] %v6398_v48  ;;  %10045 = vst [vmem:[#allocation115_spill] sm:$0xff] %v6400_v62  ;;  %v10058_v48 = vld [vmem:[#allocation8_spill] sm:$0xff] }
 0x1a0   :  { %1333 = vperm.xlu0 %5506, %v6046_v57  }
 0x1a1   :  { %5483 = vset.pattern.permute.xlu1 %v9955_v59 }
 0x1a2   :  { %246 = vperm.xlu1 %5483, %v5965_v0   ;;  %v6405_v58 = vpop.permute.xlu0 %932  ;;  %v10062_v0 = vld [vmem:[#allocation10_spill] sm:$0xff] }
 0x1a3   :  { %10046 = vst [vmem:[#allocation116_spill] sm:$0xff] %v6405_v58  ;;  %v6407_v60 = vpop.permute.xlu1 %527 }
 0x1a4   :  { %10047 = vst [vmem:[#allocation117_spill] sm:$0xff] %v6407_v60  ;;  %v10060_v60 = vld [vmem:[#allocation18_spill] sm:$0xff] }
 0x1a6   :  { %401 = vperm.xlu1 %5483, %v6412_v61   ;;  %v6415_v22 = vpop.permute.xlu0 %1060 }
 0x1a7   :  { %10049 = vst [vmem:[#allocation119_spill] sm:$0xff] %v6415_v22  ;;  %v6417_v26 = vpop.permute.xlu1 %651  ;;  %v6435_v22 = vld [vmem:[%s9804_s1 + $0x1] ss:$0 sm:$0xff] }
 0x1a8   :  { %10050 = vst [vmem:[#allocation120_spill] sm:$0xff] %v6417_v26  ;;  %v806_v21 = vmul.f32 %v6435_v22, %v5908_v50  ;;  %v759_v50 = vmul.f32 %v6435_v22, %v10060_v60 }
 0x1aa   :  { %5484 = vset.pattern.permute.xlu1 %v9960_v32  ;;  %v6420_v57 = vpop.permute.xlu0 %1004 }
 0x1ab   :  { %10051 = vst [vmem:[#allocation121_spill] sm:$0xff] %v6420_v57  ;;  %603 = vperm.xlu1 %5484, %v5758_v23   ;;  %v6443_v23 = vld [vmem:[%s9804_s1] ss:$0 sm:$0xff] }
 0x1ac   :  { %v6423_v58 = vpop.permute.xlu1 %1293  ;;  %v449_v26 = vmul.f32 %v6443_v23, %v5875_v41  ;;  %v436_v60 = vmul.f32 %v6443_v23, %v10067_v42  ;;  %v10073_v42 = vld [vmem:[#allocation25_spill] sm:$0xff] }
 0x1ad   :  { %10052 = vst [vmem:[#allocation122_spill] sm:$0xff] %v6423_v58 }
 0x1ae   :  { %v6425_v62 = vpop.permute.xlu0 %936 }
 0x1af   :  { %10053 = vst [vmem:[#allocation123_spill] sm:$0xff] %v6425_v62  ;;  %731 = vperm.xlu1 %5484, %v6412_v61   ;;  %v450_v62 = vmul.f32 %v6443_v23, %v5886_v44  ;;  %v482_v44 = vmul.f32 %v6443_v23, %v10058_v48  ;;  %v484_v48 = vmul.f32 %v6443_v23, %v10065_v45 }
 0x1b0   :  { %v6428_v6 = vpop.permute.xlu1 %1421 }
 0x1b1   :  { %10054 = vst [vmem:[#allocation124_spill] sm:$0xff] %v6428_v6 }
 0x1b2   :  { %v6430_v30 = vpop.permute.xlu0 %1064 }
 0x1b3   :  { %10055 = vst [vmem:[#allocation125_spill] sm:$0xff] %v6430_v30  ;;  %735 = vperm.xlu1 %5484, %v5771_v25   ;;  %v775_v30 = vmul.f32 %v6435_v22, %v5897_v47  ;;  %v481_v25 = vmul.f32 %v6443_v23, %v5872_v40  ;;  %v434_v47 = vmul.f32 %v6443_v23, %v10059_v51 }
 0x1b4   :  { %v6438_v57 = vpop.permute.xlu1 %1425  ;;  %v451_v40 = vmul.f32 %v6443_v23, %v10062_v0  ;;  %v433_v51 = vmul.f32 %v6443_v23, %v10066_v54  ;;  %v6484_v0 = vld [vmem:[%s9804_s1 + $0x2] ss:$0 sm:$0xff] }
 0x1b5   :  { %10056 = vst [vmem:[#allocation126_spill] sm:$0xff] %v6438_v57  ;;  %v839_v61 = vadd.f32 %v775_v30, %v450_v62  ;;  %v870_v58 = vadd.f32 %v806_v21, %v481_v25  ;;  %v10069_v21 = vld [vmem:[#allocation15_spill] sm:$0xff]  ;;  %v10070_v25 = vld [vmem:[#allocation16_spill] sm:$0xff] }
 0x1b6   :  { %v6451_v55 = vpop.permute.xlu0 %1008  ;;  %v6488_v62 = vmul.f32 %v6443_v23, %v10069_v21  ;;  %v466_v45 = vmul.f32 %v6443_v23, %v10070_v25  ;;  %v10074_v57 = vld [vmem:[#allocation20_spill] sm:$0xff]  ;;  %v6505_v21 = vmul.f32 %v6443_v23, %v10076_v39  ;;  %v1148_v25 = vmul.f32 %v6484_v0, %v10078_v19 }
 0x1b7   :  { %10057 = vst [vmem:[#allocation127_spill] sm:$0xff] %v6451_v55  ;;  %5485 = vset.pattern.permute.xlu1 %v9969_v43  ;;  %v6501_v17 = vmul.f32 %v6443_v23, %v10074_v57  ;;  %v774_v57 = vmul.f32 %v6435_v22, %v6111_v8 }
 0x1b8   :  { %1377 = vperm.xlu1 %5485, %v5737_v20   ;;  %v10063_v20 = vld [vmem:[#allocation21_spill] sm:$0xff] }
 0x1b9   :  { %v6465_v55 = vpop.permute.xlu1 %980  ;;  %v790_v6 = vmul.f32 %v6435_v22, %v10063_v20  ;;  %v10071_v20 = vld [vmem:[#allocation17_spill] sm:$0xff]  ;;  %10075 = vst [vmem:[#allocation10_spill] sm:$0xff] %v6501_v17  ;;  %10077 = vst [vmem:[#allocation21_spill] sm:$0xff] %v6505_v21  ;;  %v10083_v21 = vld [vmem:[#allocation24_spill] sm:$0xff]  ;;  %v838_v28 = vadd.f32 %v774_v57, %v449_v26 }
 0x1ba   :  { %10061 = vst [vmem:[#allocation8_spill] sm:$0xff] %v6465_v55  ;;  %v6471_v41 = vpop.permute.xlu0 %1140  ;;  %v10068_v55 = vld [vmem:[#allocation14_spill] sm:$0xff]  ;;  %v6494_v54 = vmul.f32 %v6443_v23, %v10071_v20  ;;  %v6523_v19 = vmul.f32 %v6443_v23, %v10083_v21  ;;  %v10086_v21 = vld [vmem:[#allocation51_spill] sm:$0xff] }
 0x1bb   :  { %10064 = vst [vmem:[#allocation9_spill] sm:$0xff] %v6471_v41  ;;  %v465_v30 = vmul.f32 %v6443_v23, %v10068_v55  ;;  %v1195_v41 = vmul.f32 %v6484_v0, %v10073_v42  ;;  %v823_v55 = vadd.f32 %v759_v50, %v434_v47  ;;  %v10082_v50 = vld [vmem:[#allocation23_spill] sm:$0xff] }
 0x1bc   :  { %10072 = vst [vmem:[#allocation18_spill] sm:$0xff] %v6494_v54  ;;  %1501 = vperm.xlu1 %5485, %v6275_v53   ;;  %v10080_v54 = vld [vmem:[#allocation38_spill] sm:$0xff]  ;;  %v808_v53 = vmul.f32 %v6435_v22, %v6077_v56  ;;  %v1163_v39 = vmul.f32 %v6484_v0, %v10082_v50  ;;  %10084 = vst [vmem:[#allocation13_spill] sm:$0xff] %v6523_v19  ;;  %v807_v56 = vmul.f32 %v6435_v22, %v6117_v10 }
 0x1bd   :  { %v6509_v49 = vpop.permute.xlu1 %1104  ;;  %v854_v20 = vadd.f32 %v790_v6, %v465_v30  ;;  %v776_v42 = vmul.f32 %v6435_v22, %v10080_v54  ;;  %v809_v6 = vmul.f32 %v6435_v22, %v6083_v52  ;;  %v6530_v30 = vld [vmem:[%s9804_s1 + $0x3] ss:$0 sm:$0xff]  ;;  %v1259_v8 = vadd.f32 %v1195_v41, %v870_v58  ;;  %v10087_v52 = vld [vmem:[#allocation27_spill] sm:$0xff]  ;;  %v10089_v58 = vld [vmem:[#allocation34_spill] sm:$0xff] }
 0x1be   :  { %10079 = vst [vmem:[#allocation11_spill] sm:$0xff] %v6509_v49  ;;  %v6517_v47 = vpop.permute.xlu0 %948  ;;  %v10085_v54 = vld [vmem:[#allocation36_spill] sm:$0xff]  ;;  %v1584_v50 = vmul.f32 %v6530_v30, %v6097_v9  ;;  %v791_v49 = vmul.f32 %v6435_v22, %v10086_v21  ;;  %v1196_v19 = vmul.f32 %v6484_v0, %v10087_v52  ;;  %v6543_v17 = vadd.f32 %v1148_v25, %v823_v55 }
 0x1bf   :  { %10081 = vst [vmem:[#allocation12_spill] sm:$0xff] %v6517_v47  ;;  %v483_v47 = vmul.f32 %v6443_v23, %v10085_v54  ;;  %v1180_v10 = vmul.f32 %v6484_v0, %v10088_v36  ;;  %v452_v41 = vmul.f32 %v6443_v23, %v10089_v58  ;;  %v6552_v9 = vadd.f32 %v776_v42, %v451_v40  ;;  %v6561_v36 = vld [vmem:[%s9803_s0 + $0x150] sm:$0xff]  ;;  %v10092_v58 = vld [vmem:[#allocation49_spill] sm:$0xff] }
 0x1c0   :  { %5486 = vset.pattern.permute.xlu1 %v9955_v59  ;;  %v1164_v59 = vmul.f32 %v6484_v0, %v6289_v14  ;;  %v873_v55 = vadd.f32 %v809_v6, %v484_v48  ;;  %v871_v25 = vadd.f32 %v807_v56, %v482_v44  ;;  %v10094_v42 = vld [vmem:[#allocation42_spill] sm:$0xff]  ;;  %v10095_v14 = vld [vmem:[#allocation52_spill] sm:$0xff]  ;;  %v10098_v48 = vld [vmem:[#allocation47_spill] sm:$0xff] }
 0x1c1   :  { %161 = vperm.xlu1 %5486, %v5976_v18   ;;  %v6550_v54 = vpop.permute.xlu1 %912  ;;  %v872_v21 = vadd.f32 %v808_v53, %v483_v47  ;;  %v758_v18 = vmul.f32 %v6435_v22, %v10092_v58  ;;  %v1553_v26 = vmul.f32 %v6530_v30, %v10094_v42  ;;  %v855_v53 = vadd.f32 %v791_v49, %v466_v45  ;;  %v10099_v6 = vld [vmem:[#allocation53_spill] sm:$0xff]  ;;  %v10101_v45 = vld [vmem:[#allocation48_spill] sm:$0xff] }
 0x1c2   :  { %10090 = vst [vmem:[#allocation14_spill] sm:$0xff] %v6550_v54  ;;  %v6556_v52 = vpop.permute.xlu0 %1076  ;;  %v10093_v54 = vld [vmem:[#allocation50_spill] sm:$0xff]  ;;  %v792_v57 = vmul.f32 %v6435_v22, %v10095_v14  ;;  %v6571_v47 = vadd.f32 %v1584_v50, %v1259_v8  ;;  %v467_v44 = vmul.f32 %v6443_v23, %v10098_v48  ;;  %v777_v56 = vmul.f32 %v6435_v22, %v10099_v6  ;;  %v10102_v48 = vld [vmem:[#allocation55_spill] sm:$0xff] }
 0x1c3   :  { %10091 = vst [vmem:[#allocation15_spill] sm:$0xff] %v6556_v52  ;;  %v761_v40 = vmul.f32 %v6435_v22, %v10093_v54  ;;  %v10097_v52 = vld [vmem:[#allocation45_spill] sm:$0xff]  ;;  %v1179_v54 = vmul.f32 %v6484_v0, %v6302_v24  ;;  %v468_v8 = vmul.f32 %v6443_v23, %v10101_v45  ;;  %v1228_v50 = vadd.f32 %v1164_v59, %v839_v61 }
 0x1c4   :  { %10096 = vst [vmem:[#allocation16_spill] sm:$0xff] %v6571_v47  ;;  %v435_v3 = vmul.f32 %v6443_v23, %v10097_v52  ;;  %v1198_v52 = vmul.f32 %v6484_v0, %v6313_v37  ;;  %v1227_v58 = vadd.f32 %v1163_v39, %v838_v28  ;;  %v822_v42 = vadd.f32 %v758_v18, %v433_v51  ;;  %v10107_v18 = vld [vmem:[#allocation58_spill] sm:$0xff] }
 0x1c5   :  { %321 = vperm.xlu1 %5486, %v6561_v36   ;;  %v6582_v49 = vpop.permute.xlu1 %1040  ;;  %v6588_v14 = vadd.f32 %v761_v40, %v436_v60  ;;  %v760_v6 = vmul.f32 %v6435_v22, %v10102_v48  ;;  %v1260_v24 = vadd.f32 %v1196_v19, %v871_v25  ;;  %v6592_v1 = vadd.f32 %v792_v57, %v467_v44  ;;  %v10105_v60 = vld [vmem:[#allocation62_spill] sm:$0xff]  ;;  %v10113_v48 = vld [vmem:[#allocation61_spill] sm:$0xff] }
 0x1c6   :  { %10100 = vst [vmem:[#allocation17_spill] sm:$0xff] %v6582_v49  ;;  %v1536_v49 = vmul.f32 %v6530_v30, %v10103_v34  ;;  %v1244_v59 = vadd.f32 %v1180_v10, %v855_v53  ;;  %v841_v61 = vadd.f32 %v777_v56, %v452_v41  ;;  %v793_v28 = vmul.f32 %v6435_v22, %v10104_v33  ;;  %v10106_v41 = vld [vmem:[#allocation56_spill] sm:$0xff] }
 0x1c7   :  { %v1342_v11 = vpop.permute.xlu0 %1341  ;;  %v1147_v37 = vmul.f32 %v6484_v0, %v6296_v5  ;;  %v1243_v51 = vadd.f32 %v1179_v54, %v854_v20  ;;  %v1197_v39 = vmul.f32 %v6484_v0, %v10105_v60  ;;  %v1262_v19 = vadd.f32 %v1198_v52, %v873_v55  ;;  %v10108_v20 = vld [vmem:[#allocation60_spill] sm:$0xff] }
 0x1c8   :  { %v1552_v45 = vmul.f32 %v6530_v30, %v1342_v11  ;;  %v6608_v11 = vadd.f32 %v1553_v26, %v1228_v50  ;;  %v824_v10 = vadd.f32 %v760_v6, %v435_v3  ;;  %v1568_v33 = vmul.f32 %v6530_v30, %v10106_v41 }
 0x1c9   :  { %326 = vperm.xlu1 %5486, %v5986_v2   ;;  %v1569_v5 = vmul.f32 %v6530_v30, %v10107_v18  ;;  %v1166_v2 = vmul.f32 %v6484_v0, %v10108_v20  ;;  %v1586_v55 = vmul.f32 %v6530_v30, %v6243_v13  ;;  %v1587_v53 = vmul.f32 %v6530_v30, %v6249_v15 }
 0x1ca   :  { %v6604_v25 = vpop.permute.xlu1 %231  ;;  %v6606_v34 = vadd.f32 %v1552_v45, %v1227_v58  ;;  %v6623_v57 = vadd.f32 %v793_v28, %v468_v8  ;;  %v1211_v44 = vadd.f32 %v1147_v37, %v822_v42  ;;  %v1165_v56 = vmul.f32 %v6484_v0, %v6307_v35  ;;  %v10112_v8 = vld [vmem:[#allocation59_spill] sm:$0xff] }
 0x1cb   :  { %v1474_v40 = vpop.permute.xlu0 %1473  ;;  %v6628_v54 = vadd.f32 %v1568_v33, %v1243_v51  ;;  %v1261_v50 = vadd.f32 %v1197_v39, %v872_v21  ;;  %v6630_v13 = vadd.f32 %v1587_v53, %v1262_v19  ;;  %v778_v58 = vmul.f32 %v6435_v22, %v10112_v8  ;;  %v10115_v21 = vld [vmem:[#allocation65_spill] sm:$0xff]  ;;  %v10117_v51 = vld [vmem:[#allocation67_spill] sm:$0xff] }
 0x1cc   :  { %v1585_v26 = vmul.f32 %v6530_v30, %v1474_v40  ;;  %v5164_v3 = vpack.c.bf16 %v6608_v11, %v6606_v34  ;;  %v1230_v42 = vadd.f32 %v1166_v2, %v841_v61  ;;  %v811_v35 = vmul.f32 %v6435_v22, %v10113_v48  ;;  %v10119_v2 = vld [vmem:[#allocation64_spill] sm:$0xff] }
 0x1cd   :  { %5487 = vset.pattern.permute.xlu1 %v9960_v32  ;;  %10109 = vst [vmem:[#allocation25_spill] sm:$0xff] %v6628_v54  ;;  %10110 = vst [vmem:[#allocation20_spill] sm:$0xff] %v6630_v13  ;;  %v6641_v45 = vadd.f32 %v1569_v5, %v1244_v59  ;;  %v1149_v28 = vmul.f32 %v6484_v0, %v10115_v21  ;;  %v6645_v37 = vadd.f32 %v1586_v55, %v1261_v50 }
 0x1ce   :  { %5165 = vmatprep.subr.bf16.mxu0 %v5164_v3  ;;  %543 = vperm.xlu1 %5487, %v5783_v27   ;;  %v6633_v15 = vpop.permute.xlu1 %391  ;;  %v6635_v52 = vadd.f32 %v1585_v26, %v1260_v24  ;;  %v1181_v60 = vmul.f32 %v6484_v0, %v10117_v51  ;;  %v1229_v61 = vadd.f32 %v1165_v56, %v6552_v9  ;;  %v6670_v9 = vld [vmem:[%s9803_s0 + $0x170] sm:$0xff]  ;;  %v10122_v51 = vld [vmem:[#allocation83_spill] sm:$0xff] }
 0x1cf   :  { %v1282_v6 = vpop.permute.xlu0 %1281  ;;  %10114 = vst [vmem:[#allocation29_spill] sm:$0xff] %v6641_v45  ;;  %10116 = vst [vmem:[#allocation38_spill] sm:$0xff] %v6645_v37  ;;  %v5198_v39 = vpack.c.bf16 %v6641_v45, %v6628_v54  ;;  %v6655_v59 = vadd.f32 %v1536_v49, %v1211_v44  ;;  %v1150_v19 = vmul.f32 %v6484_v0, %v6319_v38  ;;  %v10118_v49 = vld [vmem:[#allocation69_spill] sm:$0xff]  ;;  %1461 = vperm.xlu0 %5506, %v6670_v9   ;;  %v10120_v3 = vld [vmem:[#allocation66_spill] sm:$0xff] }
 0x1d0   :  { %10111 = vst [vmem:[#allocation22_spill] sm:$0xff] %v6635_v52  ;;  %v1537_v27 = vmul.f32 %v6530_v30, %v1282_v6  ;;  %v5196_v24 = vpack.c.bf16 %v6635_v52, %v6571_v47  ;;  %v5200_v18 = vpack.c.bf16 %v6630_v13, %v6645_v37  ;;  %v453_v5 = vmul.f32 %v6443_v23, %v10118_v49  ;;  %v10125_v49 = vld [vmem:[#allocation87_spill] sm:$0xff] }
 0x1d1   :  { %v486_v38 = vmul.f32 %v6443_v23, %v6210_v46  ;;  %v763_v40 = vmul.f32 %v6435_v22, %v10119_v2  ;;  %v1554_v55 = vmul.f32 %v6530_v30, %v6236_v12  ;;  %v1213_v46 = vadd.f32 %v1149_v28, %v824_v10  ;;  %v10128_v2 = vld [vmem:[#allocation91_spill] sm:$0xff] }
 0x1d2   :  { %v6660_v41 = vadd.f32 %v1537_v27, %v6543_v17  ;;  %5197 = vmatprep.subr.bf16.mxu1 %v5196_v24  ;;  %667 = vperm.xlu1 %5487, %v6561_v36   ;;  %v6663_v33 = vpop.permute.xlu1 %396  ;;  %v779_v17 = vmul.f32 %v6435_v22, %v6217_v63  ;;  %v6688_v63 = vmul.f32 %v6435_v22, %v10120_v3  ;;  %v10121_v27 = vld [vmem:[#allocation81_spill] sm:$0xff]  ;;  %v10158_v13 = vld [vmem:[#allocation99_spill] sm:$0xff] }
 0x1d3   :  { %v1354_v20 = vpop.permute.xlu0 %1353  ;;  %5199 = vmatpush3.bf16.msra.mxu1 %v5198_v39  ;;  %v1245_v44 = vadd.f32 %v1181_v60, %v6592_v1  ;;  %v810_v56 = vmul.f32 %v6435_v22, %v6228_v4  ;;  %v6693_v50 = vadd.f32 %v1554_v55, %v1229_v61  ;;  %v1214_v12 = vadd.f32 %v1150_v19, %v6588_v14  ;;  %v5512_v4 = vld [vmem:[%s9803_s0 + $0x40] sm:$0xff]  ;;  %v10123_v61 = vld [vmem:[#allocation85_spill] sm:$0xff] }
 0x1d4   :  { %v1555_v53 = vmul.f32 %v6530_v30, %v1354_v20  ;;  %5201 = vmatprep.subr.bf16.mxu1 %v5200_v18  ;;  %v5166_v26 = vpack.c.bf16 %v6660_v41, %v6655_v59  ;;  %v842_v48 = vadd.f32 %v778_v58, %v453_v5  ;;  %v485_v10 = vmul.f32 %v6443_v23, %v6204_v7  ;;  %v10124_v39 = vld [vmem:[#allocation88_spill] sm:$0xff]  ;;  %v10126_v5 = vld [vmem:[#allocation89_spill] sm:$0xff] }
 0x1d5   :  { %v875_v6 = vadd.f32 %v811_v35, %v486_v38  ;;  %v843_v21 = vadd.f32 %v779_v17, %v6488_v62  ;;  %v1539_v14 = vmul.f32 %v6530_v30, %v6294_v29  ;;  %v1182_v58 = vmul.f32 %v6484_v0, %v6325_v16  ;;  %v10127_v17 = vld [vmem:[#allocation90_spill] sm:$0xff] }
 0x1d6   :  { %v6696_v8 = vadd.f32 %v1555_v53, %v1230_v42  ;;  %5167 = vmatpush3.bf16.msra.mxu0 %v5166_v26  ;;  %5488 = vset.pattern.permute.xlu1 %v9969_v43  ;;  %v874_v62 = vadd.f32 %v810_v56, %v485_v10  ;;  %v438_v35 = vmul.f32 %v6443_v23, %v6256_v31  ;;  %v10129_v26 = vld [vmem:[#allocation63_spill] sm:$0xff]  ;;  %v10130_v56 = vld [vmem:[#allocation93_spill] sm:$0xff] }
 0x1d7   :  { %v1286_v1 = vpop.permute.xlu0 %1285  ;;  %1309 = vperm.xlu1 %5488, %v5512_v4   ;;  %v6705_v28 = vpop.permute.xlu1 %599  ;;  %v469_v24 = vmul.f32 %v6443_v23, %v10121_v27  ;;  %v762_v60 = vmul.f32 %v6435_v22, %v10122_v51  ;;  %v794_v29 = vmul.f32 %v6435_v22, %v10123_v61  ;;  %v1570_v16 = vmul.f32 %v6530_v30, %v10124_v39  ;;  %v10133_v51 = vld [vmem:[#allocation94_spill] sm:$0xff] }
 0x1d8   :  { %v1538_v42 = vmul.f32 %v6530_v30, %v1286_v1  ;;  %v5168_v7 = vpack.c.bf16 %v6696_v8, %v6693_v50  ;;  %v6724_v19 = vadd.f32 %v1539_v14, %v1214_v12  ;;  %v795_v31 = vmul.f32 %v6435_v22, %v10125_v49  ;;  %v10131_v14 = vld [vmem:[#allocation18_spill] sm:$0xff] }
 0x1d9   :  { %v1167_v38 = vmul.f32 %v6484_v0, %v10126_v5  ;;  %v1199_v20 = vmul.f32 %v6484_v0, %v10127_v17  ;;  %v1200_v55 = vmul.f32 %v6484_v0, %v10128_v2  ;;  %v1168_v12 = vmul.f32 %v6484_v0, %v10130_v56  ;;  %v10137_v17 = vld [vmem:[#allocation10_spill] sm:$0xff] }
 0x1da   :  { %v6726_v18 = vadd.f32 %v1538_v42, %v1213_v46  ;;  %5169 = vmatprep.subr.bf16.mxu0 %v5168_v7  ;;  %v1246_v46 = vadd.f32 %v1182_v58, %v6623_v57  ;;  %v827_v4 = vadd.f32 %v763_v40, %v438_v35  ;;  %v826_v42 = vadd.f32 %v762_v60, %v10131_v14  ;;  %v10132_v7 = vld [vmem:[#allocation92_spill] sm:$0xff]  ;;  %v10135_v57 = vld [vmem:[#allocation106_spill] sm:$0xff] }
 0x1db   :  { %v1418_v53 = vpop.permute.xlu0 %1417  ;;  %1437 = vperm.xlu1 %5488, %v10129_v26   ;;  %v6737_v3 = vpop.permute.xlu1 %723  ;;  %v1152_v27 = vmul.f32 %v6484_v0, %v10132_v7  ;;  %v1184_v61 = vmul.f32 %v6484_v0, %v10133_v51  ;;  %v858_v39 = vadd.f32 %v794_v29, %v469_v24  ;;  %v6750_v49 = vadd.f32 %v1570_v16, %v1245_v44  ;;  %v5513_v26 = vld [vmem:[%s9803_s0 + $0x148] sm:$0xff]  ;;  %v10144_v7 = vld [vmem:[#allocation96_spill] sm:$0xff] }
 0x1dc   :  { %v1571_v10 = vmul.f32 %v6530_v30, %v1418_v53  ;;  %v5170_v1 = vpack.c.bf16 %v6724_v19, %v6726_v18  ;;  %v1557_v58 = vmul.f32 %v6530_v30, %v10135_v57  ;;  %v859_v2 = vadd.f32 %v795_v31, %v10137_v17  ;;  %v10138_v44 = vld [vmem:[#allocation97_spill] sm:$0xff]  ;;  %v10147_v17 = vld [vmem:[#allocation124_spill] sm:$0xff] }
 0x1dd   :  { %10134 = vst [vmem:[#allocation23_spill] sm:$0xff] %v6750_v49  ;;  %v1231_v40 = vadd.f32 %v1167_v38, %v842_v48  ;;  %v1263_v35 = vadd.f32 %v1199_v20, %v874_v62  ;;  %v1264_v60 = vadd.f32 %v1200_v55, %v875_v6  ;;  %v1232_v24 = vadd.f32 %v1168_v12, %v843_v21  ;;  %v10139_v62 = vld [vmem:[#allocation104_spill] sm:$0xff]  ;;  %v10140_v38 = vld [vmem:[#allocation126_spill] sm:$0xff]  ;;  %v10141_v55 = vld [vmem:[#allocation95_spill] sm:$0xff] }
 0x1de   :  { %v6754_v5 = vadd.f32 %v1571_v10, %v1246_v46  ;;  %5171 = vmatpush3.bf16.msra.mxu0 %v5170_v1  ;;  %v1183_v29 = vmul.f32 %v6484_v0, %v10138_v44  ;;  %v1216_v31 = vadd.f32 %v1152_v27, %v827_v4  ;;  %v1248_v48 = vadd.f32 %v1184_v61, %v859_v2  ;;  %v10143_v10 = vld [vmem:[#allocation108_spill] sm:$0xff]  ;;  %v10145_v27 = vld [vmem:[#allocation98_spill] sm:$0xff] }
 0x1df   :  { %v1358_v53 = vpop.permute.xlu0 %1357  ;;  %1441 = vperm.xlu1 %5488, %v5513_v26   ;;  %v813_v6 = vmul.f32 %v6435_v22, %v10139_v62  ;;  %v1573_v20 = vmul.f32 %v6530_v30, %v10140_v38  ;;  %v1151_v21 = vmul.f32 %v6484_v0, %v10141_v55  ;;  %v6771_v12 = vadd.f32 %v1557_v58, %v1232_v24  ;;  %v10146_v61 = vld [vmem:[#allocation102_spill] sm:$0xff]  ;;  %v10149_v24 = vld [vmem:[#allocation100_spill] sm:$0xff]  ;;  %v10151_v38 = vld [vmem:[#allocation101_spill] sm:$0xff] }
 0x1e0   :  { %10136 = vst [vmem:[#allocation24_spill] sm:$0xff] %v6754_v5  ;;  %v1556_v16 = vmul.f32 %v6530_v30, %v1358_v53  ;;  %v1366_v46 = vpop.permute.xlu1 %1365  ;;  %v5202_v56 = vpack.c.bf16 %v6754_v5, %v6750_v49  ;;  %v1588_v1 = vmul.f32 %v6530_v30, %v10143_v10  ;;  %v456_v4 = vmul.f32 %v6443_v23, %v10144_v7  ;;  %v10152_v10 = vld [vmem:[#allocation13_spill] sm:$0xff] }
 0x1e1   :  { %10142 = vst [vmem:[#allocation36_spill] sm:$0xff] %v6771_v12  ;;  %v487_v51 = vmul.f32 %v6443_v23, %v10145_v27  ;;  %v812_v57 = vmul.f32 %v6435_v22, %v10146_v61  ;;  %v1572_v2 = vmul.f32 %v6530_v30, %v10147_v17  ;;  %v10148_v53 = vmov 2   ;;  %v10154_v61 = vld [vmem:[#allocation11_spill] sm:$0xff] }
 0x1e2   :  { %v6775_v14 = vadd.f32 %v1556_v16, %v1231_v40  ;;  %5203 = vmatpush3.bf16.msra.mxu1 %v5202_v56  ;;  %v1247_v26 = vadd.f32 %v1183_v29, %v858_v39  ;;  %v780_v40 = vmul.f32 %v6435_v22, %v10149_v24  ;;  %v10150_v16 = vld [vmem:[#allocation19_spill] sm:$0xff]  ;;  %v1202_v55 = vmul.f32 %v6484_v0, %v10151_v38 }
 0x1e3   :  { %v1490_v58 = vpop.permute.xlu0 %1489  ;;  %5489 = vset.pattern.permute.xlu1 %v10148_v53  ;;  %v877_v7 = vadd.f32 %v813_v6, %v10152_v10  ;;  %v6795_v27 = vadd.f32 %v1573_v20, %v1248_v48  ;;  %v1201_v39 = vmul.f32 %v6484_v0, %v10154_v61  ;;  %v1215_v29 = vadd.f32 %v1151_v21, %v826_v42  ;;  %v10160_v20 = vld [vmem:[#allocation21_spill] sm:$0xff]  ;;  %v10161_v42 = vld [vmem:[#allocation8_spill] sm:$0xff] }
 0x1e4   :  { %v1589_v44 = vmul.f32 %v6530_v30, %v1490_v58  ;;  %996 = vperm.xlu1 %5489, %v10150_v16   ;;  %v1494_v56 = vpop.permute.xlu1 %1493  ;;  %v5172_v62 = vpack.c.bf16 %v6771_v12, %v6775_v14  ;;  %v6799_v17 = vadd.f32 %v1588_v1, %v1263_v35  ;;  %v10156_v58 = vld [vmem:[#allocation122_spill] sm:$0xff]  ;;  %v1169_v37 = vmul.f32 %v6484_v0, %v10158_v13 }
 0x1e5   :  { %10153 = vst [vmem:[#allocation51_spill] sm:$0xff] %v6795_v27  ;;  %v1540_v24 = vmul.f32 %v6530_v30, %v10156_v58  ;;  %v876_v38 = vadd.f32 %v812_v57, %v487_v51  ;;  %v6807_v52 = vadd.f32 %v1572_v2, %v1247_v26  ;;  %v1590_v48 = vmul.f32 %v6530_v30, %v1494_v56  ;;  %v10162_v1 = vld [vmem:[#allocation118_spill] sm:$0xff] }
 0x1e6   :  { %10155 = vst [vmem:[#allocation27_spill] sm:$0xff] %v6799_v17  ;;  %v6803_v16 = vadd.f32 %v1589_v44, %v1264_v60  ;;  %5173 = vmatprep.subr.bf16.mxu0 %v5172_v62  ;;  %v844_v10 = vadd.f32 %v780_v40, %v10160_v20  ;;  %v1170_v35 = vmul.f32 %v6484_v0, %v10161_v42  ;;  %v6853_v20 = vld [vmem:[%s9803_s0 + $0xe0] sm:$0xff] }
 0x1e7   :  { %10159 = vst [vmem:[#allocation34_spill] sm:$0xff] %v6807_v52  ;;  %v1298_v6 = vpop.permute.xlu0 %1297  ;;  %v1265_v13 = vadd.f32 %v1201_v39, %v876_v38  ;;  %v1266_v51 = vadd.f32 %v1202_v55, %v877_v7  ;;  %v5206_v2 = vpack.c.bf16 %v6795_v27, %v6807_v52  ;;  %v845_v26 = vadd.f32 %v6688_v63, %v456_v4  ;;  %v5514_v63 = vld [vmem:[%s9803_s0 + $0x50] sm:$0xff]  ;;  %v6861_v42 = vld [vmem:[%s9803_s0 + $0x1e0] sm:$0xff] }
 0x1e8   :  { %10157 = vst [vmem:[#allocation31_spill] sm:$0xff] %v6803_v16  ;;  %v1541_v21 = vmul.f32 %v6530_v30, %v1298_v6  ;;  %1120 = vperm.xlu1 %5489, %v10162_v1   ;;  %v1498_v60 = vpop.permute.xlu1 %1497  ;;  %v5204_v44 = vpack.c.bf16 %v6803_v16, %v6799_v17  ;;  %v6821_v40 = vadd.f32 %v1540_v24, %v1215_v29  ;;  %v10167_v6 = vmov 0  }
 0x1e9   :  { %v1591_v57 = vmul.f32 %v6530_v30, %v1498_v60  ;;  %v1558_v56 = vmul.f32 %v6530_v30, %v1366_v46  ;;  %v6826_v61 = vadd.f32 %v1590_v48, %v1265_v13  ;;  %v1234_v55 = vadd.f32 %v1170_v35, %v845_v26  ;;  %v6871_v13 = vld [vmem:[%s9803_s0 + $0x1e8] sm:$0xff] }
 0x1ea   :  { %v6824_v62 = vadd.f32 %v1541_v21, %v1216_v31  ;;  %5205 = vmatprep.subr.bf16.mxu1 %v5204_v44  ;;  %v1233_v7 = vadd.f32 %v1169_v37, %v844_v10  ;;  %v10168_v21 = vld [vmem:[#allocation117_spill] sm:$0xff] }
 0x1eb   :  { %10163 = vst [vmem:[#allocation49_spill] sm:$0xff] %v6826_v61  ;;  %v6828_v58 = vadd.f32 %v1591_v57, %v1266_v51  ;;  %v1370_v39 = vpop.permute.xlu0 %1369  ;;  %5207 = vmatpush3.bf16.msra.mxu1 %v5206_v2  ;;  %v765_v60 = vmul.f32 %v6435_v22, %v10168_v21  ;;  %v10169_v51 = vld [vmem:[#allocation26_spill] sm:$0xff]  ;;  %v10170_v2 = vld [vmem:[#allocation68_spill] sm:$0xff] }
 0x1ec   :  { %v1559_v38 = vmul.f32 %v6530_v30, %v1370_v39  ;;  %928 = vperm.xlu1 %5489, %v5514_v63   ;;  %v5174_v46 = vpack.c.bf16 %v6824_v62, %v6821_v40  ;;  %v6840_v29 = vadd.f32 %v1558_v56, %v1233_v7  ;;  %v440_v57 = vmul.f32 %v6443_v23, %v10169_v51  ;;  %v10171_v56 = vld [vmem:[#allocation110_spill] sm:$0xff] }
 0x1ed   :  { %10164 = vst [vmem:[#allocation50_spill] sm:$0xff] %v6828_v58  ;;  %v6836_v31 = vpop.permute.xlu1 %156  ;;  %v5208_v4 = vpack.c.bf16 %v6828_v58, %v6826_v61  ;;  %v764_v26 = vmul.f32 %v6435_v22, %v10170_v2  ;;  %v439_v39 = vmul.f32 %v6443_v23, %v10171_v56  ;;  %v10172_v7 = vld [vmem:[#allocation70_spill] sm:$0xff]  ;;  %v10176_v61 = vld [vmem:[#allocation120_spill] sm:$0xff] }
 0x1ee   :  { %10165 = vst [vmem:[#allocation42_spill] sm:$0xff] %v6840_v29  ;;  %v6842_v24 = vadd.f32 %v1559_v38, %v1234_v55  ;;  %5175 = vmatpush3.bf16.msra.mxu0 %v5174_v46  ;;  %v797_v38 = vmul.f32 %v6435_v22, %v10172_v7  ;;  %v10173_v63 = vld [vmem:[#allocation114_spill] sm:$0xff]  ;;  %v829_v21 = vadd.f32 %v765_v60, %v440_v57  ;;  %v6897_v7 = vld [vmem:[%s9803_s0 + $0xe8] sm:$0xff]  ;;  %v10178_v57 = vld [vmem:[#allocation112_spill] sm:$0xff] }
 0x1ef   :  { %5209 = vmatprep.subr.bf16.mxu1 %v5208_v4  ;;  %v1302_v44 = vpop.permute.xlu0 %1301  ;;  %v472_v46 = vmul.f32 %v6443_v23, %v10173_v63  ;;  %v10174_v4 = vld [vmem:[#allocation103_spill] sm:$0xff]  ;;  %v10175_v58 = vld [vmem:[#allocation14_spill] sm:$0xff]  ;;  %v828_v2 = vadd.f32 %v764_v26, %v439_v39  ;;  %v796_v56 = vmul.f32 %v6435_v22, %v10176_v61  ;;  %v10177_v63 = vld [vmem:[#allocation105_spill] sm:$0xff] }
 0x1f0   :  { %10166 = vst [vmem:[#allocation52_spill] sm:$0xff] %v6842_v24  ;;  %1056 = vperm.xlu1 %5489, %v6561_v36   ;;  %v5176_v37 = vpack.c.bf16 %v6842_v24, %v6840_v29  ;;  %v1153_v51 = vmul.f32 %v6484_v0, %v10175_v58  ;;  %v1542_v16 = vmul.f32 %v6530_v30, %v1302_v44  ;;  %v10179_v61 = vld [vmem:[#allocation17_spill] sm:$0xff] }
 0x1f1   :  { %v6847_v48 = vpop.permute.xlu1 %311  ;;  %v1186_v60 = vmul.f32 %v6484_v0, %v10177_v63  ;;  %v471_v58 = vmul.f32 %v6443_v23, %v10178_v57  ;;  %v1185_v44 = vmul.f32 %v6484_v0, %v10179_v61  ;;  %v10182_v57 = vld [vmem:[#allocation74_spill] sm:$0xff] }
 0x1f2   :  { %5177 = vmatprep.subr.bf16.mxu0 %v5176_v37  ;;  %v1154_v37 = vmul.f32 %v6484_v0, %v10174_v4  ;;  %v861_v4 = vadd.f32 %v797_v38, %v472_v46  ;;  %v1217_v17 = vadd.f32 %v1153_v51, %v828_v2 }
 0x1f3   :  { %v1434_v26 = vpop.permute.xlu0 %1433  ;;  %v860_v52 = vadd.f32 %v796_v56, %v471_v58  ;;  %v5520_v56 = vld [vmem:[%s9803_s0 + $0x68] sm:$0xff] }
 0x1f4   :  { %5490 = vset.pattern.permute.xlu1 %v10167_v6  ;;  %v1218_v47 = vadd.f32 %v1154_v37, %v829_v21  ;;  %v6907_v5 = vadd.f32 %v1542_v16, %v1217_v17  ;;  %v1575_v49 = vmul.f32 %v6530_v30, %v1434_v26  ;;  %v1250_v46 = vadd.f32 %v1186_v60, %v861_v4 }
 0x1f5   :  { %251 = vperm.xlu1 %5490, %v6853_v20   ;;  %v1249_v38 = vadd.f32 %v1185_v44, %v860_v52  ;;  %v5523_v44 = vld [vmem:[%s9803_s0 + $0x58] sm:$0xff] }
 0x1f6   :  { %v6856_v10 = vpop.permute.xlu1 %531  ;;  %v6916_v37 = vadd.f32 %v1575_v49, %v1250_v46  ;;  %v5519_v49 = vld [vmem:[%s9803_s0 + $0x1d8] sm:$0xff] }
 0x1f8   :  { %10180 = vst [vmem:[#allocation45_spill] sm:$0xff] %v6916_v37 }
 0x1f9   :  { %411 = vperm.xlu1 %5490, %v6861_v42  }
 0x1fa   :  { %v6864_v35 = vpop.permute.xlu1 %659 }
 0x1fd   :  { %416 = vperm.xlu1 %5490, %v6871_v13  }
 0x1fe   :  { %v6880_v55 = vpop.permute.xlu1 %663 }
 0x201   :  { %5491 = vset.pattern.permute.xlu1 %v9960_v32 }
 0x202   :  { %615 = vperm.xlu1 %5491, %v6897_v7  }
 0x203   :  { %v1306_v39 = vpop.permute.xlu1 %1305 }
 0x204   :  { %v1543_v27 = vmul.f32 %v6530_v30, %v1306_v39  ;;  %v6954_v39 = vld [vmem:[%s9803_s0 + $0x168] sm:$0xff] }
 0x206   :  { %v6910_v45 = vadd.f32 %v1543_v27, %v1218_v47  ;;  %739 = vperm.xlu1 %5491, %v6861_v42   ;;  %v5518_v47 = vld [vmem:[%s9803_s0 + $0xd0] sm:$0xff] }
 0x207   :  { %v1430_v63 = vpop.permute.xlu1 %1429 }
 0x208   :  { %v1574_v51 = vmul.f32 %v6530_v30, %v1430_v63  ;;  %v5178_v2 = vpack.c.bf16 %v6910_v45, %v6907_v5 }
 0x20a   :  { %v6918_v21 = vadd.f32 %v1574_v51, %v1249_v38  ;;  %5492 = vset.pattern.permute.xlu1 %v9969_v43  ;;  %5179 = vmatpush3.bf16.msra.mxu0 %v5178_v2  ;;  %v10183_v38 = vld [vmem:[#allocation71_spill] sm:$0xff]  ;;  %v457_v51 = vmul.f32 %v6443_v23, %v6604_v25  ;;  %v783_v2 = vmul.f32 %v6435_v22, %v6705_v28 }
 0x20b   :  { %1381 = vperm.xlu1 %5492, %v5518_v47   ;;  %v782_v46 = vmul.f32 %v6435_v22, %v10183_v38  ;;  %v10184_v47 = vld [vmem:[#allocation28_spill] sm:$0xff]  ;;  %v10186_v38 = vld [vmem:[#allocation107_spill] sm:$0xff]  ;;  %v490_v28 = vmul.f32 %v6443_v23, %v6663_v33 }
 0x20c   :  { %10181 = vst [vmem:[#allocation47_spill] sm:$0xff] %v6918_v21  ;;  %v985_v27 = vpop.permute.xlu1 %984  ;;  %v5210_v52 = vpack.c.bf16 %v6916_v37, %v6918_v21  ;;  %v1374_v21 = vpop.permute.xlu0 %1373  ;;  %v1172_v54 = vmul.f32 %v6484_v0, %v10186_v38 }
 0x20d   :  { %v846_v25 = vadd.f32 %v782_v46, %v457_v51 }
 0x20e   :  { %5211 = vmatpush3.bf16.msra.mxu1 %v5210_v52  ;;  %v458_v52 = vmul.f32 %v6443_v23, %v10184_v47  ;;  %v814_v47 = vmul.f32 %v6435_v22, %v6737_v3 }
 0x20f   :  { %1509 = vperm.xlu1 %5492, %v10162_v1   ;;  %v6943_v1 = vld [vmem:[%s9803_s0 + $0x60] sm:$0xff] }
 0x210   :  { %v1113_v17 = vpop.permute.xlu1 %1112  ;;  %v847_v24 = vadd.f32 %v783_v2, %v458_v52  ;;  %v1506_v12 = vpop.permute.xlu0 %1505 }
 0x211   :  { %v1203_v33 = vmul.f32 %v6484_v0, %v1113_v17 }
 0x212   :  { %v1236_v2 = vadd.f32 %v1172_v54, %v847_v24 }
 0x213   :  { %1513 = vperm.xlu1 %5492, %v5519_v49   ;;  %v1171_v49 = vmul.f32 %v6484_v0, %v985_v27 }
 0x214   :  { %v1117_v16 = vpop.permute.xlu1 %1116 }
 0x215   :  { %v1235_v27 = vadd.f32 %v1171_v49, %v846_v25  ;;  %v1204_v29 = vmul.f32 %v6484_v0, %v1117_v16  ;;  %v1593_v16 = vmul.f32 %v6530_v30, %v1506_v12 }
 0x217   :  { %5493 = vset.pattern.permute.xlu1 %v10167_v6 }
 0x218   :  { %176 = vperm.xlu1 %5493, %v5520_v56   ;;  %v6934_v60 = vpop.permute.xlu1 %924 }
 0x21c   :  { %331 = vperm.xlu1 %5493, %v10182_v57   ;;  %v6937_v58 = vpop.permute.xlu1 %1052 }
 0x220   :  { %5494 = vset.pattern.permute.xlu1 %v9960_v32 }
 0x221   :  { %547 = vperm.xlu1 %5494, %v6943_v1   ;;  %v6946_v4 = vpop.permute.xlu1 %246 }
 0x225   :  { %675 = vperm.xlu1 %5494, %v10182_v57   ;;  %v6949_v26 = vpop.permute.xlu1 %401 }
 0x229   :  { %679 = vperm.xlu1 %5494, %v6954_v39  }
 0x22a   :  { %v6957_v61 = vpop.permute.xlu1 %603 }
 0x22d   :  { %5495 = vset.pattern.permute.xlu1 %v9969_v43 }
 0x22e   :  { %1321 = vperm.xlu1 %5495, %v5523_v44   ;;  %v6963_v63 = vpop.permute.xlu1 %731  ;;  %v10185_v44 = vld [vmem:[#allocation72_spill] sm:$0xff] }
 0x22f   :  { %v815_v37 = vmul.f32 %v6435_v22, %v10185_v44  ;;  %v489_v44 = vmul.f32 %v6443_v23, %v6633_v15 }
 0x231   :  { %v879_v51 = vadd.f32 %v815_v37, %v490_v28  ;;  %v878_v52 = vadd.f32 %v814_v47, %v489_v44  ;;  %v7020_v47 = vld [vmem:[%s9803_s0 + $0xf8] sm:$0xff]  ;;  %v442_v44 = vmul.f32 %v6443_v23, %v6836_v31 }
 0x232   :  { %1445 = vperm.xlu1 %5495, %v6561_v36   ;;  %v6975_v57 = vpop.permute.xlu1 %735  ;;  %v1560_v36 = vmul.f32 %v6530_v30, %v1374_v21 }
 0x233   :  { %v1268_v21 = vadd.f32 %v1204_v29, %v879_v51  ;;  %v1267_v25 = vadd.f32 %v1203_v33, %v878_v52  ;;  %v10192_v51 = vld [vmem:[#allocation30_spill] sm:$0xff]  ;;  %v1314_v52 = vpop.permute.xlu0 %1313 }
 0x234   :  { %v6993_v49 = vadd.f32 %v1560_v36, %v1235_v27  ;;  %v10191_v27 = vld [vmem:[#allocation73_spill] sm:$0xff]  ;;  %v441_v33 = vmul.f32 %v6443_v23, %v10192_v51 }
 0x235   :  { %v7002_v54 = vadd.f32 %v1593_v16, %v1268_v21  ;;  %v767_v36 = vmul.f32 %v6435_v22, %v10191_v27  ;;  %v10193_v21 = vld [vmem:[#allocation109_spill] sm:$0xff] }
 0x236   :  { %5496 = vset.pattern.permute.xlu1 %v10148_v53  ;;  %10187 = vst [vmem:[#allocation53_spill] sm:$0xff] %v6993_v49  ;;  %v1155_v16 = vmul.f32 %v6484_v0, %v10193_v21 }
 0x237   :  { %1000 = vperm.xlu1 %5496, %v6853_v20   ;;  %v1378_v46 = vpop.permute.xlu1 %1377  ;;  %10189 = vst [vmem:[#allocation55_spill] sm:$0xff] %v7002_v54 }
 0x238   :  { %v1561_v3 = vmul.f32 %v6530_v30, %v1378_v46  ;;  %v766_v46 = vmul.f32 %v6435_v22, %v6856_v10  ;;  %v1545_v10 = vmul.f32 %v6530_v30, %v1314_v52 }
 0x23a   :  { %v6996_v38 = vadd.f32 %v1561_v3, %v1236_v2  ;;  %v1156_v2 = vmul.f32 %v6484_v0, %v6934_v60 }
 0x23b   :  { %1128 = vperm.xlu1 %5496, %v6861_v42   ;;  %v1502_v15 = vpop.permute.xlu1 %1501 }
 0x23c   :  { %10188 = vst [vmem:[#allocation48_spill] sm:$0xff] %v6996_v38  ;;  %v1592_v20 = vmul.f32 %v6530_v30, %v1502_v15  ;;  %v5180_v37 = vpack.c.bf16 %v6996_v38, %v6993_v49  ;;  %v831_v15 = vadd.f32 %v767_v36, %v442_v44  ;;  %v473_v36 = vmul.f32 %v6443_v23, %v6847_v48 }
 0x23d   :  { %v799_v44 = vmul.f32 %v6435_v22, %v6880_v55  ;;  %v1188_v48 = vmul.f32 %v6484_v0, %v6937_v58 }
 0x23e   :  { %v7004_v24 = vadd.f32 %v1592_v20, %v1267_v25  ;;  %5181 = vmatprep.subr.bf16.mxu0 %v5180_v37  ;;  %v830_v25 = vadd.f32 %v766_v46, %v441_v33  ;;  %v1220_v31 = vadd.f32 %v1156_v2, %v831_v15  ;;  %v7050_v20 = vld [vmem:[%s9803_s0 + $0xf0] sm:$0xff]  ;;  %v798_v37 = vmul.f32 %v6435_v22, %v6864_v35  ;;  %v10194_v33 = vld [vmem:[#allocation32_spill] sm:$0xff]  ;;  %v10195_v35 = vld [vmem:[#allocation111_spill] sm:$0xff] }
 0x23f   :  { %1132 = vperm.xlu1 %5496, %v6871_v13   ;;  %v474_v2 = vmul.f32 %v6443_v23, %v10194_v33  ;;  %v1187_v21 = vmul.f32 %v6484_v0, %v10195_v35  ;;  %v7114_v35 = vld [vmem:[%s9803_s0 + $0x78] sm:$0xff] }
 0x240   :  { %10190 = vst [vmem:[#allocation54_spill] sm:$0xff] %v7004_v24  ;;  %v7007_v29 = vpop.permute.xlu1 %161  ;;  %v5212_v12 = vpack.c.bf16 %v7002_v54, %v7004_v24  ;;  %v7060_v46 = vadd.f32 %v1545_v10, %v1220_v31  ;;  %v7077_v31 = vld [vmem:[%s9803_s0 + $0x1f8] sm:$0xff] }
 0x241   :  { %v863_v15 = vadd.f32 %v799_v44, %v474_v2  ;;  %v7094_v2 = vld [vmem:[%s9803_s0 + $0x70] sm:$0xff] }
 0x242   :  { %5213 = vmatprep.subr.bf16.mxu1 %v5212_v12  ;;  %v1219_v12 = vadd.f32 %v1155_v16, %v830_v25  ;;  %v862_v16 = vadd.f32 %v798_v37, %v473_v36 }
 0x243   :  { %940 = vperm.xlu1 %5496, %v5520_v56   ;;  %v7028_v56 = vld [vmem:[%s9803_s0 + $0x1f0] sm:$0xff] }
 0x244   :  { %v7011_v17 = vpop.permute.xlu1 %321  ;;  %v1251_v37 = vadd.f32 %v1187_v21, %v862_v16 }
 0x247   :  { %1068 = vperm.xlu1 %5496, %v6954_v39  }
 0x248   :  { %v7014_v28 = vpop.permute.xlu1 %326 }
 0x24b   :  { %5497 = vset.pattern.permute.xlu1 %v10167_v6 }
 0x24c   :  { %266 = vperm.xlu1 %5497, %v7020_v47  }
 0x24d   :  { %v7023_v13 = vpop.permute.xlu1 %543 }
 0x250   :  { %421 = vperm.xlu1 %5497, %v7028_v56  }
 0x251   :  { %v7041_v3 = vpop.permute.xlu1 %667 }
 0x254   :  { %5498 = vset.pattern.permute.xlu1 %v9960_v32 }
 0x255   :  { %619 = vperm.xlu1 %5498, %v7050_v20  }
 0x256   :  { %v1310_v60 = vpop.permute.xlu1 %1309 }
 0x257   :  { %v1544_v27 = vmul.f32 %v6530_v30, %v1310_v60  ;;  %v1252_v60 = vadd.f32 %v1188_v48, %v863_v15 }
 0x259   :  { %v7062_v51 = vadd.f32 %v1544_v27, %v1219_v12  ;;  %747 = vperm.xlu1 %5498, %v7028_v56  }
 0x25a   :  { %v1438_v52 = vpop.permute.xlu1 %1437 }
 0x25b   :  { %v5182_v55 = vpack.c.bf16 %v7060_v46, %v7062_v51  ;;  %v1576_v25 = vmul.f32 %v6530_v30, %v1438_v52 }
 0x25d   :  { %751 = vperm.xlu1 %5498, %v7077_v31   ;;  %5183 = vmatpush3.bf16.msra.mxu0 %v5182_v55  ;;  %v7081_v58 = vadd.f32 %v1576_v25, %v1251_v37  ;;  %v10198_v55 = vld [vmem:[#allocation39_spill] sm:$0xff]  ;;  %v460_v25 = vmul.f32 %v6443_v23, %v6946_v4 }
 0x25e   :  { %v1442_v10 = vpop.permute.xlu1 %1441 }
 0x25f   :  { %v1577_v12 = vmul.f32 %v6530_v30, %v1442_v10  ;;  %10196 = vst [vmem:[#allocation57_spill] sm:$0xff] %v7081_v58  ;;  %v784_v10 = vmul.f32 %v6435_v22, %v6957_v61 }
 0x261   :  { %v7083_v27 = vadd.f32 %v1577_v12, %v1252_v60  ;;  %5499 = vset.pattern.permute.xlu1 %v9969_v43  ;;  %v10199_v60 = vld [vmem:[#allocation121_spill] sm:$0xff] }
 0x262   :  { %1393 = vperm.xlu1 %5499, %v6897_v7   ;;  %v1176_v37 = vmul.f32 %v6484_v0, %v10199_v60 }
 0x263   :  { %10197 = vst [vmem:[#allocation62_spill] sm:$0xff] %v7083_v27  ;;  %v997_v36 = vpop.permute.xlu1 %996  ;;  %v5214_v44 = vpack.c.bf16 %v7083_v27, %v7081_v58 }
 0x265   :  { %5215 = vmatpush3.bf16.msra.mxu1 %v5214_v44  ;;  %v10200_v44 = vld [vmem:[#allocation33_spill] sm:$0xff] }
 0x266   :  { %1517 = vperm.xlu1 %5499, %v6861_v42   ;;  %v7105_v42 = vld [vmem:[%s9803_s0 + $0x178] sm:$0xff]  ;;  %v459_v54 = vmul.f32 %v6443_v23, %v10200_v44 }
 0x267   :  { %v1121_v33 = vpop.permute.xlu1 %1120 }
 0x268   :  { %v848_v58 = vadd.f32 %v784_v10, %v459_v54  ;;  %v816_v54 = vmul.f32 %v6435_v22, %v6963_v63 }
 0x26a   :  { %5500 = vset.pattern.permute.xlu1 %v10167_v6 }
 0x26b   :  { %181 = vperm.xlu1 %5500, %v7094_v2   ;;  %v7097_v52 = vpop.permute.xlu1 %928 }
 0x26f   :  { %341 = vperm.xlu1 %5500, %v6670_v9   ;;  %v7100_v7 = vpop.permute.xlu1 %1056 }
 0x273   :  { %346 = vperm.xlu1 %5500, %v7105_v42  }
 0x274   :  { %v7108_v6 = vpop.permute.xlu1 %251 }
 0x277   :  { %5502 = vset.pattern.permute.xlu1 %v9960_v32  ;;  %v462_v32 = vmul.f32 %v6443_v23, %v10198_v55  ;;  %v1174_v55 = vmul.f32 %v6484_v0, %v997_v36 }
 0x278   :  { %559 = vperm.xlu1 %5502, %v7114_v35   ;;  %v412_v21 = vpop.permute.xlu1 %411 }
 0x279   :  { %v493_v61 = vmul.f32 %v6443_v23, %v412_v21  ;;  %v817_v21 = vmul.f32 %v6435_v22, %v6975_v57 }
 0x27c   :  { %683 = vperm.xlu1 %5502, %v6670_v9   ;;  %v7118_v16 = vpop.permute.xlu1 %416 }
 0x280   :  { %5504 = vset.pattern.permute.xlu1 %v9969_v43 }
 0x281   :  { %1325 = vperm.xlu1 %5504, %v6943_v1   ;;  %v616_v48 = vpop.permute.xlu1 %615  ;;  %v10201_v1 = vld [vmem:[#allocation75_spill] sm:$0xff] }
 0x282   :  { %v787_v15 = vmul.f32 %v6435_v22, %v616_v48  ;;  %v785_v24 = vmul.f32 %v6435_v22, %v10201_v1  ;;  %v5530_v48 = vld [vmem:[%s9803_s0 + $0x160] sm:$0xff]  ;;  %v1386_v1 = vpop.permute.xlu0 %1385 }
 0x283   :  { %v1563_v36 = vmul.f32 %v6530_v30, %v1386_v1 }
 0x284   :  { %v851_v12 = vadd.f32 %v787_v15, %v462_v32  ;;  %v10202_v32 = vld [vmem:[#allocation113_spill] sm:$0xff]  ;;  %v849_v44 = vadd.f32 %v785_v24, %v460_v25 }
 0x285   :  { %1453 = vperm.xlu1 %5504, %v5530_v48   ;;  %v740_v4 = vpop.permute.xlu1 %739  ;;  %v1173_v15 = vmul.f32 %v6484_v0, %v10202_v32 }
 0x286   :  { %v818_v27 = vmul.f32 %v6435_v22, %v740_v4  ;;  %v7141_v60 = vadd.f32 %v1176_v37, %v851_v12  ;;  %v1238_v49 = vadd.f32 %v1174_v55, %v849_v44  ;;  %v10203_v12 = vld [vmem:[#allocation35_spill] sm:$0xff]  ;;  %v1205_v55 = vmul.f32 %v6484_v0, %v1121_v33 }
 0x287   :  { %v1237_v4 = vadd.f32 %v1173_v15, %v848_v58  ;;  %v492_v32 = vmul.f32 %v6443_v23, %v10203_v12  ;;  %v491_v58 = vmul.f32 %v6443_v23, %v6949_v26 }
 0x288   :  { %v7145_v38 = vadd.f32 %v818_v27, %v493_v61  ;;  %v7156_v24 = vadd.f32 %v1563_v36, %v1238_v49 }
 0x289   :  { %1457 = vperm.xlu1 %5504, %v6954_v39   ;;  %v10204_v39 = vld [vmem:[#allocation115_spill] sm:$0xff]  ;;  %v881_v10 = vadd.f32 %v817_v21, %v492_v32  ;;  %v880_v63 = vadd.f32 %v816_v54, %v491_v58 }
 0x28a   :  { %v1382_v48 = vpop.permute.xlu1 %1381  ;;  %v1206_v25 = vmul.f32 %v6484_v0, %v10204_v39 }
 0x28b   :  { %v1562_v37 = vmul.f32 %v6530_v30, %v1382_v48  ;;  %v1269_v61 = vadd.f32 %v1205_v55, %v880_v63  ;;  %v7187_v48 = vld [vmem:[%s9804_s1] ss:$0 sm:$0xff] }
 0x28c   :  { %v1270_v15 = vadd.f32 %v1206_v25, %v881_v10  ;;  %v443_v25 = vmul.f32 %v7187_v48, %v7007_v29  ;;  %v10207_v10 = vld [vmem:[#allocation125_spill] sm:$0xff]  ;;  %v7220_v29 = vld [vmem:[%s9804_s1 + $0x2] ss:$0 sm:$0xff] }
 0x28d   :  { %v7158_v27 = vadd.f32 %v1562_v37, %v1237_v4  ;;  %5505 = vset.pattern.permute.xlu1 %v10148_v53  ;;  %v7194_v4 = vld [vmem:[%s9804_s1 + $0x1] ss:$0 sm:$0xff]  ;;  %v10206_v37 = vld [vmem:[#allocation123_spill] sm:$0xff]  ;;  %v1191_v55 = vmul.f32 %v6484_v0, %v10207_v10 }
 0x28e   :  { %1012 = vperm.xlu1 %5505, %v7020_v47   ;;  %v1510_v57 = vpop.permute.xlu1 %1509  ;;  %v769_v58 = vmul.f32 %v7194_v4, %v7023_v13 }
 0x28f   :  { %v5184_v22 = vpack.c.bf16 %v7156_v24, %v7158_v27  ;;  %v1594_v49 = vmul.f32 %v6530_v30, %v1510_v57  ;;  %v1318_v57 = vpop.permute.xlu0 %1317 }
 0x291   :  { %5185 = vmatprep.subr.bf16.mxu0 %v5184_v22  ;;  %v7172_v44 = vadd.f32 %v1594_v49, %v1269_v61  ;;  %v10209_v49 = vld [vmem:[#allocation76_spill] sm:$0xff]  ;;  %v476_v61 = vmul.f32 %v7187_v48, %v7014_v28 }
 0x292   :  { %1136 = vperm.xlu1 %5505, %v7028_v56   ;;  %v1514_v53 = vpop.permute.xlu1 %1513 }
 0x293   :  { %v1595_v47 = vmul.f32 %v6530_v30, %v1514_v53  ;;  %v768_v53 = vmul.f32 %v7194_v4, %v10209_v49 }
 0x295   :  { %v7174_v23 = vadd.f32 %v1595_v47, %v1270_v15  ;;  %v10210_v15 = vld [vmem:[#allocation77_spill] sm:$0xff] }
 0x296   :  { %944 = vperm.xlu1 %5505, %v7094_v2   ;;  %v10205_v2 = vld [vmem:[#allocation40_spill] sm:$0xff]  ;;  %v801_v47 = vmul.f32 %v7194_v4, %v10210_v15 }
 0x297   :  { %v7177_v26 = vpop.permute.xlu1 %176  ;;  %v5216_v33 = vpack.c.bf16 %v7174_v23, %v7172_v44  ;;  %v445_v21 = vmul.f32 %v7187_v48, %v10205_v2  ;;  %v10212_v2 = vld [vmem:[#allocation119_spill] sm:$0xff] }
 0x299   :  { %5217 = vmatprep.subr.bf16.mxu1 %v5216_v33  ;;  %v10211_v33 = vld [vmem:[#allocation116_spill] sm:$0xff] }
 0x29a   :  { %1072 = vperm.xlu1 %5505, %v6670_v9  }
 0x29b   :  { %v332_v1 = vpop.permute.xlu1 %331 }
 0x29c   :  { %v477_v32 = vmul.f32 %v7187_v48, %v332_v1  ;;  %v1158_v1 = vmul.f32 %v7220_v29, %v10211_v33 }
 0x29e   :  { %5507 = vset.pattern.permute.xlu1 %v9969_v43  ;;  %v1159_v43 = vmul.f32 %v6484_v0, %v10206_v37  ;;  %v1157_v0 = vmul.f32 %v7220_v29, %v7097_v52  ;;  %v865_v52 = vadd.f32 %v801_v47, %v476_v61  ;;  %v1450_v37 = vpop.permute.xlu0 %1449  ;;  %v9851_v61 = vmov 1.0  }
 0x29f   :  { %1397 = vperm.xlu1 %5507, %v7050_v20   ;;  %1728 = vmatprep.mubr.f32.mxu0 %v9851_v61 }
 0x2a0   :  { %v548_v36 = vpop.permute.xlu1 %547  ;;  %1798 = vmatprep.mubr.f32.mxu1 %v9851_v61  ;;  %v10225_v61 = vld [vmem:[#allocation12_spill] sm:$0xff] }
 0x2a1   :  { %v770_v9 = vmul.f32 %v7194_v4, %v548_v36  ;;  %v832_v36 = vadd.f32 %v768_v53, %v443_v25 }
 0x2a3   :  { %v834_v20 = vadd.f32 %v770_v9, %v445_v21  ;;  %1525 = vperm.xlu1 %5507, %v7028_v56   ;;  %v10208_v56 = vld [vmem:[#allocation37_spill] sm:$0xff]  ;;  %v1190_v21 = vmul.f32 %v7220_v29, %v10212_v2  ;;  %v1546_v9 = vmul.f32 %v6530_v30, %v1318_v57  ;;  %v10213_v2 = vld [vmem:[#allocation43_spill] sm:$0xff] }
 0x2a4   :  { %v676_v12 = vpop.permute.xlu1 %675  ;;  %v444_v63 = vmul.f32 %v7187_v48, %v10208_v56 }
 0x2a5   :  { %v802_v54 = vmul.f32 %v7194_v4, %v676_v12  ;;  %v7202_v39 = vadd.f32 %v1159_v43, %v834_v20  ;;  %v800_v43 = vmul.f32 %v7194_v4, %v7041_v3  ;;  %v1221_v20 = vadd.f32 %v1157_v0, %v832_v36 }
 0x2a6   :  { %v833_v28 = vadd.f32 %v769_v58, %v444_v63  ;;  %v1254_v3 = vadd.f32 %v1190_v21, %v865_v52  ;;  %v463_v21 = vmul.f32 %v7187_v48, %v10213_v2  ;;  %v10214_v52 = vld [vmem:[#allocation127_spill] sm:$0xff]  ;;  %v10217_v2 = vld [vmem:[#allocation9_spill] sm:$0xff] }
 0x2a7   :  { %v866_v22 = vadd.f32 %v802_v54, %v477_v32  ;;  %1529 = vperm.xlu1 %5507, %v7077_v31   ;;  %v475_v32 = vmul.f32 %v7187_v48, %v7011_v17  ;;  %v1189_v54 = vmul.f32 %v7220_v29, %v7100_v7 }
 0x2a8   :  { %v7224_v13 = vpop.permute.xlu1 %679  ;;  %v1222_v25 = vadd.f32 %v1158_v1, %v833_v28 }
 0x2a9   :  { %v7226_v31 = vadd.f32 %v1191_v55, %v866_v22  ;;  %v864_v10 = vadd.f32 %v800_v43, %v475_v32  ;;  %v7250_v55 = vadd.f32 %v1546_v9, %v1221_v20 }
 0x2ab   :  { %1337 = vperm.xlu1 %5507, %v7114_v35   ;;  %v7246_v35 = vld [vmem:[%s9804_s1 + $0x3] ss:$0 sm:$0xff]  ;;  %v1253_v7 = vadd.f32 %v1189_v54, %v864_v10 }
 0x2ac   :  { %v1579_v57 = vmul.f32 %v7246_v35, %v1450_v37  ;;  %v1177_v37 = vmul.f32 %v7220_v29, %v10214_v52 }
 0x2ad   :  { %v1322_v12 = vpop.permute.xlu1 %1321 }
 0x2ae   :  { %v1547_v58 = vmul.f32 %v6530_v30, %v1322_v12  ;;  %v7257_v63 = vadd.f32 %v1579_v57, %v1254_v3  ;;  %v10215_v57 = vld [vmem:[#allocation78_spill] sm:$0xff] }
 0x2af   :  { %1465 = vperm.xlu1 %5507, %v7105_v42   ;;  %v786_v3 = vmul.f32 %v7194_v4, %v10215_v57 }
 0x2b0   :  { %v7252_v17 = vadd.f32 %v1547_v58, %v1222_v25  ;;  %v461_v25 = vmul.f32 %v7187_v48, %v7108_v6  ;;  %v1210_v6 = vmul.f32 %v7220_v29, %v10217_v2 }
 0x2b1   :  { %v1446_v22 = vpop.permute.xlu1 %1445 }
 0x2b2   :  { %v1578_v56 = vmul.f32 %v7246_v35, %v1446_v22  ;;  %v5186_v30 = vpack.c.bf16 %v7252_v17, %v7250_v55 }
 0x2b4   :  { %v7259_v49 = vadd.f32 %v1578_v56, %v1253_v7  ;;  %5187 = vmatpush3.bf16.msra.mxu0 %v5186_v30  ;;  %v10216_v7 = vld [vmem:[#allocation44_spill] sm:$0xff]  ;;  %v1390_v30 = vpop.permute.xlu0 %1389 }
 0x2b5   :  { %v496_v56 = vmul.f32 %v7187_v48, %v10216_v7 }
 0x2b6   :  { %v1001_v53 = vpop.permute.xlu1 %1000  ;;  %v5218_v42 = vpack.c.bf16 %v7257_v63, %v7259_v49 }
 0x2b7   :  { %v1175_v10 = vmul.f32 %v7220_v29, %v1001_v53  ;;  %v1564_v53 = vmul.f32 %v7246_v35, %v1390_v30 }
 0x2b8   :  { %5219 = vmatpush3.bf16.msra.mxu1 %v5218_v42 }
 0x2ba   :  { %v1129_v0 = vpop.permute.xlu1 %1128 }
 0x2bb   :  { %v1207_v57 = vmul.f32 %v7220_v29, %v1129_v0 }
 0x2be   :  { %v1133_v15 = vpop.permute.xlu1 %1132 }
 0x2c2   :  { %v941_v47 = vpop.permute.xlu1 %940 }
 0x2c6   :  { %v7265_v33 = vpop.permute.xlu1 %1068 }
 0x2cb   :  { %v7267_v1 = vpop.permute.xlu1 %266 }
 0x2cf   :  { %v422_v36 = vpop.permute.xlu1 %421 }
 0x2d0   :  { %v495_v12 = vmul.f32 %v7187_v48, %v422_v36  ;;  %v850_v36 = vadd.f32 %v786_v3, %v461_v25 }
 0x2d4   :  { %v620_v28 = vpop.permute.xlu1 %619 }
 0x2d5   :  { %v788_v9 = vmul.f32 %v7194_v4, %v620_v28  ;;  %v494_v28 = vmul.f32 %v7187_v48, %v7118_v16 }
 0x2d7   :  { %v852_v43 = vadd.f32 %v788_v9, %v463_v21  ;;  %v10218_v9 = vld [vmem:[#allocation79_spill] sm:$0xff] }
 0x2d8   :  { %v748_v20 = vpop.permute.xlu1 %747  ;;  %v819_v52 = vmul.f32 %v7194_v4, %v10218_v9  ;;  %v10219_v9 = vld [vmem:[#allocation80_spill] sm:$0xff] }
 0x2d9   :  { %v820_v32 = vmul.f32 %v7194_v4, %v748_v20  ;;  %v7276_v54 = vadd.f32 %v1177_v37, %v852_v43  ;;  %v1239_v37 = vadd.f32 %v1175_v10, %v850_v36  ;;  %v1208_v43 = vmul.f32 %v7220_v29, %v1133_v15  ;;  %v1522_v20 = vpop.permute.xlu0 %1521 }
 0x2da   :  { %v883_v25 = vadd.f32 %v819_v52, %v494_v28  ;;  %v1597_v7 = vmul.f32 %v7246_v35, %v1522_v20  ;;  %v1271_v15 = vadd.f32 %v1207_v57, %v7145_v38  ;;  %v446_v38 = vmul.f32 %v7187_v48, %v7177_v26 }
 0x2db   :  { %v7280_v58 = vadd.f32 %v820_v32, %v495_v12  ;;  %v7300_v3 = vadd.f32 %v1564_v53, %v1239_v37  ;;  %v771_v52 = vmul.f32 %v7194_v4, %v10219_v9  ;;  %v1160_v37 = vmul.f32 %v7220_v29, %v941_v47 }
 0x2dc   :  { %v752_v22 = vpop.permute.xlu1 %751 }
 0x2dd   :  { %v821_v42 = vmul.f32 %v7194_v4, %v752_v22  ;;  %v1272_v22 = vadd.f32 %v1208_v43, %v883_v25  ;;  %v1330_v43 = vpop.permute.xlu0 %1329  ;;  %v835_v20 = vadd.f32 %v771_v52, %v446_v38 }
 0x2de   :  { %v1549_v25 = vmul.f32 %v7246_v35, %v1330_v43 }
 0x2df   :  { %v885_v21 = vadd.f32 %v821_v42, %v496_v56  ;;  %v7310_v36 = vadd.f32 %v1597_v7, %v1272_v22  ;;  %v803_v22 = vmul.f32 %v7194_v4, %v7224_v13 }
 0x2e1   :  { %v1394_v12 = vpop.permute.xlu1 %1393  ;;  %v7296_v32 = vadd.f32 %v1210_v6, %v885_v21 }
 0x2e2   :  { %v1565_v16 = vmul.f32 %v7246_v35, %v1394_v12  ;;  %v1224_v12 = vadd.f32 %v1160_v37, %v835_v20 }
 0x2e4   :  { %v7304_v10 = vadd.f32 %v1565_v16, %v7141_v60  ;;  %v7327_v7 = vadd.f32 %v1549_v25, %v1224_v12  ;;  %v464_v25 = vmul.f32 %v7187_v48, %v7267_v1 }
 0x2e5   :  { %v1518_v56 = vpop.permute.xlu1 %1517 }
 0x2e6   :  { %v1596_v30 = vmul.f32 %v7246_v35, %v1518_v56  ;;  %v5188_v42 = vpack.c.bf16 %v7304_v10, %v7300_v3 }
 0x2e8   :  { %v7312_v0 = vadd.f32 %v1596_v30, %v1271_v15  ;;  %5189 = vmatprep.subr.bf16.mxu0 %v5188_v42  ;;  %v10220_v15 = vld [vmem:[#allocation41_spill] sm:$0xff]  ;;  %v1192_v30 = vmul.f32 %v7220_v29, %v7265_v33 }
 0x2e9   :  { %v478_v47 = vmul.f32 %v7187_v48, %v10220_v15 }
 0x2ea   :  { %v182_v28 = vpop.permute.xlu1 %181  ;;  %v5220_v2 = vpack.c.bf16 %v7310_v36, %v7312_v0 }
 0x2eb   :  { %v447_v1 = vmul.f32 %v7187_v48, %v182_v28 }
 0x2ec   :  { %5221 = vmatprep.subr.bf16.mxu1 %v5220_v2  ;;  %v867_v2 = vadd.f32 %v803_v22, %v478_v47  ;;  %v1402_v47 = vpop.permute.xlu0 %1401 }
 0x2ee   :  { %v7316_v60 = vpop.permute.xlu1 %341  ;;  %v1256_v9 = vadd.f32 %v1192_v30, %v867_v2 }
 0x2f0   :  { %v1334_v28 = vpop.permute.xlu0 %1333 }
 0x2f2   :  { %v347_v6 = vpop.permute.xlu1 %346 }
 0x2f7   :  { %v560_v21 = vpop.permute.xlu1 %559 }
 0x2fb   :  { %v684_v53 = vpop.permute.xlu1 %683 }
 0x300   :  { %v1326_v57 = vpop.permute.xlu1 %1325 }
 0x301   :  { %v1548_v16 = vmul.f32 %v7246_v35, %v1326_v57  ;;  %v10221_v57 = vld [vmem:[#allocation82_spill] sm:$0xff] }
 0x303   :  { %v7330_v26 = vadd.f32 %v1548_v16, %v7202_v39  ;;  %v789_v16 = vmul.f32 %v7194_v4, %v10221_v57 }
 0x304   :  { %v1454_v56 = vpop.permute.xlu1 %1453 }
 0x305   :  { %v5190_v42 = vpack.c.bf16 %v7327_v7, %v7330_v26  ;;  %v1580_v38 = vmul.f32 %v7246_v35, %v1454_v56 }
 0x307   :  { %5191 = vmatpush3.bf16.msra.mxu0 %v5190_v42  ;;  %v7341_v39 = vadd.f32 %v1580_v38, %v7226_v31  ;;  %v853_v31 = vadd.f32 %v789_v16, %v464_v25  ;;  %v1567_v42 = vmul.f32 %v7246_v35, %v1402_v47  ;;  %v10222_v25 = vld [vmem:[#allocation84_spill] sm:$0xff]  ;;  %v10223_v16 = vld [vmem:[#allocation46_spill] sm:$0xff] }
 0x308   :  { %v1458_v13 = vpop.permute.xlu1 %1457  ;;  %v772_v57 = vmul.f32 %v7194_v4, %v10222_v25  ;;  %v10224_v25 = vld [vmem:[#allocation86_spill] sm:$0xff] }
 0x309   :  { %v1581_v52 = vmul.f32 %v7246_v35, %v1458_v13 }
 0x30b   :  { %v7343_v37 = vadd.f32 %v1581_v52, %v1256_v9  ;;  %v773_v52 = vmul.f32 %v7194_v4, %v560_v21  ;;  %v480_v21 = vmul.f32 %v7187_v48, %v347_v6 }
 0x30d   :  { %v1013_v43 = vpop.permute.xlu1 %1012  ;;  %v5222_v33 = vpack.c.bf16 %v7343_v37, %v7341_v39 }
 0x30e   :  { %v1178_v22 = vmul.f32 %v7220_v29, %v1013_v43 }
 0x30f   :  { %5223 = vmatpush3.bf16.msra.mxu1 %v5222_v33 }
 0x310   :  { %v1242_v15 = vadd.f32 %v1178_v22, %v853_v31  ;;  %v448_v22 = vmul.f32 %v7187_v48, %v10223_v16  ;;  %v805_v16 = vmul.f32 %v7194_v4, %v10224_v25 }
 0x311   :  { %v1137_v20 = vpop.permute.xlu1 %1136 }
 0x312   :  { %v7354_v38 = vadd.f32 %v1567_v42, %v1242_v15  ;;  %v1209_v43 = vmul.f32 %v7220_v29, %v1137_v20  ;;  %v836_v15 = vadd.f32 %v772_v57, %v447_v1  ;;  %v837_v20 = vadd.f32 %v773_v52, %v448_v22 }
 0x313   :  { %v869_v52 = vadd.f32 %v805_v16, %v480_v21 }
 0x314   :  { %v1273_v42 = vadd.f32 %v1209_v43, %v7280_v58  ;;  %v1550_v58 = vmul.f32 %v7246_v35, %v1334_v28 }
 0x315   :  { %v945_v12 = vpop.permute.xlu1 %944 }
 0x316   :  { %v1161_v31 = vmul.f32 %v7220_v29, %v945_v12  ;;  %v1162_v12 = vmul.f32 %v7220_v29, %v10225_v61 }
 0x318   :  { %v1225_v1 = vadd.f32 %v1161_v31, %v836_v15 }
 0x319   :  { %v1073_v56 = vpop.permute.xlu1 %1072 }
 0x31a   :  { %v1193_v6 = vmul.f32 %v7220_v29, %v1073_v56  ;;  %v1614_v31 = vadd.f32 %v1550_v58, %v1225_v1  ;;  %v1805_v58 = vlaneseq }
 0x31e   :  { %v1398_v30 = vpop.permute.xlu1 %1397 }
 0x31f   :  { %v1566_v2 = vmul.f32 %v7246_v35, %v1398_v30  ;;  %v804_v30 = vmul.f32 %v7194_v4, %v684_v53  ;;  %v1226_v4 = vadd.f32 %v1162_v12, %v837_v20 }
 0x321   :  { %v7357_v13 = vadd.f32 %v1566_v2, %v7276_v54 }
 0x322   :  { %v1526_v9 = vpop.permute.xlu1 %1525 }
 0x323   :  { %v5192_v33 = vpack.c.bf16 %v7354_v38, %v7357_v13  ;;  %v1598_v54 = vmul.f32 %v7246_v35, %v1526_v9  ;;  %v479_v9 = vmul.f32 %v7187_v48, %v7316_v60  ;;  %v1462_v48 = vpop.permute.xlu0 %1461  ;;  %v10226_v60 = vld [vmem:[#allocation15_spill] sm:$0xff] }
 0x324   :  { %v1194_v56 = vmul.f32 %v7220_v29, %v10226_v60  ;;  %v1582_v28 = vmul.f32 %v7246_v35, %v1462_v48  ;;  %v10229_v29 = vmov 1.0  }
 0x325   :  { %5193 = vmatprep.subr.bf16.mxu0 %v5192_v33  ;;  %v7381_v33 = vadd.f32 %v1598_v54, %v1273_v42  ;;  %v868_v57 = vadd.f32 %v804_v30, %v479_v9 }
 0x326   :  { %v1530_v47 = vpop.permute.xlu1 %1529  ;;  %v1258_v21 = vadd.f32 %v1194_v56, %v869_v52  ;;  %v1806_v52 = vshrl.u32 %v1805_v58, 7  ;;  %v10254_v58 = vld [vmem:[#allocation34_spill] sm:$0xff] }
 0x327   :  { %v1599_v2 = vmul.f32 %v7246_v35, %v1530_v47  ;;  %v1257_v54 = vadd.f32 %v1193_v6, %v868_v57 }
 0x328   :  { %v7404_v57 = vsub.s32 0, %v1806_v52  ;;  %v10255_v52 = vld [vmem:[#allocation51_spill] sm:$0xff] }
 0x329   :  { %v7384_v53 = vadd.f32 %v1599_v2, %v7296_v32  ;;  %v7394_v30 = vadd.f32 %v1582_v28, %v1257_v54  ;;  %v10242_v28 = vld [vmem:[#allocation52_spill] sm:$0xff] }
 0x32a   :  { %v1338_v43 = vpop.permute.xlu1 %1337  ;;  %10230 = vst [vmem:[#allocation60_spill] sm:$0xff] %v7404_v57 }
 0x32b   :  { %v1551_v22 = vmul.f32 %v7246_v35, %v1338_v43  ;;  %v5224_v61 = vpack.c.bf16 %v7384_v53, %v7381_v33  ;;  %10227 = vst [vmem:[#allocation56_spill] sm:$0xff] %v7394_v30 }
 0x32d   :  { %v1615_v15 = vadd.f32 %v1551_v22, %v1226_v4  ;;  %5225 = vmatprep.subr.bf16.mxu1 %v5224_v61 }
 0x32e   :  { %v1466_v32 = vpop.permute.xlu1 %1465 }
 0x32f   :  { %v1583_v47 = vmul.f32 %v7246_v35, %v1466_v32  ;;  %v5194_v20 = vpack.c.bf16 %v1615_v15, %v1614_v31  ;;  %v10241_v32 = vld [vmem:[#allocation42_spill] sm:$0xff] }
 0x331   :  { %v7396_v42 = vadd.f32 %v1583_v47, %v1258_v21  ;;  %5195 = vmatpush3.bf16.msra.mxu0 %v5194_v20  ;;  %v10243_v21 = vld [vmem:[#allocation53_spill] sm:$0xff]  ;;  %v10244_v47 = vld [vmem:[#allocation48_spill] sm:$0xff] }
 0x333   :  { %10228 = vst [vmem:[#allocation58_spill] sm:$0xff] %v7396_v42  ;;  %v5226_v2 = vpack.c.bf16 %v7396_v42, %v7394_v30 }
 0x334   :  { %1729 = vmatmul.mubr.f32.vlgmr.msra.gmra.mrb[0].mxu0 %v10229_v29 }
 0x335   :  { %5227 = vmatpush3.bf16.msra.mxu1 %v5226_v2  ;;  %2001 = vmatprep.mubr.f32.mxu0 %v10229_v29 }
 0x338   :  { %1799 = vmatmul.mubr.f32.vlgmr.msra.gmra.mrb[0].mxu1 %v10229_v29 }
 0x339   :  { %2071 = vmatprep.mubr.f32.mxu1 %v10229_v29  ;;  %v10264_v29 = vld [vmem:[#allocation38_spill] sm:$0xff] }
 0x407   :  { %v4572_v25 = vpop.f32.mrb[0].mxu0 }
 0x408   :  { %v4573_v35 = vpop.f32.mrb[1].mxu0 }
 0x409   :  { %v4574_v16 = vadd.f32 %v4573_v35, %v4572_v25 }
 0x40b   :  { %v4607_v12 = vpop.f32.mrb[0].mxu1 }
 0x40c   :  { %v4608_v9 = vpop.f32.mrb[1].mxu1 }
 0x40d   :  { %v4609_v1 = vadd.f32 %v4608_v9, %v4607_v12  ;;  %v10247_v12 = vld [vmem:[#allocation25_spill] sm:$0xff] }
 0x40e   :  { %v10249_v9 = vld [vmem:[#allocation29_spill] sm:$0xff] }
 0x40f   :  { %v1801_v6 = vadd.f32 %v4609_v1, %v4574_v16  ;;  %v10251_v1 = vld [vmem:[#allocation23_spill] sm:$0xff] }
 0x411   :  { %v1804_v43 = vmul.f32 0.001953125, %v1801_v6  ;;  %v10253_v6 = vld [vmem:[#allocation24_spill] sm:$0xff] }
 0x413   :  { %v7407_v4 = vrot.slane %v1804_v43, %v7404_v57 }
 0x415   :  { %v7411_v22 = vsub.f32 %v6655_v59, %v7407_v4  ;;  %v7415_v61 = vsub.f32 %v6660_v41, %v7407_v4  ;;  %v7419_v48 = vsub.f32 %v6726_v18, %v7407_v4  ;;  %v7423_v60 = vsub.f32 %v6724_v19, %v7407_v4 }
 0x416   :  { %v7427_v56 = vsub.f32 %v6821_v40, %v7407_v4  ;;  %v7431_v59 = vsub.f32 %v6824_v62, %v7407_v4  ;;  %v7435_v41 = vsub.f32 %v6907_v5, %v7407_v4  ;;  %v7439_v18 = vsub.f32 %v6910_v45, %v7407_v4 }
 0x417   :  { %10231 = vst [vmem:[#allocation59_spill] sm:$0xff] %v7411_v22  ;;  %10232 = vst [vmem:[#allocation61_spill] sm:$0xff] %v7415_v61  ;;  %v7443_v19 = vsub.f32 %v7062_v51, %v7407_v4  ;;  %v7447_v40 = vsub.f32 %v7060_v46, %v7407_v4  ;;  %v7451_v62 = vsub.f32 %v7250_v55, %v7407_v4 }
 0x418   :  { %10233 = vst [vmem:[#allocation65_spill] sm:$0xff] %v7423_v60  ;;  %v7455_v5 = vsub.f32 %v7252_v17, %v7407_v4  ;;  %v7459_v45 = vsub.f32 %v7330_v26, %v7407_v4  ;;  %v7463_v51 = vsub.f32 %v7327_v7, %v7407_v4  ;;  %v7466_v54 = vsub.f32 %v1614_v31, %v7407_v4 }
 0x419   :  { %v7469_v46 = vsub.f32 %v1615_v15, %v7407_v4  ;;  %v7473_v55 = vsub.f32 %v6606_v34, %v7407_v4  ;;  %v7477_v17 = vsub.f32 %v6608_v11, %v7407_v4  ;;  %v7481_v26 = vsub.f32 %v6693_v50, %v7407_v4  ;;  %v10239_v15 = vld [vmem:[#allocation36_spill] sm:$0xff] }
 0x41a   :  { %10234 = vst [vmem:[#allocation67_spill] sm:$0xff] %v7463_v51  ;;  %10235 = vst [vmem:[#allocation69_spill] sm:$0xff] %v7466_v54  ;;  %v7485_v7 = vsub.f32 %v6696_v8, %v7407_v4  ;;  %v7489_v31 = vsub.f32 %v6775_v14, %v7407_v4  ;;  %v7493_v34 = vsub.f32 %v10239_v15, %v7407_v4  ;;  %v10256_v15 = vld [vmem:[#allocation47_spill] sm:$0xff] }
 0x41b   :  { %10236 = vst [vmem:[#allocation64_spill] sm:$0xff] %v7469_v46  ;;  %10237 = vst [vmem:[#allocation66_spill] sm:$0xff] %v7473_v55  ;;  %v7497_v11 = vsub.f32 %v10241_v32, %v7407_v4  ;;  %v7501_v50 = vsub.f32 %v10242_v28, %v7407_v4  ;;  %v7505_v8 = vsub.f32 %v10243_v21, %v7407_v4  ;;  %v10257_v28 = vld [vmem:[#allocation45_spill] sm:$0xff] }
 0x41c   :  { %10238 = vst [vmem:[#allocation81_spill] sm:$0xff] %v7477_v17  ;;  %10240 = vst [vmem:[#allocation83_spill] sm:$0xff] %v7493_v34  ;;  %v7509_v14 = vsub.f32 %v10244_v47, %v7407_v4  ;;  %v7513_v20 = vsub.f32 %v7158_v27, %v7407_v4  ;;  %v7517_v2 = vsub.f32 %v7156_v24, %v7407_v4  ;;  %v10258_v47 = vld [vmem:[#allocation57_spill] sm:$0xff] }
 0x41d   :  { %v7521_v25 = vsub.f32 %v7300_v3, %v7407_v4  ;;  %v7525_v35 = vsub.f32 %v7304_v10, %v7407_v4  ;;  %v7529_v16 = vsub.f32 %v7357_v13, %v7407_v4  ;;  %v7533_v27 = vsub.f32 %v7354_v38, %v7407_v4 }
 0x41e   :  { %v7537_v24 = vsub.f32 %v10247_v12, %v7407_v4  ;;  %v7541_v3 = vsub.f32 %v10249_v9, %v7407_v4  ;;  %v7545_v10 = vsub.f32 %v10251_v1, %v7407_v4  ;;  %v7549_v13 = vsub.f32 %v10253_v6, %v7407_v4  ;;  %v10259_v9 = vld [vmem:[#allocation16_spill] sm:$0xff] }
 0x41f   :  { %10245 = vst [vmem:[#allocation85_spill] sm:$0xff] %v7529_v16  ;;  %10246 = vst [vmem:[#allocation88_spill] sm:$0xff] %v7533_v27  ;;  %v7553_v38 = vsub.f32 %v10254_v58, %v7407_v4  ;;  %v7557_v43 = vsub.f32 %v10255_v52, %v7407_v4  ;;  %v7561_v32 = vsub.f32 %v10256_v15, %v7407_v4  ;;  %v10261_v52 = vld [vmem:[#allocation62_spill] sm:$0xff] }
 0x420   :  { %10248 = vst [vmem:[#allocation87_spill] sm:$0xff] %v7537_v24  ;;  %10250 = vst [vmem:[#allocation89_spill] sm:$0xff] %v7541_v3  ;;  %v7565_v21 = vsub.f32 %v10257_v28, %v7407_v4  ;;  %v7569_v12 = vsub.f32 %v10258_v47, %v7407_v4  ;;  %v7573_v1 = vsub.f32 %v10259_v9, %v7407_v4  ;;  %v10262_v28 = vld [vmem:[#allocation22_spill] sm:$0xff] }
 0x421   :  { %10252 = vst [vmem:[#allocation90_spill] sm:$0xff] %v7545_v10  ;;  %v1889_v6 = vmul.f32 %v7473_v55, %v7473_v55  ;;  %v1890_v58 = vmul.f32 %v7477_v17, %v7477_v17  ;;  %v7581_v15 = vsub.f32 %v10261_v52, %v7407_v4  ;;  %v7585_v57 = vsub.f32 %v10262_v28, %v7407_v4  ;;  %v10266_v17 = vld [vmem:[#allocation20_spill] sm:$0xff] }
 0x422   :  { %10260 = vst [vmem:[#allocation91_spill] sm:$0xff] %v7573_v1  ;;  %v1873_v47 = vmul.f32 %v7411_v22, %v7411_v22  ;;  %v1874_v9 = vmul.f32 %v7415_v61, %v7415_v61  ;;  %v7593_v55 = vsub.f32 %v10264_v29, %v7407_v4  ;;  %v7597_v46 = vsub.f32 %v10266_v17, %v7407_v4  ;;  %v10269_v61 = vld [vmem:[#allocation27_spill] sm:$0xff]  ;;  %v10272_v17 = vld [vmem:[#allocation49_spill] sm:$0xff] }
 0x423   :  { %10263 = vst [vmem:[#allocation63_spill] sm:$0xff] %v7585_v57  ;;  %v1905_v52 = vmul.f32 %v7537_v24, %v7537_v24  ;;  %v1906_v28 = vmul.f32 %v7541_v3, %v7541_v3  ;;  %v7605_v22 = vsub.f32 %v7259_v49, %v7407_v4  ;;  %v7609_v54 = vsub.f32 %v10269_v61, %v7407_v4  ;;  %v10270_v29 = vld [vmem:[#allocation31_spill] sm:$0xff]  ;;  %v10273_v24 = vld [vmem:[#allocation50_spill] sm:$0xff] }
 0x424   :  { %10265 = vst [vmem:[#allocation93_spill] sm:$0xff] %v7593_v55  ;;  %10267 = vst [vmem:[#allocation18_spill] sm:$0xff] %v7597_v46  ;;  %v7613_v42 = vsub.f32 %v10270_v29, %v7407_v4  ;;  %v7617_v30 = vsub.f32 %v10272_v17, %v7407_v4  ;;  %v7621_v27 = vsub.f32 %v10273_v24, %v7407_v4 }
 0x425   :  { %10268 = vst [vmem:[#allocation92_spill] sm:$0xff] %v7605_v22  ;;  %v1875_v49 = vmul.f32 %v7419_v48, %v7419_v48  ;;  %v5228_v3 = vpack.c.bf16 %v1890_v58, %v1889_v6  ;;  %v1921_v61 = vmul.f32 %v7573_v1, %v7573_v1  ;;  %v1876_v16 = vmul.f32 %v7423_v60, %v7423_v60 }
 0x426   :  { %10271 = vst [vmem:[#allocation94_spill] sm:$0xff] %v7613_v42  ;;  %10274 = vst [vmem:[#allocation106_spill] sm:$0xff] %v7621_v27  ;;  %v1922_v29 = vmul.f32 %v7585_v57, %v7585_v57  ;;  %v5230_v22 = vpack.c.bf16 %v1874_v9, %v1873_v47  ;;  %v1891_v17 = vmul.f32 %v7481_v26, %v7481_v26 }
 0x427   :  { %5229 = vmatprep.subr.bf16.mxu0 %v5228_v3  ;;  %v5262_v24 = vpack.c.bf16 %v1906_v28, %v1905_v52  ;;  %v1892_v51 = vmul.f32 %v7485_v7, %v7485_v7  ;;  %v1923_v6 = vmul.f32 %v7593_v55, %v7593_v55  ;;  %v1924_v58 = vmul.f32 %v7597_v46, %v7597_v46 }
 0x428   :  { %v1877_v1 = vmul.f32 %v7427_v56, %v7427_v56  ;;  %v5260_v60 = vpack.c.bf16 %v1922_v29, %v1921_v61  ;;  %5231 = vmatpush3.bf16.msra.mxu0 %v5230_v22  ;;  %v1893_v47 = vmul.f32 %v7489_v31, %v7489_v31  ;;  %v1894_v3 = vmul.f32 %v7493_v34, %v7493_v34 }
 0x429   :  { %v1878_v9 = vmul.f32 %v7431_v59, %v7431_v59  ;;  %v1907_v52 = vmul.f32 %v7545_v10, %v7545_v10  ;;  %v1908_v28 = vmul.f32 %v7549_v13, %v7549_v13  ;;  %v5232_v46 = vpack.c.bf16 %v1892_v51, %v1891_v17  ;;  %v10275_v51 = vld [vmem:[#allocation54_spill] sm:$0xff] }
 0x42a   :  { %5261 = vmatprep.subr.bf16.mxu1 %v5260_v60  ;;  %v5264_v55 = vpack.c.bf16 %v1924_v58, %v1923_v6  ;;  %v5234_v61 = vpack.c.bf16 %v1876_v16, %v1875_v49  ;;  %v1925_v22 = vmul.f32 %v7609_v54, %v7609_v54  ;;  %v1926_v29 = vmul.f32 %v7613_v42, %v7613_v42  ;;  %v10277_v16 = vld [vmem:[#allocation55_spill] sm:$0xff] }
 0x42b   :  { %5263 = vmatpush3.bf16.msra.mxu1 %v5262_v24  ;;  %5233 = vmatprep.subr.bf16.mxu0 %v5232_v46  ;;  %v5236_v57 = vpack.c.bf16 %v1894_v3, %v1893_v47  ;;  %v1895_v34 = vmul.f32 %v7497_v11, %v7497_v11  ;;  %v1896_v10 = vmul.f32 %v7501_v50, %v7501_v50 }
 0x42c   :  { %v7661_v60 = vsub.f32 %v10275_v51, %v7407_v4  ;;  %v7665_v49 = vsub.f32 %v10277_v16, %v7407_v4  ;;  %v1879_v17 = vmul.f32 %v7435_v41, %v7435_v41  ;;  %5265 = vmatprep.subr.bf16.mxu1 %v5264_v55  ;;  %5235 = vmatpush3.bf16.msra.mxu0 %v5234_v61 }
 0x42d   :  { %v1880_v46 = vmul.f32 %v7439_v18, %v7439_v18  ;;  %v1909_v24 = vmul.f32 %v7553_v38, %v7553_v38  ;;  %v1910_v6 = vmul.f32 %v7557_v43, %v7557_v43  ;;  %v5266_v58 = vpack.c.bf16 %v1908_v28, %v1907_v52  ;;  %5237 = vmatprep.subr.bf16.mxu0 %v5236_v57 }
 0x42e   :  { %10276 = vst [vmem:[#allocation10_spill] sm:$0xff] %v7661_v60  ;;  %10278 = vst [vmem:[#allocation97_spill] sm:$0xff] %v7665_v49  ;;  %v5268_v47 = vpack.c.bf16 %v1926_v29, %v1925_v22  ;;  %v5238_v3 = vpack.c.bf16 %v1878_v9, %v1877_v1  ;;  %v1927_v51 = vmul.f32 %v7617_v30, %v7617_v30 }
 0x42f   :  { %v1928_v55 = vmul.f32 %v7621_v27, %v7621_v27  ;;  %v7681_v61 = vsub.f32 %v7257_v63, %v7407_v4  ;;  %5267 = vmatpush3.bf16.msra.mxu1 %v5266_v58  ;;  %v5240_v16 = vpack.c.bf16 %v1896_v10, %v1895_v34  ;;  %v1897_v42 = vmul.f32 %v7505_v8, %v7505_v8  ;;  %v10289_v27 = vld [vmem:[#allocation56_spill] sm:$0xff] }
 0x430   :  { %v1898_v57 = vmul.f32 %v7509_v14, %v7509_v14  ;;  %v7689_v1 = vsub.f32 %v7172_v44, %v7407_v4  ;;  %v7693_v9 = vsub.f32 %v7174_v23, %v7407_v4  ;;  %v1881_v63 = vmul.f32 %v7443_v19, %v7443_v19  ;;  %5269 = vmatprep.subr.bf16.mxu1 %v5268_v47 }
 0x431   :  { %5239 = vmatpush3.bf16.msra.mxu0 %v5238_v3  ;;  %v1882_v34 = vmul.f32 %v7447_v40, %v7447_v40  ;;  %v1911_v10 = vmul.f32 %v7561_v32, %v7561_v32  ;;  %v1912_v52 = vmul.f32 %v7565_v21, %v7565_v21  ;;  %v5270_v44 = vpack.c.bf16 %v1910_v6, %v1909_v24 }
 0x432   :  { %10279 = vst [vmem:[#allocation104_spill] sm:$0xff] %v7689_v1  ;;  %10280 = vst [vmem:[#allocation126_spill] sm:$0xff] %v7693_v9  ;;  %5241 = vmatprep.subr.bf16.mxu0 %v5240_v16  ;;  %v5272_v28 = vpack.c.bf16 %v1928_v55, %v1927_v51  ;;  %v5242_v22 = vpack.c.bf16 %v1880_v46, %v1879_v17  ;;  %v1929_v23 = vmul.f32 %v7661_v60, %v7661_v60 }
 0x433   :  { %v1930_v29 = vmul.f32 %v7665_v49, %v7665_v49  ;;  %v7709_v58 = vsub.f32 %v7341_v39, %v7407_v4  ;;  %5271 = vmatpush3.bf16.msra.mxu1 %v5270_v44  ;;  %v5244_v47 = vpack.c.bf16 %v1898_v57, %v1897_v42  ;;  %v1899_v3 = vmul.f32 %v7513_v20, %v7513_v20  ;;  %v10288_v49 = vld [vmem:[#allocation88_spill] sm:$0xff] }
 0x434   :  { %v1900_v24 = vmul.f32 %v7517_v2, %v7517_v2  ;;  %v7717_v17 = vsub.f32 %v7312_v0, %v7407_v4  ;;  %v7721_v46 = vsub.f32 %v7310_v36, %v7407_v4  ;;  %v1883_v39 = vmul.f32 %v7451_v62, %v7451_v62  ;;  %5273 = vmatprep.subr.bf16.mxu1 %v5272_v28 }
 0x435   :  { %5243 = vmatpush3.bf16.msra.mxu0 %v5242_v22  ;;  %v1884_v42 = vmul.f32 %v7455_v5, %v7455_v5  ;;  %v1913_v6 = vmul.f32 %v7569_v12, %v7569_v12  ;;  %v1914_v51 = vmul.f32 %v7581_v15, %v7581_v15  ;;  %v5274_v0 = vpack.c.bf16 %v1912_v52, %v1911_v10  ;;  %v10285_v52 = vld [vmem:[#allocation67_spill] sm:$0xff] }
 0x436   :  { %10281 = vst [vmem:[#allocation95_spill] sm:$0xff] %v7717_v17  ;;  %10282 = vst [vmem:[#allocation108_spill] sm:$0xff] %v7721_v46  ;;  %5245 = vmatprep.subr.bf16.mxu0 %v5244_v47  ;;  %v5276_v55 = vpack.c.bf16 %v1930_v29, %v1929_v23  ;;  %v5246_v16 = vpack.c.bf16 %v1882_v34, %v1881_v63  ;;  %v1931_v36 = vmul.f32 %v7689_v1, %v7689_v1  ;;  %v10286_v29 = vld [vmem:[#allocation92_spill] sm:$0xff] }
 0x437   :  { %v1932_v57 = vmul.f32 %v7693_v9, %v7693_v9  ;;  %v7737_v44 = vsub.f32 %v7343_v37, %v7407_v4  ;;  %5275 = vmatpush3.bf16.msra.mxu1 %v5274_v0  ;;  %v5248_v28 = vpack.c.bf16 %v1900_v24, %v1899_v3  ;;  %v1901_v22 = vmul.f32 %v7521_v25, %v7521_v25  ;;  %v10287_v9 = vld [vmem:[#allocation85_spill] sm:$0xff] }
 0x438   :  { %v1902_v10 = vmul.f32 %v7525_v35, %v7525_v35  ;;  %v7745_v63 = vsub.f32 %v7381_v33, %v7407_v4  ;;  %v7749_v34 = vsub.f32 %v7384_v53, %v7407_v4  ;;  %v1885_v37 = vmul.f32 %v7459_v45, %v7459_v45  ;;  %5277 = vmatprep.subr.bf16.mxu1 %v5276_v55 }
 0x439   :  { %5247 = vmatpush3.bf16.msra.mxu0 %v5246_v16  ;;  %v1886_v23 = vmul.f32 %v10285_v52, %v10285_v52  ;;  %v1915_v47 = vmul.f32 %v10286_v29, %v10286_v29  ;;  %v1916_v3 = vmul.f32 %v7681_v61, %v7681_v61  ;;  %v5278_v33 = vpack.c.bf16 %v1914_v51, %v1913_v6  ;;  %v10291_v51 = vld [vmem:[#allocation69_spill] sm:$0xff] }
 0x43a   :  { %10283 = vst [vmem:[#allocation96_spill] sm:$0xff] %v7745_v63  ;;  %10284 = vst [vmem:[#allocation98_spill] sm:$0xff] %v7749_v34  ;;  %5249 = vmatprep.subr.bf16.mxu0 %v5248_v28  ;;  %v5280_v24 = vpack.c.bf16 %v1932_v57, %v1931_v36  ;;  %v5250_v0 = vpack.c.bf16 %v1884_v42, %v1883_v39  ;;  %v1933_v53 = vmul.f32 %v7717_v17, %v7717_v17  ;;  %v10290_v39 = vld [vmem:[#allocation58_spill] sm:$0xff]  ;;  %v10292_v57 = vld [vmem:[#allocation64_spill] sm:$0xff] }
 0x43b   :  { %v1934_v55 = vmul.f32 %v7721_v46, %v7721_v46  ;;  %5279 = vmatpush3.bf16.msra.mxu1 %v5278_v33  ;;  %v5252_v16 = vpack.c.bf16 %v1902_v10, %v1901_v22  ;;  %v1903_v1 = vmul.f32 %v10287_v9, %v10287_v9  ;;  %v1904_v60 = vmul.f32 %v10288_v49, %v10288_v49 }
 0x43c   :  { %v7769_v6 = vsub.f32 %v10289_v27, %v7407_v4  ;;  %v7773_v42 = vsub.f32 %v10290_v39, %v7407_v4  ;;  %v1887_v36 = vmul.f32 %v10291_v51, %v10291_v51  ;;  %5281 = vmatprep.subr.bf16.mxu1 %v5280_v24  ;;  %v1888_v28 = vmul.f32 %v10292_v57, %v10292_v57 }
 0x43d   :  { %5251 = vmatpush3.bf16.msra.mxu0 %v5250_v0  ;;  %v1917_v22 = vmul.f32 %v7709_v58, %v7709_v58  ;;  %v1918_v10 = vmul.f32 %v7737_v44, %v7737_v44  ;;  %v5282_v27 = vpack.c.bf16 %v1916_v3, %v1915_v47  ;;  %v5284_v33 = vpack.c.bf16 %v1934_v55, %v1933_v53  ;;  %v2413_v55 = vld [vmem:[%s9805_s2 + $0x18] sm:$0xff] }
 0x43e   :  { %5253 = vmatprep.subr.bf16.mxu0 %v5252_v16  ;;  %v5254_v46 = vpack.c.bf16 %v1886_v23, %v1885_v37  ;;  %v1935_v4 = vmul.f32 %v7745_v63, %v7745_v63  ;;  %v1936_v24 = vmul.f32 %v7749_v34, %v7749_v34  ;;  %v5256_v0 = vpack.c.bf16 %v1904_v60, %v1903_v1  ;;  %v2410_v60 = vld [vmem:[%s9805_s2] sm:$0xff]  ;;  %v2411_v1 = vld [vmem:[%s9805_s2 + $0x8] sm:$0xff]  ;;  %v10315_v63 = vld [vmem:[#allocation106_spill] sm:$0xff] }
 0x43f   :  { %5283 = vmatpush3.bf16.msra.mxu1 %v5282_v27  ;;  %v1919_v39 = vmul.f32 %v7769_v6, %v7769_v6  ;;  %v1920_v17 = vmul.f32 %v7773_v42, %v7773_v42  ;;  %v5286_v47 = vpack.c.bf16 %v1918_v10, %v1917_v22  ;;  %v5258_v37 = vpack.c.bf16 %v1888_v28, %v1887_v36 }
 0x440   :  { %5285 = vmatprep.subr.bf16.mxu1 %v5284_v33  ;;  %v5288_v3 = vpack.c.bf16 %v1936_v24, %v1935_v4  ;;  %v10293_v53 = vmov 1.0  }
 0x441   :  { %5255 = vmatpush3.bf16.msra.mxu0 %v5254_v46  ;;  %v5290_v23 = vpack.c.bf16 %v1920_v17, %v1919_v39  ;;  %v5292_v46 = vpack.c.bf16 %v2411_v1, %v2410_v60  ;;  %v2412_v17 = vld [vmem:[%s9805_s2 + $0x10] sm:$0xff]  ;;  %v39_v39 = vld [vmem:[%s9807_s4] sm:$0x1]  ;;  %v10296_v60 = vld [vmem:[#allocation59_spill] sm:$0xff] }
 0x442   :  { %5257 = vmatprep.subr.bf16.mxu0 %v5256_v0  ;;  %v5296_v16 = vpack.c.bf16 %v2413_v55, %v2412_v17  ;;  %v10297_v17 = vld [vmem:[#allocation61_spill] sm:$0xff] }
 0x443   :  { %5287 = vmatpush3.bf16.msra.mxu1 %v5286_v47 }
 0x444   :  { %5289 = vmatprep.subr.bf16.mxu1 %v5288_v3 }
 0x445   :  { %5259 = vmatpush3.bf16.msra.mxu0 %v5258_v37  ;;  %v10294_v37 = vld [vmem:[#allocation60_spill] sm:$0xff] }
 0x446   :  { %5293 = vmatprep.subr.bf16.mxu0 %v5292_v46 }
 0x447   :  { %5291 = vmatpush3.bf16.msra.mxu1 %v5290_v23 }
 0x448   :  { %2002 = vmatmul.mubr.f32.vlgmr.msra.gmra.mrb[2].mxu0 %v10293_v53  ;;  %5436 = vmatprep.subr.bf16.mxu1 %v5292_v46 }
 0x449   :  { %5295 = vmatpush3.bf16.msra.mxu0 %v5292_v46 }
 0x44a   :  { %2072 = vmatmul.mubr.f32.vlgmr.msra.gmra.mrb[2].mxu1 %v10293_v53  ;;  %5297 = vmatprep.subr.bf16.mxu0 %v5296_v16  ;;  %v10312_v53 = vld [vmem:[#allocation94_spill] sm:$0xff] }
 0x44b   :  { %5438 = vmatpush3.bf16.msra.mxu1 %v5292_v46  ;;  %v7815_v46 = vstv %s37_s14 }
 0x44c   :  { %5437 = vmatprep.subr.bf16.mxu1 %v5296_v16 }
 0x44d   :  { %5299 = vmatpush3.bf16.msra.mxu0 %v5296_v16 }
 0x44f   :  { %5439 = vmatpush3.bf16.msra.mxu1 %v5296_v16 }
 0x51b   :  { %v4642_v36 = vpop.f32.mrb[2].mxu0 }
 0x51c   :  { %v4643_v28 = vpop.f32.mrb[3].mxu0 }
 0x51d   :  { %v4644_v22 = vadd.f32 %v4643_v28, %v4642_v36  ;;  %v4677_v10 = vpop.f32.mrb[2].mxu1  ;;  %v10298_v36 = vld [vmem:[#allocation65_spill] sm:$0xff] }
 0x51e   :  { %v4678_v27 = vpop.f32.mrb[3].mxu1 }
 0x51f   :  { %v4679_v33 = vadd.f32 %v4678_v27, %v4677_v10 }
 0x521   :  { %v2074_v4 = vadd.f32 %v4679_v33, %v4644_v22 }
 0x523   :  { %v2077_v24 = vmul.f32 0.001953125, %v2074_v4  ;;  %v10299_v4 = vld [vmem:[#allocation66_spill] sm:$0xff] }
 0x525   :  { %v2078_v0 = vadd.f32 1e-05, %v2077_v24  ;;  %v10300_v24 = vld [vmem:[#allocation81_spill] sm:$0xff] }
 0x527   :  { %5508 = vrsqrt.f32 %v2078_v0  ;;  %v10301_v0 = vld [vmem:[#allocation83_spill] sm:$0xff] }
 0x531   :  { %v5509_v47 = vpop.eup %5508 }
 0x532   :  { %v2080_v3 = vmul.f32 %v5509_v47, %v39_v39 }
 0x534   :  { %v7809_v23 = vrot.slane %v2080_v3, %v10294_v37  ;;  %v10309_v37 = vld [vmem:[#allocation18_spill] sm:$0xff] }
 0x536   :  { %10295 = vst [vmem:[#allocation102_spill] sm:$0xff] %v7809_v23  ;;  %v7813_v1 = vmul.f32 %v7809_v23, %v10296_v60  ;;  %v2086_v55 = vmul.f32 %v7809_v23, %v10297_v17  ;;  %v7821_v16 = vmul.f32 %v7809_v23, %v7419_v48  ;;  %v7825_v28 = vmul.f32 %v7809_v23, %v10298_v36  ;;  %v10303_v17 = vld [vmem:[#allocation87_spill] sm:$0xff]  ;;  %v10304_v36 = vld [vmem:[#allocation89_spill] sm:$0xff] }
 0x537   :  { %v7829_v22 = vmul.f32 %v7809_v23, %v7427_v56  ;;  %v7833_v10 = vmul.f32 %v7809_v23, %v7431_v59  ;;  %v7837_v27 = vmul.f32 %v7809_v23, %v7435_v41  ;;  %v7841_v48 = vmul.f32 %v7809_v23, %v7439_v18 }
 0x538   :  { %v7845_v33 = vmul.f32 %v7809_v23, %v7443_v19  ;;  %v7849_v56 = vmul.f32 %v7809_v23, %v7447_v40  ;;  %v7853_v59 = vmul.f32 %v7809_v23, %v7451_v62  ;;  %v7857_v41 = vmul.f32 %v7809_v23, %v7455_v5 }
 0x539   :  { %v7861_v18 = vmul.f32 %v7809_v23, %v7459_v45  ;;  %v7865_v19 = vmul.f32 %v7809_v23, %v10285_v52  ;;  %v7869_v40 = vmul.f32 %v7809_v23, %v10291_v51  ;;  %v7873_v62 = vmul.f32 %v7809_v23, %v10292_v57 }
 0x53a   :  { %v7877_v5 = vmul.f32 %v7809_v23, %v10299_v4  ;;  %v7881_v45 = vmul.f32 %v7809_v23, %v10300_v24  ;;  %v7885_v52 = vmul.f32 %v7809_v23, %v7481_v26  ;;  %v7889_v51 = vmul.f32 %v7809_v23, %v7485_v7 }
 0x53b   :  { %v7893_v57 = vmul.f32 %v7809_v23, %v7489_v31  ;;  %v7897_v39 = vmul.f32 %v7809_v23, %v10301_v0  ;;  %v7901_v47 = vmul.f32 %v7809_v23, %v7497_v11  ;;  %v7905_v26 = vmul.f32 %v7809_v23, %v7501_v50 }
 0x53c   :  { %v7909_v7 = vmul.f32 %v7809_v23, %v7505_v8  ;;  %v7913_v31 = vmul.f32 %v7809_v23, %v7509_v14  ;;  %v2111_v3 = vmul.f32 %v7809_v23, %v7513_v20  ;;  %v2112_v60 = vmul.f32 %v7809_v23, %v7517_v2 }
 0x53d   :  { %v2113_v11 = vmul.f32 %v7809_v23, %v7521_v25  ;;  %v2114_v50 = vmul.f32 %v7809_v23, %v7525_v35  ;;  %v7925_v8 = vmul.f32 %v7809_v23, %v10287_v9  ;;  %v7929_v14 = vmul.f32 %v7809_v23, %v10288_v49  ;;  %v10305_v25 = vld [vmem:[#allocation90_spill] sm:$0xff] }
 0x53e   :  { %10302 = vst [vmem:[#allocation124_spill] sm:$0xff] %v7913_v31  ;;  %v7933_v20 = vmul.f32 %v7809_v23, %v10303_v17  ;;  %v7937_v2 = vmul.f32 %v7809_v23, %v10304_v36  ;;  %v7941_v4 = vmul.f32 %v7809_v23, %v10305_v25  ;;  %v7945_v35 = vmul.f32 %v7809_v23, %v7549_v13  ;;  %v10306_v17 = vld [vmem:[#allocation91_spill] sm:$0xff]  ;;  %v10308_v25 = vld [vmem:[#allocation93_spill] sm:$0xff]  ;;  %v10317_v31 = vld [vmem:[#allocation10_spill] sm:$0xff] }
 0x53f   :  { %v7949_v49 = vmul.f32 %v7809_v23, %v7553_v38  ;;  %v7953_v9 = vmul.f32 %v7809_v23, %v7557_v43  ;;  %v7957_v24 = vmul.f32 %v7809_v23, %v7561_v32  ;;  %v7961_v0 = vmul.f32 %v7809_v23, %v7565_v21  ;;  %v10307_v36 = vld [vmem:[#allocation63_spill] sm:$0xff] }
 0x540   :  { %v7965_v13 = vmul.f32 %v7809_v23, %v7569_v12  ;;  %v7969_v38 = vmul.f32 %v7809_v23, %v7581_v15  ;;  %v7973_v43 = vmul.f32 %v7809_v23, %v10286_v29  ;;  %v7977_v32 = vmul.f32 %v7809_v23, %v7681_v61 }
 0x541   :  { %v7981_v21 = vmul.f32 %v7809_v23, %v7709_v58  ;;  %v7985_v12 = vmul.f32 %v7809_v23, %v7737_v44  ;;  %v7989_v15 = vmul.f32 %v7809_v23, %v7769_v6  ;;  %v7993_v29 = vmul.f32 %v7809_v23, %v7773_v42  ;;  %v8002_v58 = vld [vmem:[%s9807_s4 + $0x1] ss:$0 sm:$0xff] }
 0x542   :  { %v7997_v61 = vmul.f32 %v7809_v23, %v10306_v17  ;;  %v8006_v44 = vmul.f32 %v7809_v23, %v10307_v36  ;;  %v8010_v6 = vmul.f32 %v7809_v23, %v10308_v25  ;;  %v8014_v42 = vmul.f32 %v7809_v23, %v10309_v37 }
 0x543   :  { %v8018_v17 = vmul.f32 %v7809_v23, %v7609_v54  ;;  %v8022_v34 = vmul.f32 %v7809_v23, %v10312_v53  ;;  %v8026_v36 = vmul.f32 %v7809_v23, %v7617_v30  ;;  %v8030_v25 = vmul.f32 %v7809_v23, %v10315_v63 }
 0x544   :  { %10310 = vst [vmem:[#allocation100_spill] sm:$0xff] %v8014_v42  ;;  %v8034_v37 = vmul.f32 %v7809_v23, %v10317_v31  ;;  %v10318_v42 = vld [vmem:[#allocation97_spill] sm:$0xff]  ;;  %v2153_v31 = vadd.f32 %v8002_v58, %v7813_v1 }
 0x545   :  { %10311 = vst [vmem:[#allocation19_spill] sm:$0xff] %v8018_v17  ;;  %10313 = vst [vmem:[#allocation101_spill] sm:$0xff] %v8022_v34  ;;  %v8038_v54 = vmul.f32 %v7809_v23, %v10318_v42  ;;  %v10320_v17 = vld [vmem:[#allocation104_spill] sm:$0xff]  ;;  %v10322_v34 = vld [vmem:[#allocation126_spill] sm:$0xff]  ;;  %v2179_v42 = vadd.f32 %v8002_v58, %v2111_v3 }
 0x546   :  { %10314 = vst [vmem:[#allocation13_spill] sm:$0xff] %v8026_v36  ;;  %10316 = vst [vmem:[#allocation11_spill] sm:$0xff] %v8030_v25  ;;  %v8042_v53 = vmul.f32 %v7809_v23, %v10320_v17  ;;  %v8046_v30 = vmul.f32 %v7809_v23, %v10322_v34  ;;  %v10324_v36 = vld [vmem:[#allocation95_spill] sm:$0xff]  ;;  %v2154_v25 = vadd.f32 %v8002_v58, %v2086_v55  ;;  %vm2217_vm1 = vcmp.ge.f32.partialorder %v2153_v31, 0.0 }
 0x547   :  { %10319 = vst [vmem:[#allocation122_spill] sm:$0xff] %v8038_v54  ;;  %v8050_v63 = vmul.f32 %v7809_v23, %v10324_v36  ;;  %v2180_v54 = vadd.f32 %v8002_v58, %v2112_v60  ;;  %v2155_v17 = vadd.f32 %v8002_v58, %v7821_v16  ;;  %v2156_v34 = vadd.f32 %v8002_v58, %v7825_v28 }
 0x548   :  { %10321 = vst [vmem:[#allocation99_spill] sm:$0xff] %v8042_v53  ;;  %10323 = vst [vmem:[#allocation21_spill] sm:$0xff] %v8046_v30  ;;  %v2181_v53 = vadd.f32 %v8002_v58, %v2113_v11  ;;  %v2182_v36 = vadd.f32 %v8002_v58, %v2114_v50  ;;  %v2282_v55 = vmul.f32 %v7815_v46, %v2153_v31  ;;  %vm2243_vm2 = vcmp.ge.f32.partialorder %v2179_v42, 0.0 }
 0x549   :  { %10325 = vst [vmem:[#allocation8_spill] sm:$0xff] %v8050_v63  ;;  %v2308_v1 = vmul.f32 %v7815_v46, %v2179_v42  ;;  %vm2218_vm3 = vcmp.ge.f32.partialorder %v2154_v25, 0.0  ;;  %v2283_v3 = vmul.f32 %v7815_v46, %v2154_v25  ;;  %vm2244_vm4 = vcmp.ge.f32.partialorder %v2180_v54, 0.0 }
 0x54a   :  { %v2309_v60 = vmul.f32 %v7815_v46, %v2180_v54  ;;  %v2346_v16 = vsel %vm2217_vm1, %v2153_v31, %v2282_v55  ;;  %vm2219_vm5 = vcmp.ge.f32.partialorder %v2155_v17, 0.0  ;;  %v2284_v11 = vmul.f32 %v7815_v46, %v2155_v17 }
 0x54b   :  { %v2372_v63 = vsel %vm2243_vm2, %v2179_v42, %v2308_v1  ;;  %4964 = vmatprep.mubr.msk.f32.mxu0 %vm2414_vm0, %v2346_v16  ;;  %v2347_v28 = vsel %vm2218_vm3, %v2154_v25, %v2283_v3  ;;  %vm2245_vm6 = vcmp.ge.f32.partialorder %v2181_v53, 0.0  ;;  %v2310_v30 = vmul.f32 %v7815_v46, %v2181_v53 }
 0x54c   :  { %5003 = vmatprep.mubr.msk.f32.mxu1 %vm2414_vm0, %v2372_v63  ;;  %v2373_v50 = vsel %vm2244_vm4, %v2180_v54, %v2309_v60  ;;  %4965 = vmatmul.mubr.msk.f32.vlgmr.msra.gmra.mrb[4].mxu0 %vm2414_vm0, %v2347_v28  ;;  %v2348_v23 = vsel %vm2219_vm5, %v2155_v17, %v2284_v11  ;;  %vm2220_vm7 = vcmp.ge.f32.partialorder %v2156_v34, 0.0  ;;  %v2285_v31 = vmul.f32 %v7815_v46, %v2156_v34 }
 0x54d   :  { %5004 = vmatmul.mubr.msk.f32.vlgmr.msra.gmra.mrb[4].mxu1 %vm2414_vm0, %v2373_v50  ;;  %vm2246_vm8 = vcmp.ge.f32.partialorder %v2182_v36, 0.0  ;;  %4967 = vmatprep.mubr.msk.f32.mxu0 %vm2414_vm0, %v2348_v23  ;;  %v2374_v42 = vsel %vm2245_vm6, %v2181_v53, %v2310_v30  ;;  %v2311_v55 = vmul.f32 %v7815_v46, %v2182_v36  ;;  %v2157_v25 = vadd.f32 %v8002_v58, %v7829_v22 }
 0x54e   :  { %v2183_v54 = vadd.f32 %v8002_v58, %v7925_v8  ;;  %5006 = vmatprep.mubr.msk.f32.mxu1 %vm2414_vm0, %v2374_v42  ;;  %v2349_v63 = vsel %vm2220_vm7, %v2156_v34, %v2285_v31  ;;  %v2158_v17 = vadd.f32 %v8002_v58, %v7833_v10  ;;  %v2184_v1 = vadd.f32 %v8002_v58, %v7929_v14 }
 0x54f   :  { %v2159_v23 = vadd.f32 %v8002_v58, %v7837_v27  ;;  %v2375_v53 = vsel %vm2246_vm8, %v2182_v36, %v2311_v55  ;;  %vm2221_vm9 = vcmp.ge.f32.partialorder %v2157_v25, 0.0  ;;  %v2286_v30 = vmul.f32 %v7815_v46, %v2157_v25 }
 0x550   :  { %vm2247_vm10 = vcmp.ge.f32.partialorder %v2183_v54, 0.0  ;;  %4968 = vmatmul.mubr.msk.f32.gmra.mrb[6].mxu0 %vm2414_vm0, %v2349_v63  ;;  %v2312_v22 = vmul.f32 %v7815_v46, %v2183_v54  ;;  %vm2222_vm11 = vcmp.ge.f32.partialorder %v2158_v17, 0.0  ;;  %v2287_v10 = vmul.f32 %v7815_v46, %v2158_v17 }
 0x551   :  { %5007 = vmatmul.mubr.msk.f32.gmra.mrb[6].mxu1 %vm2414_vm0, %v2375_v53  ;;  %vm2248_vm12 = vcmp.ge.f32.partialorder %v2184_v1, 0.0  ;;  %v2350_v8 = vsel %vm2221_vm9, %v2157_v25, %v2286_v30  ;;  %v2313_v14 = vmul.f32 %v7815_v46, %v2184_v1  ;;  %vm2223_vm13 = vcmp.ge.f32.partialorder %v2159_v23, 0.0 }
 0x552   :  { %v2288_v27 = vmul.f32 %v7815_v46, %v2159_v23  ;;  %4970 = vmatprep.mubr.msk.f32.mxu0 %vm2414_vm0, %v2350_v8  ;;  %v2376_v34 = vsel %vm2247_vm10, %v2183_v54, %v2312_v22  ;;  %v2351_v36 = vsel %vm2222_vm11, %v2158_v17, %v2287_v10  ;;  %v2185_v3 = vadd.f32 %v8002_v58, %v7933_v20 }
 0x553   :  { %v2160_v60 = vadd.f32 %v8002_v58, %v7841_v48  ;;  %5009 = vmatprep.mubr.msk.f32.mxu1 %vm2414_vm0, %v2376_v34  ;;  %v2377_v16 = vsel %vm2248_vm12, %v2184_v1, %v2313_v14  ;;  %v2186_v28 = vadd.f32 %v8002_v58, %v7937_v2  ;;  %v2161_v50 = vadd.f32 %v8002_v58, %v7845_v33 }
 0x554   :  { %v2352_v11 = vsel %vm2223_vm13, %v2159_v23, %v2288_v27  ;;  %4971 = vmatmul.mubr.msk.f32.gmra.mrb[8].mxu0 %vm2414_vm0, %v2351_v36  ;;  %vm2249_vm14 = vcmp.ge.f32.partialorder %v2185_v3, 0.0  ;;  %v2314_v20 = vmul.f32 %v7815_v46, %v2185_v3  ;;  %v2187_v55 = vadd.f32 %v8002_v58, %v7941_v4 }
 0x555   :  { %5010 = vmatmul.mubr.msk.f32.gmra.mrb[8].mxu1 %vm2414_vm0, %v2377_v16  ;;  %vm2224_vm15 = vcmp.ge.f32.partialorder %v2160_v60, 0.0  ;;  %v2289_v48 = vmul.f32 %v7815_v46, %v2160_v60  ;;  %4973 = vmatprep.mubr.msk.f32.mxu0 %vm2414_vm0, %v2352_v11  ;;  %vm2250_vm1 = vcmp.ge.f32.partialorder %v2186_v28, 0.0  ;;  %v2315_v31 = vmul.f32 %v7815_v46, %v2186_v28 }
 0x556   :  { %vm2225_vm2 = vcmp.ge.f32.partialorder %v2161_v50, 0.0  ;;  %v2290_v2 = vmul.f32 %v7815_v46, %v2161_v50  ;;  %v2378_v42 = vsel %vm2249_vm14, %v2185_v3, %v2314_v20  ;;  %v2162_v25 = vadd.f32 %v8002_v58, %v7849_v56 }
 0x557   :  { %v2353_v33 = vsel %vm2224_vm15, %v2160_v60, %v2289_v48  ;;  %5012 = vmatprep.mubr.msk.f32.mxu1 %vm2414_vm0, %v2378_v42  ;;  %v2379_v54 = vsel %vm2250_vm1, %v2186_v28, %v2315_v31  ;;  %v2188_v17 = vadd.f32 %v8002_v58, %v7945_v35  ;;  %v2163_v1 = vadd.f32 %v8002_v58, %v7853_v59 }
 0x558   :  { %v2354_v63 = vsel %vm2225_vm2, %v2161_v50, %v2290_v2  ;;  %4974 = vmatmul.mubr.msk.f32.gmra.mrb[10].mxu0 %vm2414_vm0, %v2353_v33  ;;  %vm2251_vm3 = vcmp.ge.f32.partialorder %v2187_v55, 0.0  ;;  %v2316_v4 = vmul.f32 %v7815_v46, %v2187_v55  ;;  %vm2226_vm4 = vcmp.ge.f32.partialorder %v2162_v25, 0.0 }
 0x559   :  { %5013 = vmatmul.mubr.msk.f32.gmra.mrb[10].mxu1 %vm2414_vm0, %v2379_v54  ;;  %v2291_v56 = vmul.f32 %v7815_v46, %v2162_v25  ;;  %4976 = vmatprep.mubr.msk.f32.mxu0 %vm2414_vm0, %v2354_v63  ;;  %vm2252_vm5 = vcmp.ge.f32.partialorder %v2188_v17, 0.0  ;;  %v2317_v23 = vmul.f32 %v7815_v46, %v2188_v17  ;;  %vm2227_vm6 = vcmp.ge.f32.partialorder %v2163_v1, 0.0 }
 0x55a   :  { %v2292_v35 = vmul.f32 %v7815_v46, %v2163_v1  ;;  %v2380_v53 = vsel %vm2251_vm3, %v2187_v55, %v2316_v4  ;;  %v2189_v30 = vadd.f32 %v8002_v58, %v7949_v49  ;;  %v2164_v22 = vadd.f32 %v8002_v58, %v7857_v41 }
 0x55b   :  { %v2355_v59 = vsel %vm2226_vm4, %v2162_v25, %v2291_v56  ;;  %5015 = vmatprep.mubr.msk.f32.mxu1 %vm2414_vm0, %v2380_v53  ;;  %v2381_v10 = vsel %vm2252_vm5, %v2188_v17, %v2317_v23  ;;  %v2190_v14 = vadd.f32 %v8002_v58, %v7953_v9  ;;  %v2165_v27 = vadd.f32 %v8002_v58, %v7861_v18 }
 0x55c   :  { %v2356_v8 = vsel %vm2227_vm6, %v2163_v1, %v2292_v35  ;;  %4977 = vmatmul.mubr.msk.f32.gmra.mrb[12].mxu0 %vm2414_vm0, %v2355_v59  ;;  %vm2253_vm7 = vcmp.ge.f32.partialorder %v2189_v30, 0.0  ;;  %v2318_v49 = vmul.f32 %v7815_v46, %v2189_v30  ;;  %vm2228_vm8 = vcmp.ge.f32.partialorder %v2164_v22, 0.0 }
 0x55d   :  { %5016 = vmatmul.mubr.msk.f32.gmra.mrb[12].mxu1 %vm2414_vm0, %v2381_v10  ;;  %v2293_v41 = vmul.f32 %v7815_v46, %v2164_v22  ;;  %4979 = vmatprep.mubr.msk.f32.mxu0 %vm2414_vm0, %v2356_v8  ;;  %vm2254_vm9 = vcmp.ge.f32.partialorder %v2190_v14, 0.0  ;;  %v2319_v34 = vmul.f32 %v7815_v46, %v2190_v14  ;;  %vm2229_vm10 = vcmp.ge.f32.partialorder %v2165_v27, 0.0 }
 0x55e   :  { %v2294_v9 = vmul.f32 %v7815_v46, %v2165_v27  ;;  %v2382_v36 = vsel %vm2253_vm7, %v2189_v30, %v2318_v49  ;;  %v2191_v3 = vadd.f32 %v8002_v58, %v7957_v24  ;;  %v2166_v60 = vadd.f32 %v8002_v58, %v7865_v19 }
 0x55f   :  { %v2357_v18 = vsel %vm2228_vm8, %v2164_v22, %v2293_v41  ;;  %5018 = vmatprep.mubr.msk.f32.mxu1 %vm2414_vm0, %v2382_v36  ;;  %v2383_v16 = vsel %vm2254_vm9, %v2190_v14, %v2319_v34  ;;  %v2192_v28 = vadd.f32 %v8002_v58, %v7961_v0  ;;  %v2167_v50 = vadd.f32 %v8002_v58, %v7869_v40 }
 0x560   :  { %v2358_v11 = vsel %vm2229_vm10, %v2165_v27, %v2294_v9  ;;  %4980 = vmatmul.mubr.msk.f32.gmra.mrb[14].mxu0 %vm2414_vm0, %v2357_v18  ;;  %vm2255_vm11 = vcmp.ge.f32.partialorder %v2191_v3, 0.0  ;;  %v2320_v24 = vmul.f32 %v7815_v46, %v2191_v3  ;;  %vm2230_vm12 = vcmp.ge.f32.partialorder %v2166_v60, 0.0 }
 0x561   :  { %5019 = vmatmul.mubr.msk.f32.gmra.mrb[14].mxu1 %vm2414_vm0, %v2383_v16  ;;  %v2295_v19 = vmul.f32 %v7815_v46, %v2166_v60  ;;  %4982 = vmatprep.mubr.msk.f32.mxu0 %vm2414_vm0, %v2358_v11  ;;  %vm2256_vm13 = vcmp.ge.f32.partialorder %v2192_v28, 0.0  ;;  %v2321_v20 = vmul.f32 %v7815_v46, %v2192_v28  ;;  %vm2231_vm14 = vcmp.ge.f32.partialorder %v2167_v50, 0.0 }
 0x562   :  { %v2296_v0 = vmul.f32 %v7815_v46, %v2167_v50  ;;  %v2384_v48 = vsel %vm2255_vm11, %v2191_v3, %v2320_v24  ;;  %v2193_v31 = vadd.f32 %v8002_v58, %v7965_v13  ;;  %v2168_v2 = vadd.f32 %v8002_v58, %v7873_v62 }
 0x563   :  { %v2359_v40 = vsel %vm2230_vm12, %v2166_v60, %v2295_v19  ;;  %5021 = vmatprep.mubr.msk.f32.mxu1 %vm2414_vm0, %v2384_v48  ;;  %v2385_v42 = vsel %vm2256_vm13, %v2192_v28, %v2321_v20  ;;  %v2194_v55 = vadd.f32 %v8002_v58, %v7969_v38  ;;  %v2169_v25 = vadd.f32 %v8002_v58, %v7877_v5 }
 0x564   :  { %v2360_v33 = vsel %vm2231_vm14, %v2167_v50, %v2296_v0  ;;  %4983 = vmatmul.mubr.msk.f32.gmra.mrb[16].mxu0 %vm2414_vm0, %v2359_v40  ;;  %vm2257_vm15 = vcmp.ge.f32.partialorder %v2193_v31, 0.0  ;;  %v2322_v13 = vmul.f32 %v7815_v46, %v2193_v31  ;;  %vm2232_vm1 = vcmp.ge.f32.partialorder %v2168_v2, 0.0 }
 0x565   :  { %5022 = vmatmul.mubr.msk.f32.gmra.mrb[16].mxu1 %vm2414_vm0, %v2385_v42  ;;  %v2297_v62 = vmul.f32 %v7815_v46, %v2168_v2  ;;  %4985 = vmatprep.mubr.msk.f32.mxu0 %vm2414_vm0, %v2360_v33  ;;  %vm2258_vm2 = vcmp.ge.f32.partialorder %v2194_v55, 0.0  ;;  %v2323_v54 = vmul.f32 %v7815_v46, %v2194_v55  ;;  %vm2233_vm3 = vcmp.ge.f32.partialorder %v2169_v25, 0.0 }
 0x566   :  { %v2298_v38 = vmul.f32 %v7815_v46, %v2169_v25  ;;  %v2386_v63 = vsel %vm2257_vm15, %v2193_v31, %v2322_v13  ;;  %v2195_v17 = vadd.f32 %v8002_v58, %v7973_v43  ;;  %v2170_v1 = vadd.f32 %v8002_v58, %v7881_v45 }
 0x567   :  { %v2361_v5 = vsel %vm2232_vm1, %v2168_v2, %v2297_v62  ;;  %5024 = vmatprep.mubr.msk.f32.mxu1 %vm2414_vm0, %v2386_v63  ;;  %v2387_v4 = vsel %vm2258_vm2, %v2194_v55, %v2323_v54  ;;  %v2196_v23 = vadd.f32 %v8002_v58, %v7977_v32  ;;  %v2171_v35 = vadd.f32 %v8002_v58, %v7885_v52  ;;  %v10326_v2 = vld [vmem:[#allocation124_spill] sm:$0xff]  ;;  %v10328_v62 = vld [vmem:[#allocation19_spill] sm:$0xff] }
 0x568   :  { %v2362_v56 = vsel %vm2233_vm3, %v2169_v25, %v2298_v38  ;;  %4986 = vmatmul.mubr.msk.f32.gmra.mrb[18].mxu0 %vm2414_vm0, %v2361_v5  ;;  %vm2259_vm4 = vcmp.ge.f32.partialorder %v2195_v17, 0.0  ;;  %v2324_v43 = vmul.f32 %v7815_v46, %v2195_v17  ;;  %vm2234_vm5 = vcmp.ge.f32.partialorder %v2170_v1, 0.0  ;;  %v10327_v25 = vld [vmem:[#allocation100_spill] sm:$0xff] }
 0x569   :  { %5025 = vmatmul.mubr.msk.f32.gmra.mrb[18].mxu1 %vm2414_vm0, %v2387_v4  ;;  %v2299_v45 = vmul.f32 %v7815_v46, %v2170_v1  ;;  %4988 = vmatprep.mubr.msk.f32.mxu0 %vm2414_vm0, %v2362_v56  ;;  %vm2260_vm6 = vcmp.ge.f32.partialorder %v2196_v23, 0.0  ;;  %v2325_v53 = vmul.f32 %v7815_v46, %v2196_v23  ;;  %vm2235_vm7 = vcmp.ge.f32.partialorder %v2171_v35, 0.0  ;;  %v10329_v4 = vld [vmem:[#allocation101_spill] sm:$0xff] }
 0x56a   :  { %v2300_v32 = vmul.f32 %v7815_v46, %v2171_v35  ;;  %v2388_v59 = vsel %vm2259_vm4, %v2195_v17, %v2324_v43  ;;  %v2197_v30 = vadd.f32 %v8002_v58, %v7981_v21  ;;  %v2172_v22 = vadd.f32 %v8002_v58, %v7889_v51 }
 0x56b   :  { %v2363_v52 = vsel %vm2234_vm5, %v2170_v1, %v2299_v45  ;;  %5027 = vmatprep.mubr.msk.f32.mxu1 %vm2414_vm0, %v2388_v59  ;;  %v2389_v10 = vsel %vm2260_vm6, %v2196_v23, %v2325_v53  ;;  %v2198_v14 = vadd.f32 %v8002_v58, %v7985_v12  ;;  %v2173_v27 = vadd.f32 %v8002_v58, %v7893_v57  ;;  %v10330_v23 = vld [vmem:[#allocation13_spill] sm:$0xff]  ;;  %v10331_v53 = vld [vmem:[#allocation11_spill] sm:$0xff] }
 0x56c   :  { %v2364_v8 = vsel %vm2235_vm7, %v2171_v35, %v2300_v32  ;;  %4989 = vmatmul.mubr.msk.f32.gmra.mrb[20].mxu0 %vm2414_vm0, %v2363_v52  ;;  %vm2261_vm8 = vcmp.ge.f32.partialorder %v2197_v30, 0.0  ;;  %v2326_v21 = vmul.f32 %v7815_v46, %v2197_v30  ;;  %vm2236_vm9 = vcmp.ge.f32.partialorder %v2172_v22, 0.0 }
 0x56d   :  { %5028 = vmatmul.mubr.msk.f32.gmra.mrb[20].mxu1 %vm2414_vm0, %v2389_v10  ;;  %v2301_v51 = vmul.f32 %v7815_v46, %v2172_v22  ;;  %4991 = vmatprep.mubr.msk.f32.mxu0 %vm2414_vm0, %v2364_v8  ;;  %vm2262_vm10 = vcmp.ge.f32.partialorder %v2198_v14, 0.0  ;;  %v2327_v49 = vmul.f32 %v7815_v46, %v2198_v14  ;;  %vm2237_vm11 = vcmp.ge.f32.partialorder %v2173_v27, 0.0  ;;  %v10332_v8 = vld [vmem:[#allocation108_spill] sm:$0xff] }
 0x56e   :  { %v2302_v12 = vmul.f32 %v7815_v46, %v2173_v27  ;;  %v2390_v41 = vsel %vm2261_vm8, %v2197_v30, %v2326_v21  ;;  %v2199_v34 = vadd.f32 %v8002_v58, %v7989_v15  ;;  %v2174_v9 = vadd.f32 %v8002_v58, %v7897_v39 }
 0x56f   :  { %v2365_v57 = vsel %vm2236_vm9, %v2172_v22, %v2301_v51  ;;  %5030 = vmatprep.mubr.msk.f32.mxu1 %vm2414_vm0, %v2390_v41  ;;  %v2391_v36 = vsel %vm2262_vm10, %v2198_v14, %v2327_v49  ;;  %v2200_v3 = vadd.f32 %v8002_v58, %v7993_v29  ;;  %v2175_v60 = vadd.f32 %v8002_v58, %v7901_v47  ;;  %v10335_v51 = vld [vmem:[#allocation98_spill] sm:$0xff] }
 0x570   :  { %v2366_v18 = vsel %vm2237_vm11, %v2173_v27, %v2302_v12  ;;  %4992 = vmatmul.mubr.msk.f32.gmra.mrb[22].mxu0 %vm2414_vm0, %v2365_v57  ;;  %vm2263_vm12 = vcmp.ge.f32.partialorder %v2199_v34, 0.0  ;;  %v2328_v15 = vmul.f32 %v7815_v46, %v2199_v34  ;;  %vm2238_vm13 = vcmp.ge.f32.partialorder %v2174_v9, 0.0  ;;  %v10334_v27 = vld [vmem:[#allocation96_spill] sm:$0xff]  ;;  %v10336_v12 = vld [vmem:[#allocation122_spill] sm:$0xff] }
 0x571   :  { %5031 = vmatmul.mubr.msk.f32.gmra.mrb[22].mxu1 %vm2414_vm0, %v2391_v36  ;;  %v2303_v39 = vmul.f32 %v7815_v46, %v2174_v9  ;;  %4994 = vmatprep.mubr.msk.f32.mxu0 %vm2414_vm0, %v2366_v18  ;;  %vm2264_vm14 = vcmp.ge.f32.partialorder %v2200_v3, 0.0  ;;  %v2329_v16 = vmul.f32 %v7815_v46, %v2200_v3  ;;  %vm2239_vm15 = vcmp.ge.f32.partialorder %v2175_v60, 0.0  ;;  %v10338_v36 = vld [vmem:[#allocation21_spill] sm:$0xff] }
 0x572   :  { %v2304_v29 = vmul.f32 %v7815_v46, %v2175_v60  ;;  %v2392_v11 = vsel %vm2263_vm12, %v2199_v34, %v2328_v15  ;;  %v2201_v28 = vadd.f32 %v8002_v58, %v7997_v61  ;;  %v2176_v50 = vadd.f32 %v8002_v58, %v7905_v26  ;;  %v10337_v34 = vld [vmem:[#allocation99_spill] sm:$0xff] }
 0x573   :  { %v2367_v47 = vsel %vm2238_vm13, %v2174_v9, %v2303_v39  ;;  %5033 = vmatprep.mubr.msk.f32.mxu1 %vm2414_vm0, %v2392_v11  ;;  %v2393_v24 = vsel %vm2264_vm14, %v2200_v3, %v2329_v16  ;;  %v2202_v20 = vadd.f32 %v8002_v58, %v8006_v44  ;;  %v2177_v0 = vadd.f32 %v8002_v58, %v7909_v7  ;;  %v10339_v3 = vld [vmem:[#allocation8_spill] sm:$0xff] }
 0x574   :  { %v2368_v19 = vsel %vm2239_vm15, %v2175_v60, %v2304_v29  ;;  %4995 = vmatmul.mubr.msk.f32.gmra.mrb[24].mxu0 %vm2414_vm0, %v2367_v47  ;;  %vm2265_vm1 = vcmp.ge.f32.partialorder %v2201_v28, 0.0  ;;  %v2330_v61 = vmul.f32 %v7815_v46, %v2201_v28  ;;  %vm2240_vm2 = vcmp.ge.f32.partialorder %v2176_v50, 0.0 }
 0x575   :  { %5034 = vmatmul.mubr.msk.f32.gmra.mrb[24].mxu1 %vm2414_vm0, %v2393_v24  ;;  %v2305_v26 = vmul.f32 %v7815_v46, %v2176_v50  ;;  %4997 = vmatprep.mubr.msk.f32.mxu0 %vm2414_vm0, %v2368_v19  ;;  %vm2266_vm3 = vcmp.ge.f32.partialorder %v2202_v20, 0.0  ;;  %v2331_v48 = vmul.f32 %v7815_v46, %v2202_v20  ;;  %vm2241_vm4 = vcmp.ge.f32.partialorder %v2177_v0, 0.0 }
 0x576   :  { %v2306_v44 = vmul.f32 %v7815_v46, %v2177_v0  ;;  %v2394_v40 = vsel %vm2265_vm1, %v2201_v28, %v2330_v61  ;;  %v2203_v31 = vadd.f32 %v8002_v58, %v8010_v6  ;;  %v2178_v42 = vadd.f32 %v8002_v58, %v10326_v2 }
 0x577   :  { %v2369_v7 = vsel %vm2240_vm2, %v2176_v50, %v2305_v26  ;;  %5036 = vmatprep.mubr.msk.f32.mxu1 %vm2414_vm0, %v2394_v40  ;;  %v2395_v33 = vsel %vm2266_vm3, %v2202_v20, %v2331_v48  ;;  %v2204_v13 = vadd.f32 %v8002_v58, %v10327_v25  ;;  %v2205_v54 = vadd.f32 %v8002_v58, %v10328_v62 }
 0x578   :  { %v2370_v55 = vsel %vm2241_vm4, %v2177_v0, %v2306_v44  ;;  %4998 = vmatmul.mubr.msk.f32.gmra.mrb[26].mxu0 %vm2414_vm0, %v2369_v7  ;;  %vm2267_vm5 = vcmp.ge.f32.partialorder %v2203_v31, 0.0  ;;  %v2332_v6 = vmul.f32 %v7815_v46, %v2203_v31  ;;  %vm2242_vm6 = vcmp.ge.f32.partialorder %v2178_v42, 0.0 }
 0x579   :  { %5037 = vmatmul.mubr.msk.f32.gmra.mrb[26].mxu1 %vm2414_vm0, %v2395_v33  ;;  %v2307_v38 = vmul.f32 %v7815_v46, %v2178_v42  ;;  %5000 = vmatprep.mubr.msk.f32.mxu0 %vm2414_vm0, %v2370_v55  ;;  %vm2268_vm7 = vcmp.ge.f32.partialorder %v2204_v13, 0.0  ;;  %v2333_v63 = vmul.f32 %v7815_v46, %v2204_v13  ;;  %vm2269_vm8 = vcmp.ge.f32.partialorder %v2205_v54, 0.0 }
 0x57a   :  { %v2334_v5 = vmul.f32 %v7815_v46, %v2205_v54  ;;  %v2396_v17 = vsel %vm2267_vm5, %v2203_v31, %v2332_v6  ;;  %v2206_v56 = vadd.f32 %v8002_v58, %v10329_v4  ;;  %v2207_v35 = vadd.f32 %v8002_v58, %v10330_v23 }
 0x57b   :  { %v2371_v1 = vsel %vm2242_vm6, %v2178_v42, %v2307_v38  ;;  %5039 = vmatprep.mubr.msk.f32.mxu1 %vm2414_vm0, %v2396_v17  ;;  %v2397_v43 = vsel %vm2268_vm7, %v2204_v13, %v2333_v63  ;;  %v2208_v32 = vadd.f32 %v8002_v58, %v10331_v53  ;;  %v2209_v59 = vadd.f32 %v8002_v58, %v8034_v37  ;;  %v10333_v37 = vld [vmem:[#allocation102_spill] sm:$0xff] }
 0x57c   :  { %v2398_v45 = vsel %vm2269_vm8, %v2205_v54, %v2334_v5  ;;  %5001 = vmatmul.mubr.msk.f32.gmra.mrb[28].mxu0 %vm2414_vm0, %v2371_v1  ;;  %vm2270_vm9 = vcmp.ge.f32.partialorder %v2206_v56, 0.0  ;;  %v2335_v52 = vmul.f32 %v7815_v46, %v2206_v56  ;;  %vm2271_vm10 = vcmp.ge.f32.partialorder %v2207_v35, 0.0 }
 0x57d   :  { %5040 = vmatmul.mubr.msk.f32.gmra.mrb[28].mxu1 %vm2414_vm0, %v2397_v43  ;;  %v2336_v30 = vmul.f32 %v7815_v46, %v2207_v35  ;;  %vm2272_vm11 = vcmp.ge.f32.partialorder %v2208_v32, 0.0  ;;  %v2337_v22 = vmul.f32 %v7815_v46, %v2208_v32  ;;  %vm2273_vm12 = vcmp.ge.f32.partialorder %v2209_v59, 0.0 }
 0x57e   :  { %5042 = vmatprep.mubr.msk.f32.mxu1 %vm2414_vm0, %v2398_v45  ;;  %v2338_v10 = vmul.f32 %v7815_v46, %v2209_v59  ;;  %v2146_v14 = vmul.f32 %v10333_v37, %v10332_v8  ;;  %v2147_v21 = vmul.f32 %v10333_v37, %v10334_v27  ;;  %v2148_v49 = vmul.f32 %v10333_v37, %v10335_v51 }
 0x57f   :  { %v2210_v41 = vadd.f32 %v8002_v58, %v10336_v12  ;;  %v2399_v57 = vsel %vm2270_vm9, %v2206_v56, %v2335_v52  ;;  %v2211_v9 = vadd.f32 %v8002_v58, %v10337_v34  ;;  %v2212_v18 = vadd.f32 %v8002_v58, %v10338_v36 }
 0x580   :  { %v2213_v60 = vadd.f32 %v8002_v58, %v10339_v3  ;;  %v2400_v15 = vsel %vm2271_vm10, %v2207_v35, %v2336_v30  ;;  %v2401_v39 = vsel %vm2272_vm11, %v2208_v32, %v2337_v22  ;;  %v2402_v16 = vsel %vm2273_vm12, %v2209_v59, %v2338_v10 }
 0x581   :  { %5043 = vmatmul.mubr.msk.f32.gmra.mrb[30].mxu1 %vm2414_vm0, %v2399_v57  ;;  %vm2276_vm13 = vcmp.ge.f32.partialorder %v2212_v18, 0.0  ;;  %v2341_v29 = vmul.f32 %v7815_v46, %v2212_v18  ;;  %vm2274_vm15 = vcmp.ge.f32.partialorder %v2210_v41, 0.0  ;;  %v2339_v47 = vmul.f32 %v7815_v46, %v2210_v41 }
 0x582   :  { %5045 = vmatprep.mubr.msk.f32.mxu1 %vm2414_vm0, %v2400_v15  ;;  %vm2277_vm14 = vcmp.ge.f32.partialorder %v2213_v60, 0.0  ;;  %v2342_v11 = vmul.f32 %v7815_v46, %v2213_v60  ;;  %v2214_v28 = vadd.f32 %v8002_v58, %v2146_v14  ;;  %v2215_v50 = vadd.f32 %v8002_v58, %v2147_v21 }
 0x583   :  { %v2340_v24 = vmul.f32 %v7815_v46, %v2211_v9  ;;  %v2405_v19 = vsel %vm2276_vm13, %v2212_v18, %v2341_v29  ;;  %v2216_v0 = vadd.f32 %v8002_v58, %v2148_v49  ;;  %vm2275_vm3 = vcmp.ge.f32.partialorder %v2211_v9, 0.0 }
 0x584   :  { %v2406_v20 = vsel %vm2277_vm14, %v2213_v60, %v2342_v11  ;;  %vm2278_vm1 = vcmp.ge.f32.partialorder %v2214_v28, 0.0  ;;  %v2343_v61 = vmul.f32 %v7815_v46, %v2214_v28  ;;  %vm2279_vm2 = vcmp.ge.f32.partialorder %v2215_v50, 0.0 }
 0x585   :  { %5046 = vmatmul.mubr.msk.f32.gmra.mrb[32].mxu1 %vm2414_vm0, %v2401_v39  ;;  %v2344_v26 = vmul.f32 %v7815_v46, %v2215_v50  ;;  %vm2280_vm4 = vcmp.ge.f32.partialorder %v2216_v0, 0.0  ;;  %v2345_v48 = vmul.f32 %v7815_v46, %v2216_v0  ;;  %v2403_v7 = vsel %vm2274_vm15, %v2210_v41, %v2339_v47 }
 0x586   :  { %5048 = vmatprep.mubr.msk.f32.mxu1 %vm2414_vm0, %v2402_v16  ;;  %v2407_v44 = vsel %vm2278_vm1, %v2214_v28, %v2343_v61  ;;  %v2404_v58 = vsel %vm2275_vm3, %v2211_v9, %v2340_v24  ;;  %v10340_v46 = vmov 1.0  }
 0x587   :  { %v2408_v40 = vsel %vm2279_vm2, %v2215_v50, %v2344_v26  ;;  %v2409_v31 = vsel %vm2280_vm4, %v2216_v0, %v2345_v48 }
 0x589   :  { %5049 = vmatmul.mubr.msk.f32.gmra.mrb[34].mxu1 %vm2414_vm0, %v2403_v7 }
 0x58a   :  { %5051 = vmatprep.mubr.msk.f32.mxu1 %vm2414_vm0, %v2404_v58 }
 0x58d   :  { %5052 = vmatmul.mubr.msk.f32.gmra.mrb[36].mxu1 %vm2414_vm0, %v2405_v19 }
 0x58e   :  { %5054 = vmatprep.mubr.msk.f32.mxu1 %vm2414_vm0, %v2406_v20 }
 0x591   :  { %5055 = vmatmul.mubr.msk.f32.gmra.mrb[38].mxu1 %vm2414_vm0, %v2407_v44 }
 0x592   :  { %5057 = vmatprep.mubr.msk.f32.mxu1 %vm2414_vm0, %v2408_v40 }
 0x595   :  { %5058 = vmatmul.mubr.msk.f32.gmra.mrb[40].mxu1 %vm2414_vm0, %v2409_v31 }
 0x596   :  { %3056 = vmatprep.mubr.f32.mxu1 %v10340_v46 }
 0x61f   :  { %v8309_v2 = vpop.f32.mrb[4].mxu0 }
 0x620   :  { %v8311_v42 = vpop.f32.mrb[4].mxu1  ;;  %v8313_v33 = vpop.f32.mrb[5].mxu0 }
 0x621   :  { %v8315_v55 = vpop.f32.mrb[5].mxu1  ;;  %v5302_v25 = vpack.c.bf16 %v8309_v2, %v8313_v33 }
 0x623   :  { %v8321_v62 = vpop.f32.mrb[6].mxu0 }
 0x624   :  { %v8323_v54 = vpop.f32.mrb[6].mxu1  ;;  %v8325_v6 = vpop.f32.mrb[7].mxu0 }
 0x625   :  { %v8327_v38 = vpop.f32.mrb[7].mxu1  ;;  %v5306_v63 = vpack.c.bf16 %v8321_v62, %v8325_v6 }
 0x627   :  { %v8333_v17 = vpop.f32.mrb[8].mxu0 }
 0x628   :  { %v8335_v1 = vpop.f32.mrb[8].mxu1  ;;  %v8337_v4 = vpop.f32.mrb[9].mxu0 }
 0x629   :  { %v8339_v56 = vpop.f32.mrb[9].mxu1  ;;  %v5310_v23 = vpack.c.bf16 %v8333_v17, %v8337_v4 }
 0x62b   :  { %v8345_v43 = vpop.f32.mrb[10].mxu0 }
 0x62c   :  { %v8347_v45 = vpop.f32.mrb[10].mxu1  ;;  %v8349_v53 = vpop.f32.mrb[11].mxu0 }
 0x62d   :  { %v8351_v32 = vpop.f32.mrb[11].mxu1  ;;  %v5314_v59 = vpack.c.bf16 %v8345_v43, %v8349_v53 }
 0x62f   :  { %v8357_v30 = vpop.f32.mrb[12].mxu0 }
 0x630   :  { %v8359_v22 = vpop.f32.mrb[12].mxu1  ;;  %v8361_v10 = vpop.f32.mrb[13].mxu0 }
 0x631   :  { %v8363_v8 = vpop.f32.mrb[13].mxu1  ;;  %v5318_v37 = vpack.c.bf16 %v8357_v30, %v8361_v10 }
 0x633   :  { %v8369_v27 = vpop.f32.mrb[14].mxu0 }
 0x634   :  { %v8371_v21 = vpop.f32.mrb[14].mxu1  ;;  %v8373_v51 = vpop.f32.mrb[15].mxu0 }
 0x635   :  { %v8375_v49 = vpop.f32.mrb[15].mxu1  ;;  %v5322_v12 = vpack.c.bf16 %v8369_v27, %v8373_v51 }
 0x637   :  { %v8381_v57 = vpop.f32.mrb[16].mxu0 }
 0x638   :  { %v8383_v34 = vpop.f32.mrb[16].mxu1  ;;  %v8385_v9 = vpop.f32.mrb[17].mxu0 }
 0x639   :  { %v8387_v36 = vpop.f32.mrb[17].mxu1  ;;  %v5326_v18 = vpack.c.bf16 %v8381_v57, %v8385_v9 }
 0x63b   :  { %v8393_v60 = vpop.f32.mrb[18].mxu0 }
 0x63c   :  { %v8395_v15 = vpop.f32.mrb[18].mxu1  ;;  %v8397_v39 = vpop.f32.mrb[19].mxu0 }
 0x63d   :  { %v8399_v16 = vpop.f32.mrb[19].mxu1  ;;  %v5330_v29 = vpack.c.bf16 %v8393_v60, %v8397_v39 }
 0x63f   :  { %v8405_v47 = vpop.f32.mrb[20].mxu0 }
 0x640   :  { %v8407_v28 = vpop.f32.mrb[20].mxu1  ;;  %v8409_v50 = vpop.f32.mrb[21].mxu0 }
 0x641   :  { %v8411_v24 = vpop.f32.mrb[21].mxu1  ;;  %v5300_v19 = vpack.c.bf16 %v8405_v47, %v8409_v50 }
 0x643   :  { %v8417_v0 = vpop.f32.mrb[22].mxu0  ;;  %5301 = vmatprep.subr.bf16.mxu1 %v5300_v19 }
 0x644   :  { %v8419_v61 = vpop.f32.mrb[22].mxu1  ;;  %v8421_v26 = vpop.f32.mrb[23].mxu0  ;;  %5303 = vmatpush3.bf16.msra.mxu1 %v5302_v25 }
 0x645   :  { %v8423_v48 = vpop.f32.mrb[23].mxu1  ;;  %v5304_v44 = vpack.c.bf16 %v8417_v0, %v8421_v26 }
 0x647   :  { %v8429_v7 = vpop.f32.mrb[24].mxu0  ;;  %5305 = vmatprep.subr.bf16.mxu1 %v5304_v44 }
 0x648   :  { %v8431_v31 = vpop.f32.mrb[24].mxu1  ;;  %v8433_v58 = vpop.f32.mrb[25].mxu0  ;;  %5307 = vmatpush3.bf16.msra.mxu1 %v5306_v63 }
 0x649   :  { %10341 = vst [vmem:[#allocation118_spill] sm:$0xff] %v8431_v31  ;;  %v8435_v20 = vpop.f32.mrb[25].mxu1  ;;  %v5308_v19 = vpack.c.bf16 %v8429_v7, %v8433_v58 }
 0x64a   :  { %v5362_v25 = vpack.c.bf16 %v8431_v31, %v8435_v20 }
 0x64b   :  { %v8441_v11 = vpop.f32.mrb[26].mxu0  ;;  %5309 = vmatprep.subr.bf16.mxu1 %v5308_v19 }
 0x64c   :  { %v8443_v3 = vpop.f32.mrb[26].mxu1  ;;  %v8445_v40 = vpop.f32.mrb[27].mxu0  ;;  %5311 = vmatpush3.bf16.msra.mxu1 %v5310_v23 }
 0x64d   :  { %10342 = vst [vmem:[#allocation117_spill] sm:$0xff] %v8443_v3  ;;  %v8447_v41 = vpop.f32.mrb[27].mxu1  ;;  %v5312_v44 = vpack.c.bf16 %v8441_v11, %v8445_v40 }
 0x64e   :  { %10343 = vst [vmem:[#allocation26_spill] sm:$0xff] %v8447_v41  ;;  %v5332_v63 = vpack.c.bf16 %v8443_v3, %v8447_v41  ;;  %v10348_v41 = vpack.c.bf16 %v8311_v42, %v8315_v55 }
 0x64f   :  { %v8453_v14 = vpop.f32.mrb[28].mxu0  ;;  %5313 = vmatprep.subr.bf16.mxu1 %v5312_v44 }
 0x650   :  { %v8455_v52 = vpop.f32.mrb[28].mxu1  ;;  %v8457_v35 = vpop.f32.mrb[29].mxu0  ;;  %5315 = vmatpush3.bf16.msra.mxu1 %v5314_v59 }
 0x651   :  { %10344 = vst [vmem:[#allocation68_spill] sm:$0xff] %v8455_v52  ;;  %v8459_v5 = vpop.f32.mrb[29].mxu1  ;;  %v5316_v19 = vpack.c.bf16 %v8453_v14, %v8457_v35 }
 0x652   :  { %10345 = vst [vmem:[#allocation110_spill] sm:$0xff] %v8459_v5  ;;  %v5336_v23 = vpack.c.bf16 %v8455_v52, %v8459_v5 }
 0x653   :  { %5317 = vmatprep.subr.bf16.mxu1 %v5316_v19  ;;  %v10350_v19 = vpack.c.bf16 %v8323_v54, %v8327_v38 }
 0x654   :  { %v8465_v13 = vpop.f32.mrb[30].mxu1  ;;  %5319 = vmatpush3.bf16.msra.mxu1 %v5318_v37 }
 0x655   :  { %10346 = vst [vmem:[#allocation70_spill] sm:$0xff] %v8465_v13  ;;  %v8467_v3 = vpop.f32.mrb[31].mxu1  ;;  %5321 = vmatprep.subr.bf16.mxu1 %v10348_v41 }
 0x656   :  { %10347 = vst [vmem:[#allocation114_spill] sm:$0xff] %v8467_v3  ;;  %v5340_v44 = vpack.c.bf16 %v8465_v13, %v8467_v3  ;;  %v10352_v13 = vpack.c.bf16 %v8335_v1, %v8339_v56 }
 0x658   :  { %v8474_v59 = vpop.f32.mrb[32].mxu1  ;;  %5323 = vmatpush3.bf16.msra.mxu1 %v5322_v12 }
 0x659   :  { %10349 = vst [vmem:[#allocation103_spill] sm:$0xff] %v8474_v59  ;;  %v8476_v31 = vpop.f32.mrb[33].mxu1  ;;  %5325 = vmatprep.subr.bf16.mxu1 %v10350_v19 }
 0x65a   :  { %v5344_v52 = vpack.c.bf16 %v8474_v59, %v8476_v31 }
 0x65c   :  { %v8483_v37 = vpop.f32.mrb[34].mxu1  ;;  %5327 = vmatpush3.bf16.msra.mxu1 %v5326_v18 }
 0x65d   :  { %10351 = vst [vmem:[#allocation14_spill] sm:$0xff] %v8483_v37  ;;  %v8485_v5 = vpop.f32.mrb[35].mxu1  ;;  %5329 = vmatprep.subr.bf16.mxu1 %v10352_v13 }
 0x65e   :  { %v5348_v41 = vpack.c.bf16 %v8483_v37, %v8485_v5  ;;  %v10356_v37 = vpack.c.bf16 %v8347_v45, %v8351_v32 }
 0x660   :  { %v8492_v12 = vpop.f32.mrb[36].mxu1  ;;  %5331 = vmatpush3.bf16.msra.mxu1 %v5330_v29 }
 0x661   :  { %10353 = vst [vmem:[#allocation120_spill] sm:$0xff] %v8492_v12  ;;  %v8494_v3 = vpop.f32.mrb[37].mxu1  ;;  %5333 = vmatprep.subr.bf16.mxu1 %v5332_v63  ;;  %v10359_v63 = vpack.c.bf16 %v8359_v22, %v8363_v8 }
 0x662   :  { %10354 = vst [vmem:[#allocation105_spill] sm:$0xff] %v8494_v3  ;;  %v5352_v19 = vpack.c.bf16 %v8492_v12, %v8494_v3 }
 0x663   :  { %3057 = vmatmul.mubr.f32.vlgmr.msra.gmra.mrb[42].mxu1 %v10340_v46 }
 0x664   :  { %v8498_v59 = vpop.f32.mrb[38].mxu1  ;;  %5335 = vmatpush3.bf16.msra.mxu1 %v10356_v37  ;;  %3126 = vmatprep.mubr.f32.mxu1 %v10340_v46  ;;  %v10360_v37 = vpack.c.bf16 %v8371_v21, %v8375_v49 }
 0x665   :  { %10355 = vst [vmem:[#allocation112_spill] sm:$0xff] %v8498_v59  ;;  %v8501_v18 = vpop.f32.mrb[39].mxu1  ;;  %5337 = vmatprep.subr.bf16.mxu1 %v5336_v23  ;;  %v10361_v23 = vpack.c.bf16 %v8383_v34, %v8387_v36 }
 0x666   :  { %v5356_v13 = vpack.c.bf16 %v8498_v59, %v8501_v18  ;;  %v10362_v59 = vpack.c.bf16 %v8395_v15, %v8399_v16 }
 0x668   :  { %v8509_v29 = vpop.f32.mrb[40].mxu1  ;;  %5339 = vmatpush3.bf16.msra.mxu1 %v10359_v63  ;;  %v10363_v63 = vpack.c.bf16 %v8407_v28, %v8411_v24 }
 0x669   :  { %10357 = vst [vmem:[#allocation17_spill] sm:$0xff] %v8509_v29  ;;  %v8511_v12 = vpop.f32.mrb[41].mxu1  ;;  %5341 = vmatprep.subr.bf16.mxu1 %v5340_v44  ;;  %v10364_v44 = vpack.c.bf16 %v8419_v61, %v8423_v48 }
 0x66a   :  { %10358 = vst [vmem:[#allocation74_spill] sm:$0xff] %v8511_v12  ;;  %v5360_v3 = vpack.c.bf16 %v8509_v29, %v8511_v12 }
 0x66c   :  { %5343 = vmatpush3.bf16.msra.mxu1 %v10360_v37 }
 0x66d   :  { %5345 = vmatprep.subr.bf16.mxu1 %v5344_v52 }
 0x670   :  { %5347 = vmatpush3.bf16.msra.mxu1 %v10361_v23 }
 0x671   :  { %5349 = vmatprep.subr.bf16.mxu1 %v5348_v41 }
 0x674   :  { %5351 = vmatpush3.bf16.msra.mxu1 %v10362_v59 }
 0x675   :  { %5353 = vmatprep.subr.bf16.mxu1 %v5352_v19 }
 0x678   :  { %5355 = vmatpush3.bf16.msra.mxu1 %v10363_v63  ;;  %v10365_v63 = vld [vmem:[#allocation60_spill] sm:$0xff] }
 0x679   :  { %5357 = vmatprep.subr.bf16.mxu1 %v5356_v13 }
 0x67c   :  { %5359 = vmatpush3.bf16.msra.mxu1 %v10364_v44 }
 0x67d   :  { %5361 = vmatprep.subr.bf16.mxu1 %v5360_v3 }
 0x680   :  { %5363 = vmatpush3.bf16.msra.mxu1 %v5362_v25 }
 0x683   :  { %3127 = vmatmul.mubr.f32.vlgmr.msra.gmra.mrb[44].mxu1 %v10340_v46 }
 0x684   :  { %3329 = vmatprep.mubr.f32.mxu1 %v10340_v46 }
 0x736   :  { %v4780_v52 = vpop.f32.mrb[42].mxu1 }
 0x737   :  { %v4781_v41 = vpop.f32.mrb[43].mxu1 }
 0x738   :  { %v4782_v37 = vadd.f32 %v4781_v41, %v4780_v52  ;;  %v10387_v41 = vld [vmem:[#allocation26_spill] sm:$0xff] }
 0x756   :  { %v4815_v59 = vpop.f32.mrb[44].mxu1 }
 0x757   :  { %v4816_v19 = vpop.f32.mrb[45].mxu1 }
 0x758   :  { %v4817_v23 = vadd.f32 %v4816_v19, %v4815_v59  ;;  %v10389_v59 = vld [vmem:[#allocation110_spill] sm:$0xff]  ;;  %v10390_v19 = vld [vmem:[#allocation68_spill] sm:$0xff] }
 0x75a   :  { %v3129_v29 = vadd.f32 %v4817_v23, %v4782_v37  ;;  %v10388_v37 = vld [vmem:[#allocation117_spill] sm:$0xff]  ;;  %v10391_v23 = vld [vmem:[#allocation114_spill] sm:$0xff] }
 0x75c   :  { %v3132_v12 = vmul.f32 0.001953125, %v3129_v29  ;;  %v10385_v29 = vld [vmem:[#allocation118_spill] sm:$0xff] }
 0x75e   :  { %v8536_v13 = vrot.slane %v3132_v12, %v10365_v63  ;;  %v10392_v63 = vld [vmem:[#allocation70_spill] sm:$0xff] }
 0x760   :  { %v8540_v44 = vsub.f32 %v8313_v33, %v8536_v13  ;;  %v8544_v3 = vsub.f32 %v8309_v2, %v8536_v13  ;;  %v8548_v25 = vsub.f32 %v8325_v6, %v8536_v13  ;;  %v8552_v52 = vsub.f32 %v8321_v62, %v8536_v13 }
 0x761   :  { %v8556_v12 = vsub.f32 %v8337_v4, %v8536_v13  ;;  %v8560_v33 = vsub.f32 %v8333_v17, %v8536_v13  ;;  %v8564_v2 = vsub.f32 %v8349_v53, %v8536_v13  ;;  %v8568_v6 = vsub.f32 %v8345_v43, %v8536_v13 }
 0x762   :  { %10366 = vst [vmem:[#allocation71_spill] sm:$0xff] %v8540_v44  ;;  %10367 = vst [vmem:[#allocation28_spill] sm:$0xff] %v8544_v3  ;;  %v8572_v62 = vsub.f32 %v8361_v10, %v8536_v13  ;;  %v8576_v4 = vsub.f32 %v8357_v30, %v8536_v13  ;;  %v8580_v17 = vsub.f32 %v8373_v51, %v8536_v13 }
 0x763   :  { %v8584_v53 = vsub.f32 %v8369_v27, %v8536_v13  ;;  %v8588_v43 = vsub.f32 %v8385_v9, %v8536_v13  ;;  %v8592_v10 = vsub.f32 %v8381_v57, %v8536_v13  ;;  %v8596_v30 = vsub.f32 %v8397_v39, %v8536_v13 }
 0x764   :  { %v8600_v51 = vsub.f32 %v8393_v60, %v8536_v13  ;;  %v8604_v27 = vsub.f32 %v8409_v50, %v8536_v13  ;;  %v8608_v9 = vsub.f32 %v8405_v47, %v8536_v13  ;;  %v8612_v57 = vsub.f32 %v8421_v26, %v8536_v13 }
 0x765   :  { %v8616_v39 = vsub.f32 %v8417_v0, %v8536_v13  ;;  %v8620_v60 = vsub.f32 %v8433_v58, %v8536_v13  ;;  %v8624_v50 = vsub.f32 %v8429_v7, %v8536_v13  ;;  %v8628_v47 = vsub.f32 %v8445_v40, %v8536_v13 }
 0x766   :  { %10368 = vst [vmem:[#allocation72_spill] sm:$0xff] %v8604_v27  ;;  %10369 = vst [vmem:[#allocation107_spill] sm:$0xff] %v8608_v9  ;;  %v8632_v26 = vsub.f32 %v8441_v11, %v8536_v13  ;;  %v8636_v0 = vsub.f32 %v8457_v35, %v8536_v13  ;;  %v8640_v58 = vsub.f32 %v8453_v14, %v8536_v13 }
 0x767   :  { %10370 = vst [vmem:[#allocation73_spill] sm:$0xff] %v8612_v57  ;;  %10371 = vst [vmem:[#allocation30_spill] sm:$0xff] %v8616_v39  ;;  %v8644_v7 = vsub.f32 %v8315_v55, %v8536_v13  ;;  %v8648_v40 = vsub.f32 %v8311_v42, %v8536_v13  ;;  %v8652_v11 = vsub.f32 %v8327_v38, %v8536_v13 }
 0x768   :  { %10372 = vst [vmem:[#allocation109_spill] sm:$0xff] %v8620_v60  ;;  %v8656_v35 = vsub.f32 %v8323_v54, %v8536_v13  ;;  %v8660_v14 = vsub.f32 %v8339_v56, %v8536_v13  ;;  %v8664_v55 = vsub.f32 %v8335_v1, %v8536_v13  ;;  %v8668_v42 = vsub.f32 %v8351_v32, %v8536_v13 }
 0x769   :  { %10373 = vst [vmem:[#allocation32_spill] sm:$0xff] %v8648_v40  ;;  %10374 = vst [vmem:[#allocation111_spill] sm:$0xff] %v8652_v11  ;;  %v8672_v38 = vsub.f32 %v8347_v45, %v8536_v13  ;;  %v8676_v54 = vsub.f32 %v8363_v8, %v8536_v13  ;;  %v8680_v56 = vsub.f32 %v8359_v22, %v8536_v13 }
 0x76a   :  { %10375 = vst [vmem:[#allocation39_spill] sm:$0xff] %v8656_v35  ;;  %10376 = vst [vmem:[#allocation121_spill] sm:$0xff] %v8660_v14  ;;  %v8684_v1 = vsub.f32 %v8375_v49, %v8536_v13  ;;  %v8688_v32 = vsub.f32 %v8371_v21, %v8536_v13  ;;  %v8692_v45 = vsub.f32 %v8387_v36, %v8536_v13 }
 0x76b   :  { %10377 = vst [vmem:[#allocation33_spill] sm:$0xff] %v8664_v55  ;;  %10378 = vst [vmem:[#allocation75_spill] sm:$0xff] %v8668_v42  ;;  %v8696_v8 = vsub.f32 %v8383_v34, %v8536_v13  ;;  %v8700_v22 = vsub.f32 %v8399_v16, %v8536_v13  ;;  %v8704_v49 = vsub.f32 %v8395_v15, %v8536_v13 }
 0x76c   :  { %v8708_v21 = vsub.f32 %v8411_v24, %v8536_v13  ;;  %v8712_v36 = vsub.f32 %v8407_v28, %v8536_v13  ;;  %v8716_v34 = vsub.f32 %v8423_v48, %v8536_v13  ;;  %v8720_v16 = vsub.f32 %v8419_v61, %v8536_v13 }
 0x76d   :  { %10379 = vst [vmem:[#allocation113_spill] sm:$0xff] %v8704_v49  ;;  %v8724_v15 = vsub.f32 %v8435_v20, %v8536_v13  ;;  %v8728_v24 = vsub.f32 %v10385_v29, %v8536_v13  ;;  %v8732_v28 = vsub.f32 %v10387_v41, %v8536_v13  ;;  %v8736_v48 = vsub.f32 %v10388_v37, %v8536_v13  ;;  %v10403_v49 = vld [vmem:[#allocation17_spill] sm:$0xff] }
 0x76e   :  { %10380 = vst [vmem:[#allocation35_spill] sm:$0xff] %v8708_v21  ;;  %10381 = vst [vmem:[#allocation115_spill] sm:$0xff] %v8712_v36  ;;  %v8740_v61 = vsub.f32 %v10389_v59, %v8536_v13  ;;  %v8744_v20 = vsub.f32 %v10390_v19, %v8536_v13  ;;  %v8748_v29 = vsub.f32 %v10391_v23, %v8536_v13  ;;  %v10399_v36 = vld [vmem:[#allocation112_spill] sm:$0xff]  ;;  %v10401_v21 = vld [vmem:[#allocation74_spill] sm:$0xff] }
 0x76f   :  { %10382 = vst [vmem:[#allocation40_spill] sm:$0xff] %v8716_v34  ;;  %10383 = vst [vmem:[#allocation123_spill] sm:$0xff] %v8720_v16  ;;  %v8752_v41 = vsub.f32 %v10392_v63, %v8536_v13  ;;  %v8756_v37 = vsub.f32 %v8476_v31, %v8536_v13  ;;  %v8764_v19 = vsub.f32 %v8485_v5, %v8536_v13  ;;  %v10395_v16 = vld [vmem:[#allocation105_spill] sm:$0xff]  ;;  %v10396_v34 = vld [vmem:[#allocation120_spill] sm:$0xff] }
 0x770   :  { %10384 = vst [vmem:[#allocation125_spill] sm:$0xff] %v8724_v15  ;;  %10386 = vst [vmem:[#allocation37_spill] sm:$0xff] %v8728_v24  ;;  %v10393_v24 = vld [vmem:[#allocation103_spill] sm:$0xff]  ;;  %v10394_v15 = vld [vmem:[#allocation14_spill] sm:$0xff]  ;;  %v8772_v63 = vsub.f32 %v10395_v16, %v8536_v13  ;;  %v8776_v31 = vsub.f32 %v10396_v34, %v8536_v13  ;;  %v8784_v5 = vsub.f32 %v10399_v36, %v8536_v13 }
 0x771   :  { %v8760_v59 = vsub.f32 %v10393_v24, %v8536_v13  ;;  %v8768_v23 = vsub.f32 %v10394_v15, %v8536_v13  ;;  %v8780_v24 = vsub.f32 %v8501_v18, %v8536_v13  ;;  %v8788_v15 = vsub.f32 %v10401_v21, %v8536_v13 }
 0x772   :  { %10397 = vst [vmem:[#allocation76_spill] sm:$0xff] %v8776_v31  ;;  %10400 = vst [vmem:[#allocation116_spill] sm:$0xff] %v8784_v5  ;;  %v8792_v16 = vsub.f32 %v10403_v49, %v8536_v13  ;;  %v3201_v34 = vmul.f32 %v8540_v44, %v8540_v44  ;;  %v3202_v31 = vmul.f32 %v8544_v3, %v8544_v3 }
 0x773   :  { %10398 = vst [vmem:[#allocation77_spill] sm:$0xff] %v8780_v24  ;;  %10402 = vst [vmem:[#allocation119_spill] sm:$0xff] %v8788_v15  ;;  %v3217_v18 = vmul.f32 %v8604_v27, %v8604_v27  ;;  %v3218_v36 = vmul.f32 %v8608_v9, %v8608_v9  ;;  %v3219_v21 = vmul.f32 %v8612_v57, %v8612_v57 }
 0x774   :  { %v3220_v15 = vmul.f32 %v8616_v39, %v8616_v39  ;;  %v5366_v49 = vpack.c.bf16 %v3202_v31, %v3201_v34  ;;  %v3203_v44 = vmul.f32 %v8548_v25, %v8548_v25  ;;  %v3204_v3 = vmul.f32 %v8552_v52, %v8552_v52 }
 0x775   :  { %v5364_v13 = vpack.c.bf16 %v3218_v36, %v3217_v18  ;;  %v3221_v27 = vmul.f32 %v8620_v60, %v8620_v60  ;;  %v3222_v9 = vmul.f32 %v8624_v50, %v8624_v50  ;;  %v3205_v39 = vmul.f32 %v8556_v12, %v8556_v12 }
 0x776   :  { %v5368_v57 = vpack.c.bf16 %v3220_v15, %v3219_v21  ;;  %v3206_v31 = vmul.f32 %v8560_v33, %v8560_v33  ;;  %v5370_v34 = vpack.c.bf16 %v3204_v3, %v3203_v44  ;;  %v3223_v18 = vmul.f32 %v8628_v47, %v8628_v47 }
 0x777   :  { %5365 = vmatprep.subr.bf16.mxu1 %v5364_v13  ;;  %v3224_v36 = vmul.f32 %v8632_v26, %v8632_v26  ;;  %v5372_v60 = vpack.c.bf16 %v3222_v9, %v3221_v27  ;;  %v3207_v15 = vmul.f32 %v8564_v2, %v8564_v2  ;;  %v3208_v21 = vmul.f32 %v8568_v6, %v8568_v6 }
 0x778   :  { %5367 = vmatpush3.bf16.msra.mxu1 %v5366_v49  ;;  %v5374_v13 = vpack.c.bf16 %v3206_v31, %v3205_v39  ;;  %v3225_v44 = vmul.f32 %v8636_v0, %v8636_v0  ;;  %v3226_v3 = vmul.f32 %v8640_v58, %v8640_v58  ;;  %v3209_v27 = vmul.f32 %v8572_v62, %v8572_v62 }
 0x779   :  { %5369 = vmatprep.subr.bf16.mxu1 %v5368_v57  ;;  %v5376_v49 = vpack.c.bf16 %v3224_v36, %v3223_v18  ;;  %v3210_v9 = vmul.f32 %v8576_v4, %v8576_v4  ;;  %v5378_v57 = vpack.c.bf16 %v3208_v21, %v3207_v15  ;;  %v3228_v39 = vmul.f32 %v8648_v40, %v8648_v40 }
 0x77a   :  { %v5380_v31 = vpack.c.bf16 %v3226_v3, %v3225_v44  ;;  %v3212_v18 = vmul.f32 %v8584_v53, %v8584_v53  ;;  %v3230_v15 = vmul.f32 %v8656_v35, %v8656_v35  ;;  %v3213_v44 = vmul.f32 %v8588_v43, %v8588_v43  ;;  %v10408_v35 = vld [vmem:[#allocation40_spill] sm:$0xff] }
 0x77b   :  { %v5382_v36 = vpack.c.bf16 %v3210_v9, %v3209_v27  ;;  %v3214_v3 = vmul.f32 %v8592_v10, %v8592_v10  ;;  %v3232_v27 = vmul.f32 %v8664_v55, %v8664_v55  ;;  %v10406_v55 = vld [vmem:[#allocation35_spill] sm:$0xff] }
 0x77c   :  { %5371 = vmatpush3.bf16.msra.mxu1 %v5370_v34  ;;  %v3211_v34 = vmul.f32 %v8580_v17, %v8580_v17 }
 0x77d   :  { %5373 = vmatprep.subr.bf16.mxu1 %v5372_v60  ;;  %v3227_v60 = vmul.f32 %v8644_v7, %v8644_v7 }
 0x77f   :  { %v5384_v21 = vpack.c.bf16 %v3228_v39, %v3227_v60  ;;  %v3215_v60 = vmul.f32 %v8596_v30, %v8596_v30  ;;  %v3216_v39 = vmul.f32 %v8600_v51, %v8600_v51 }
 0x780   :  { %5375 = vmatpush3.bf16.msra.mxu1 %v5374_v13  ;;  %v3229_v13 = vmul.f32 %v8652_v11, %v8652_v11  ;;  %v10410_v11 = vld [vmem:[#allocation119_spill] sm:$0xff] }
 0x781   :  { %5377 = vmatprep.subr.bf16.mxu1 %v5376_v49  ;;  %v5386_v49 = vpack.c.bf16 %v3212_v18, %v3211_v34  ;;  %v3250_v34 = vmul.f32 %v8736_v48, %v8736_v48  ;;  %v3263_v40 = vmul.f32 %v10410_v11, %v10410_v11 }
 0x782   :  { %v5388_v9 = vpack.c.bf16 %v3230_v15, %v3229_v13  ;;  %v3233_v13 = vmul.f32 %v8668_v42, %v8668_v42  ;;  %v3234_v15 = vmul.f32 %v8672_v38, %v8672_v38 }
 0x784   :  { %5379 = vmatpush3.bf16.msra.mxu1 %v5378_v57  ;;  %v3231_v57 = vmul.f32 %v8660_v14, %v8660_v14  ;;  %v3261_v14 = vmul.f32 %v8780_v24, %v8780_v24 }
 0x785   :  { %5381 = vmatprep.subr.bf16.mxu1 %v5380_v31  ;;  %v5390_v31 = vpack.c.bf16 %v3214_v3, %v3213_v44  ;;  %v3252_v44 = vmul.f32 %v8744_v20, %v8744_v20 }
 0x786   :  { %v5392_v18 = vpack.c.bf16 %v3232_v27, %v3231_v57  ;;  %v3235_v57 = vmul.f32 %v8676_v54, %v8676_v54  ;;  %v3236_v27 = vmul.f32 %v8680_v56, %v8680_v56 }
 0x788   :  { %5383 = vmatpush3.bf16.msra.mxu1 %v5382_v36  ;;  %v3249_v36 = vmul.f32 %v8732_v28, %v8732_v28 }
 0x789   :  { %5385 = vmatprep.subr.bf16.mxu1 %v5384_v21  ;;  %v5394_v21 = vpack.c.bf16 %v3216_v39, %v3215_v60  ;;  %v3254_v60 = vmul.f32 %v8752_v41, %v8752_v41 }
 0x78a   :  { %v5396_v3 = vpack.c.bf16 %v3250_v34, %v3249_v36  ;;  %v3237_v36 = vmul.f32 %v8684_v1, %v8684_v1  ;;  %v3238_v34 = vmul.f32 %v8688_v32, %v8688_v32 }
 0x78c   :  { %5387 = vmatpush3.bf16.msra.mxu1 %v5386_v49  ;;  %v3251_v49 = vmul.f32 %v8740_v61, %v8740_v61 }
 0x78d   :  { %5389 = vmatprep.subr.bf16.mxu1 %v5388_v9  ;;  %v5398_v9 = vpack.c.bf16 %v3234_v15, %v3233_v13  ;;  %v3255_v13 = vmul.f32 %v8756_v37, %v8756_v37  ;;  %v3256_v15 = vmul.f32 %v8760_v59, %v8760_v59 }
 0x78e   :  { %v5400_v39 = vpack.c.bf16 %v3252_v44, %v3251_v49  ;;  %v3239_v49 = vmul.f32 %v8692_v45, %v8692_v45  ;;  %v3240_v44 = vmul.f32 %v8696_v8, %v8696_v8 }
 0x790   :  { %5391 = vmatpush3.bf16.msra.mxu1 %v5390_v31  ;;  %v3253_v31 = vmul.f32 %v8748_v29, %v8748_v29 }
 0x791   :  { %5393 = vmatprep.subr.bf16.mxu1 %v5392_v18  ;;  %v5402_v18 = vpack.c.bf16 %v3236_v27, %v3235_v57  ;;  %v3258_v57 = vmul.f32 %v8768_v23, %v8768_v23  ;;  %v5408_v27 = vpack.c.bf16 %v3256_v15, %v3255_v13  ;;  %v3243_v13 = vmul.f32 %v10406_v55, %v10406_v55  ;;  %v10407_v15 = vld [vmem:[#allocation115_spill] sm:$0xff] }
 0x794   :  { %5395 = vmatpush3.bf16.msra.mxu1 %v5394_v21  ;;  %v5404_v21 = vpack.c.bf16 %v3254_v60, %v3253_v31  ;;  %v3241_v31 = vmul.f32 %v8700_v22, %v8700_v22  ;;  %v10404_v60 = vld [vmem:[#allocation113_spill] sm:$0xff] }
 0x795   :  { %5397 = vmatprep.subr.bf16.mxu1 %v5396_v3  ;;  %v5406_v3 = vpack.c.bf16 %v3238_v34, %v3237_v36  ;;  %v10405_v36 = vld [vmem:[#allocation76_spill] sm:$0xff] }
 0x796   :  { %v3260_v34 = vmul.f32 %v10405_v36, %v10405_v36 }
 0x797   :  { %3330 = vmatmul.mubr.f32.vlgmr.msra.gmra.mrb[46].mxu1 %v10340_v46 }
 0x798   :  { %5399 = vmatpush3.bf16.msra.mxu1 %v5398_v9  ;;  %3399 = vmatprep.mubr.f32.mxu1 %v10340_v46  ;;  %v3257_v9 = vmul.f32 %v8764_v19, %v8764_v19 }
 0x799   :  { %5401 = vmatprep.subr.bf16.mxu1 %v5400_v39  ;;  %v3242_v39 = vmul.f32 %v10404_v60, %v10404_v60 }
 0x79a   :  { %v5412_v42 = vpack.c.bf16 %v3258_v57, %v3257_v9  ;;  %v3245_v9 = vmul.f32 %v10408_v35, %v10408_v35 }
 0x79c   :  { %5403 = vmatpush3.bf16.msra.mxu1 %v5402_v18  ;;  %v5410_v18 = vpack.c.bf16 %v3240_v44, %v3239_v49  ;;  %v3262_v49 = vmul.f32 %v8784_v5, %v8784_v5  ;;  %v10411_v5 = vld [vmem:[#allocation125_spill] sm:$0xff] }
 0x79d   :  { %5405 = vmatprep.subr.bf16.mxu1 %v5404_v21  ;;  %v3259_v21 = vmul.f32 %v8772_v63, %v8772_v63 }
 0x79f   :  { %v5416_v44 = vpack.c.bf16 %v3260_v34, %v3259_v21  ;;  %v3247_v21 = vmul.f32 %v10411_v5, %v10411_v5  ;;  %v10412_v34 = vld [vmem:[#allocation37_spill] sm:$0xff] }
 0x7a0   :  { %5407 = vmatpush3.bf16.msra.mxu1 %v5406_v3  ;;  %v3244_v3 = vmul.f32 %v10407_v15, %v10407_v15 }
 0x7a1   :  { %5409 = vmatprep.subr.bf16.mxu1 %v5408_v27  ;;  %v5414_v27 = vpack.c.bf16 %v3242_v39, %v3241_v31  ;;  %v3264_v31 = vmul.f32 %v8792_v16, %v8792_v16  ;;  %v5420_v39 = vpack.c.bf16 %v3262_v49, %v3261_v14  ;;  %v3738_v14 = vld [vmem:[%s9806_s3] sm:$0xff] }
 0x7a3   :  { %v5424_v24 = vpack.c.bf16 %v3264_v31, %v3263_v40  ;;  %v3741_v40 = vld [vmem:[%s9806_s3 + $0x18] sm:$0xff] }
 0x7a4   :  { %5411 = vmatpush3.bf16.msra.mxu1 %v5410_v18  ;;  %v5418_v18 = vpack.c.bf16 %v3244_v3, %v3243_v13  ;;  %v3739_v3 = vld [vmem:[%s9806_s3 + $0x8] sm:$0xff] }
 0x7a5   :  { %5413 = vmatprep.subr.bf16.mxu1 %v5412_v42  ;;  %v10409_v42 = vld [vmem:[#allocation123_spill] sm:$0xff]  ;;  %v5428_v49 = vpack.c.bf16 %v3739_v3, %v3738_v14  ;;  %v41_v3 = vld [vmem:[%s9807_s4 + $0x2] sm:$0x1] }
 0x7a6   :  { %v3246_v57 = vmul.f32 %v10409_v42, %v10409_v42 }
 0x7a7   :  { %5429 = vmatprep.subr.bf16.mxu0 %v5428_v49 }
 0x7a8   :  { %5415 = vmatpush3.bf16.msra.mxu1 %v5414_v27  ;;  %v3248_v27 = vmul.f32 %v10412_v34, %v10412_v34  ;;  %5431 = vmatpush3.bf16.msra.mxu0 %v5428_v49  ;;  %v10413_v49 = vld [vmem:[#allocation60_spill] sm:$0xff] }
 0x7a9   :  { %5417 = vmatprep.subr.bf16.mxu1 %v5416_v44  ;;  %v5422_v44 = vpack.c.bf16 %v3246_v57, %v3245_v9  ;;  %v3740_v9 = vld [vmem:[%s9806_s3 + $0x10] sm:$0xff]  ;;  %s4404_s3 = sld [smem:[#allocation2 + $0x1]] }
 0x7aa   :  { %v5426_v13 = vpack.c.bf16 %v3248_v27, %v3247_v21 }
 0x7ac   :  { %5419 = vmatpush3.bf16.msra.mxu1 %v5418_v18 }
 0x7ad   :  { %5421 = vmatprep.subr.bf16.mxu1 %v5420_v39 }
 0x7b0   :  { %5423 = vmatpush3.bf16.msra.mxu1 %v5422_v44 }
 0x7b1   :  { %5425 = vmatprep.subr.bf16.mxu1 %v5424_v24  ;;  %v5432_v24 = vpack.c.bf16 %v3741_v40, %v3740_v9 }
 0x7b3   :  { %5433 = vmatprep.subr.bf16.mxu0 %v5432_v24 }
 0x7b4   :  { %5427 = vmatpush3.bf16.msra.mxu1 %v5426_v13  ;;  %5435 = vmatpush3.bf16.msra.mxu0 %v5432_v24  ;;  %v8943_v24 = vstv %s4404_s3 }
 0x7b7   :  { %3400 = vmatmul.mubr.f32.vlgmr.msra.gmra.mrb[48].mxu1 %v10340_v46 }
 0x86a   :  { %v4850_v46 = vpop.f32.mrb[46].mxu1 }
 0x86b   :  { %v4851_v57 = vpop.f32.mrb[47].mxu1 }
 0x86c   :  { %v4852_v18 = vadd.f32 %v4851_v57, %v4850_v46  ;;  %v10414_v46 = vld [vmem:[#allocation71_spill] sm:$0xff] }
 0x88a   :  { %v4885_v31 = vpop.f32.mrb[48].mxu1 }
 0x88b   :  { %v4886_v39 = vpop.f32.mrb[49].mxu1 }
 0x88c   :  { %v4887_v21 = vadd.f32 %v4886_v39, %v4885_v31  ;;  %v10415_v31 = vld [vmem:[#allocation28_spill] sm:$0xff] }
 0x88e   :  { %v3402_v27 = vadd.f32 %v4887_v21, %v4852_v18 }
 0x890   :  { %v3405_v44 = vmul.f32 0.001953125, %v3402_v27 }
 0x892   :  { %v3406_v13 = vadd.f32 1e-05, %v3405_v44 }
 0x894   :  { %5510 = vrsqrt.f32 %v3406_v13 }
 0x89e   :  { %v5511_v14 = vpop.eup %5510 }
 0x89f   :  { %v3408_v9 = vmul.f32 %v5511_v14, %v41_v3  ;;  %v10417_v3 = vld [vmem:[#allocation107_spill] sm:$0xff] }
 0x8a1   :  { %v8941_v40 = vrot.slane %v3408_v9, %v10413_v49  ;;  %v10418_v9 = vld [vmem:[#allocation73_spill] sm:$0xff]  ;;  %v10419_v49 = vld [vmem:[#allocation30_spill] sm:$0xff] }
 0x8a3   :  { %v3413_v57 = vmul.f32 %v8941_v40, %v10414_v46  ;;  %v3414_v18 = vmul.f32 %v8941_v40, %v10415_v31  ;;  %v3415_v39 = vmul.f32 %v8941_v40, %v8548_v25  ;;  %v3416_v21 = vmul.f32 %v8941_v40, %v8552_v52  ;;  %v10420_v46 = vld [vmem:[#allocation109_spill] sm:$0xff] }
 0x8a4   :  { %v3417_v27 = vmul.f32 %v8941_v40, %v8556_v12  ;;  %v8957_v44 = vmul.f32 %v8941_v40, %v8560_v33  ;;  %v8961_v13 = vmul.f32 %v8941_v40, %v8564_v2  ;;  %v8965_v14 = vmul.f32 %v8941_v40, %v8568_v6 }
 0x8a5   :  { %v8969_v25 = vmul.f32 %v8941_v40, %v8572_v62  ;;  %v8973_v52 = vmul.f32 %v8941_v40, %v8576_v4  ;;  %v8977_v12 = vmul.f32 %v8941_v40, %v8580_v17  ;;  %v8981_v33 = vmul.f32 %v8941_v40, %v8584_v53  ;;  %v10416_v17 = vld [vmem:[#allocation72_spill] sm:$0xff] }
 0x8a6   :  { %v8985_v2 = vmul.f32 %v8941_v40, %v8588_v43  ;;  %v8989_v6 = vmul.f32 %v8941_v40, %v8592_v10  ;;  %v8993_v62 = vmul.f32 %v8941_v40, %v8596_v30  ;;  %v8997_v4 = vmul.f32 %v8941_v40, %v8600_v51 }
 0x8a7   :  { %v9001_v53 = vmul.f32 %v8941_v40, %v10416_v17  ;;  %v9005_v43 = vmul.f32 %v8941_v40, %v10417_v3  ;;  %v9009_v10 = vmul.f32 %v8941_v40, %v10418_v9  ;;  %v9013_v30 = vmul.f32 %v8941_v40, %v10419_v49 }
 0x8a8   :  { %v9017_v51 = vmul.f32 %v8941_v40, %v10420_v46  ;;  %v9021_v31 = vmul.f32 %v8941_v40, %v8624_v50  ;;  %v9025_v17 = vmul.f32 %v8941_v40, %v8628_v47  ;;  %v9029_v3 = vmul.f32 %v8941_v40, %v8632_v26 }
 0x8a9   :  { %v9033_v9 = vmul.f32 %v8941_v40, %v8636_v0  ;;  %v9037_v49 = vmul.f32 %v8941_v40, %v8640_v58  ;;  %v9041_v50 = vmul.f32 %v8941_v40, %v8644_v7  ;;  %v3446_v47 = vmul.f32 %v8941_v40, %v8672_v38 }
 0x8aa   :  { %10421 = vst [vmem:[#allocation43_spill] sm:$0xff] %v9025_v17  ;;  %10422 = vst [vmem:[#allocation127_spill] sm:$0xff] %v9029_v3  ;;  %v3447_v46 = vmul.f32 %v8941_v40, %v8676_v54  ;;  %v3448_v26 = vmul.f32 %v8941_v40, %v8680_v56  ;;  %v3449_v0 = vmul.f32 %v8941_v40, %v8684_v1  ;;  %v10427_v3 = vld [vmem:[#allocation116_spill] sm:$0xff] }
 0x8ab   :  { %10423 = vst [vmem:[#allocation78_spill] sm:$0xff] %v9033_v9  ;;  %10424 = vst [vmem:[#allocation44_spill] sm:$0xff] %v9037_v49  ;;  %v3450_v58 = vmul.f32 %v8941_v40, %v8688_v32  ;;  %v3451_v49 = vmul.f32 %v8941_v40, %v8692_v45  ;;  %v3452_v7 = vmul.f32 %v8941_v40, %v8696_v8  ;;  %v10426_v9 = vld [vmem:[#allocation77_spill] sm:$0xff] }
 0x8ac   :  { %10425 = vst [vmem:[#allocation9_spill] sm:$0xff] %v9041_v50  ;;  %v3453_v38 = vmul.f32 %v8941_v40, %v8700_v22  ;;  %v3454_v54 = vmul.f32 %v8941_v40, %v10404_v60  ;;  %v3455_v56 = vmul.f32 %v8941_v40, %v10406_v55  ;;  %v3456_v1 = vmul.f32 %v8941_v40, %v10407_v15 }
 0x8ad   :  { %v3457_v32 = vmul.f32 %v8941_v40, %v10408_v35  ;;  %v3458_v45 = vmul.f32 %v8941_v40, %v10409_v42  ;;  %v3459_v8 = vmul.f32 %v8941_v40, %v10411_v5  ;;  %v3460_v22 = vmul.f32 %v8941_v40, %v10412_v34  ;;  %v9084_v42 = vld [vmem:[%s9807_s4 + $0x3] ss:$0 sm:$0xff] }
 0x8ae   :  { %v3461_v60 = vmul.f32 %v8941_v40, %v8732_v28  ;;  %v3462_v55 = vmul.f32 %v8941_v40, %v8736_v48  ;;  %v3463_v15 = vmul.f32 %v8941_v40, %v8740_v61  ;;  %v3464_v35 = vmul.f32 %v8941_v40, %v8744_v20 }
 0x8af   :  { %v3465_v5 = vmul.f32 %v8941_v40, %v8748_v29  ;;  %v3466_v28 = vmul.f32 %v8941_v40, %v8752_v41  ;;  %v3467_v48 = vmul.f32 %v8941_v40, %v8756_v37  ;;  %v3468_v61 = vmul.f32 %v8941_v40, %v8760_v59 }
 0x8b0   :  { %v3469_v20 = vmul.f32 %v8941_v40, %v8764_v19  ;;  %v3470_v34 = vmul.f32 %v8941_v40, %v8768_v23  ;;  %v3471_v50 = vmul.f32 %v8941_v40, %v8772_v63  ;;  %v3472_v29 = vmul.f32 %v8941_v40, %v10405_v36 }
 0x8b1   :  { %v3473_v41 = vmul.f32 %v8941_v40, %v10426_v9  ;;  %v3474_v37 = vmul.f32 %v8941_v40, %v10427_v3  ;;  %v3475_v59 = vmul.f32 %v8941_v40, %v10410_v11  ;;  %v3476_v19 = vmul.f32 %v8941_v40, %v8792_v16 }
 0x8b2   :  { %v3481_v23 = vadd.f32 %v9084_v42, %v3413_v57  ;;  %v3482_v17 = vadd.f32 %v9084_v42, %v3414_v18  ;;  %v3483_v63 = vadd.f32 %v9084_v42, %v3415_v39  ;;  %v9114_v36 = vadd.f32 %v9084_v42, %v3416_v21 }
 0x8b3   :  { %v9117_v9 = vadd.f32 %v9084_v42, %v3417_v27  ;;  %v9120_v3 = vadd.f32 %v9084_v42, %v3446_v47  ;;  %v9123_v11 = vadd.f32 %v9084_v42, %v3447_v46  ;;  %v9126_v16 = vadd.f32 %v9084_v42, %v3448_v26 }
 0x8b4   :  { %v9129_v57 = vadd.f32 %v9084_v42, %v3449_v0  ;;  %v9132_v18 = vadd.f32 %v9084_v42, %v3450_v58  ;;  %v9135_v39 = vadd.f32 %v9084_v42, %v3451_v49  ;;  %v9138_v21 = vadd.f32 %v9084_v42, %v3452_v7 }
 0x8b5   :  { %v9141_v27 = vadd.f32 %v9084_v42, %v3453_v38  ;;  %v9144_v47 = vadd.f32 %v9084_v42, %v3454_v54  ;;  %v9147_v46 = vadd.f32 %v9084_v42, %v3455_v56  ;;  %v9150_v26 = vadd.f32 %v9084_v42, %v3456_v1 }
 0x8b6   :  { %v9153_v0 = vadd.f32 %v9084_v42, %v3457_v32  ;;  %v9156_v49 = vadd.f32 %v9084_v42, %v3458_v45  ;;  %v9159_v58 = vadd.f32 %v9084_v42, %v3459_v8  ;;  %v9162_v7 = vadd.f32 %v9084_v42, %v3460_v22 }
 0x8b7   :  { %v9165_v38 = vadd.f32 %v9084_v42, %v3461_v60  ;;  %v9168_v54 = vadd.f32 %v9084_v42, %v3462_v55  ;;  %v9171_v56 = vadd.f32 %v9084_v42, %v3463_v15  ;;  %v9174_v1 = vadd.f32 %v9084_v42, %v3464_v35 }
 0x8b8   :  { %v9177_v32 = vadd.f32 %v9084_v42, %v3465_v5  ;;  %v9180_v45 = vadd.f32 %v9084_v42, %v3466_v28  ;;  %v9183_v8 = vadd.f32 %v9084_v42, %v3467_v48  ;;  %v9186_v22 = vadd.f32 %v9084_v42, %v3468_v61 }
 0x8b9   :  { %v9189_v60 = vadd.f32 %v9084_v42, %v3469_v20  ;;  %v9192_v55 = vadd.f32 %v9084_v42, %v3470_v34  ;;  %v9195_v15 = vadd.f32 %v9084_v42, %v3471_v50  ;;  %v9198_v35 = vadd.f32 %v9084_v42, %v3472_v29  ;;  %v10434_v34 = vld [vmem:[#allocation32_spill] sm:$0xff] }
 0x8ba   :  { %v9201_v5 = vadd.f32 %v9084_v42, %v3473_v41  ;;  %v9204_v28 = vadd.f32 %v9084_v42, %v3474_v37  ;;  %v9207_v48 = vadd.f32 %v9084_v42, %v3475_v59  ;;  %v9210_v61 = vadd.f32 %v9084_v42, %v3476_v19  ;;  %v10435_v41 = vld [vmem:[#allocation111_spill] sm:$0xff]  ;;  %v10437_v19 = vld [vmem:[#allocation121_spill] sm:$0xff] }
 0x8bb   :  { %10428 = vst [vmem:[#allocation79_spill] sm:$0xff] %v9195_v15  ;;  %10429 = vst [vmem:[#allocation80_spill] sm:$0xff] %v9198_v35  ;;  %vm3546_vm5 = vcmp.ge.f32.partialorder %v3482_v17, 0.0  ;;  %v3611_v20 = vmul.f32 %v8943_v24, %v3482_v17  ;;  %vm3545_vm6 = vcmp.ge.f32.partialorder %v3481_v23, 0.0  ;;  %v3610_v50 = vmul.f32 %v8943_v24, %v3481_v23  ;;  %v10436_v59 = vld [vmem:[#allocation39_spill] sm:$0xff] }
 0x8bc   :  { %10430 = vst [vmem:[#allocation41_spill] sm:$0xff] %v9201_v5  ;;  %10431 = vst [vmem:[#allocation82_spill] sm:$0xff] %v9204_v28  ;;  %v3440_v29 = vmul.f32 %v8941_v40, %v10434_v34  ;;  %v3441_v5 = vmul.f32 %v8941_v40, %v10435_v41  ;;  %vm3547_vm7 = vcmp.ge.f32.partialorder %v3483_v63, 0.0  ;;  %v3612_v37 = vmul.f32 %v8943_v24, %v3483_v63 }
 0x8bd   :  { %10432 = vst [vmem:[#allocation84_spill] sm:$0xff] %v9207_v48  ;;  %10433 = vst [vmem:[#allocation46_spill] sm:$0xff] %v9210_v61  ;;  %v9221_v48 = vmul.f32 %v8941_v40, %v10436_v59  ;;  %v9225_v61 = vmul.f32 %v8941_v40, %v10437_v19  ;;  %v3674_v28 = vsel %vm3545_vm6, %v3481_v23, %v3610_v50  ;;  %vm3548_vm8 = vcmp.ge.f32.partialorder %v9114_v36, 0.0 }
 0x8be   :  { %v3675_v35 = vsel %vm3546_vm5, %v3482_v17, %v3611_v20  ;;  %v3486_v15 = vadd.f32 %v9084_v42, %v8957_v44  ;;  %v3487_v34 = vadd.f32 %v9084_v42, %v8961_v13  ;;  %v3488_v41 = vadd.f32 %v9084_v42, %v8965_v14  ;;  %5068 = vmatprep.mubr.msk.f32.mxu0 %vm2414_vm0, %v3674_v28  ;;  %v10439_v20 = vld [vmem:[#allocation127_spill] sm:$0xff] }
 0x8bf   :  { %v3613_v59 = vmul.f32 %v8943_v24, %v9114_v36  ;;  %v3489_v19 = vadd.f32 %v9084_v42, %v8969_v25  ;;  %5069 = vmatmul.mubr.msk.f32.vlgmr.msra.gmra.mrb[30].mxu0 %vm2414_vm0, %v3675_v35  ;;  %v3676_v17 = vsel %vm3547_vm7, %v3483_v63, %v3612_v37  ;;  %v3614_v44 = vmul.f32 %v8943_v24, %v9117_v9 }
 0x8c0   :  { %v3490_v13 = vadd.f32 %v9084_v42, %v8973_v52  ;;  %v3491_v14 = vadd.f32 %v9084_v42, %v8977_v12  ;;  %v3492_v23 = vadd.f32 %v9084_v42, %v8981_v33  ;;  %5071 = vmatprep.mubr.msk.f32.mxu0 %vm2414_vm0, %v3676_v17  ;;  %vm3549_vm9 = vcmp.ge.f32.partialorder %v9117_v9, 0.0 }
 0x8c1   :  { %v9252_v25 = vadd.f32 %v9084_v42, %v8985_v2  ;;  %v9256_v63 = vadd.f32 %v9084_v42, %v8989_v6  ;;  %v9260_v52 = vadd.f32 %v9084_v42, %v8993_v62  ;;  %v9264_v12 = vadd.f32 %v9084_v42, %v8997_v4 }
 0x8c2   :  { %v9268_v33 = vadd.f32 %v9084_v42, %v9001_v53  ;;  %v9272_v2 = vadd.f32 %v9084_v42, %v9005_v43  ;;  %v3677_v35 = vsel %vm3548_vm8, %v9114_v36, %v3613_v59  ;;  %v3615_v6 = vmul.f32 %v8943_v24, %v3486_v15 }
 0x8c3   :  { %v9278_v62 = vadd.f32 %v9084_v42, %v9009_v10  ;;  %5072 = vmatmul.mubr.msk.f32.gmra.mrb[32].mxu0 %vm2414_vm0, %v3677_v35  ;;  %v3678_v4 = vsel %vm3549_vm9, %v9117_v9, %v3614_v44  ;;  %vm3550_vm10 = vcmp.ge.f32.partialorder %v3486_v15, 0.0  ;;  %v3616_v53 = vmul.f32 %v8943_v24, %v3487_v34  ;;  %v10438_v10 = vld [vmem:[#allocation43_spill] sm:$0xff] }
 0x8c4   :  { %v9285_v28 = vadd.f32 %v9084_v42, %v9013_v30  ;;  %v9289_v43 = vadd.f32 %v9084_v42, %v9017_v51  ;;  %v9293_v36 = vadd.f32 %v9084_v42, %v9021_v31  ;;  %5074 = vmatprep.mubr.msk.f32.mxu0 %vm2414_vm0, %v3678_v4  ;;  %vm3551_vm11 = vcmp.ge.f32.partialorder %v3487_v34, 0.0  ;;  %v10440_v30 = vld [vmem:[#allocation78_spill] sm:$0xff]  ;;  %v10441_v4 = vld [vmem:[#allocation44_spill] sm:$0xff] }
 0x8c5   :  { %v9298_v9 = vadd.f32 %v9084_v42, %v10438_v10  ;;  %v9302_v50 = vadd.f32 %v9084_v42, %v10439_v20  ;;  %v9306_v37 = vadd.f32 %v9084_v42, %v10440_v30  ;;  %v3617_v51 = vmul.f32 %v8943_v24, %v3488_v41  ;;  %v10442_v20 = vld [vmem:[#allocation9_spill] sm:$0xff] }
 0x8c6   :  { %v3679_v59 = vsel %vm3550_vm10, %v3486_v15, %v3615_v6  ;;  %vm3552_vm12 = vcmp.ge.f32.partialorder %v3488_v41, 0.0  ;;  %v3618_v31 = vmul.f32 %v8943_v24, %v3489_v19  ;;  %v3619_v17 = vmul.f32 %v8943_v24, %v3490_v13 }
 0x8c7   :  { %5075 = vmatmul.mubr.msk.f32.gmra.mrb[34].mxu0 %vm2414_vm0, %v3679_v59  ;;  %v3680_v44 = vsel %vm3551_vm11, %v3487_v34, %v3616_v53  ;;  %vm3553_vm13 = vcmp.ge.f32.partialorder %v3489_v19, 0.0  ;;  %vm3554_vm14 = vcmp.ge.f32.partialorder %v3490_v13, 0.0  ;;  %v3620_v35 = vmul.f32 %v8943_v24, %v3491_v14 }
 0x8c8   :  { %v9315_v10 = vadd.f32 %v9084_v42, %v10441_v4  ;;  %v9319_v30 = vadd.f32 %v9084_v42, %v10442_v20  ;;  %5077 = vmatprep.mubr.msk.f32.mxu0 %vm2414_vm0, %v3680_v44  ;;  %vm3555_vm15 = vcmp.ge.f32.partialorder %v3491_v14, 0.0  ;;  %v3621_v15 = vmul.f32 %v8943_v24, %v3492_v23 }
 0x8c9   :  { %v9324_v6 = vadd.f32 %v9084_v42, %v3440_v29  ;;  %v9327_v34 = vadd.f32 %v9084_v42, %v3441_v5  ;;  %v3681_v53 = vsel %vm3552_vm12, %v3488_v41, %v3617_v51  ;;  %vm3556_vm1 = vcmp.ge.f32.partialorder %v3492_v23, 0.0 }
 0x8ca   :  { %v3682_v59 = vsel %vm3553_vm13, %v3489_v19, %v3618_v31  ;;  %v3683_v4 = vsel %vm3554_vm14, %v3490_v13, %v3619_v17  ;;  %vm3557_vm2 = vcmp.ge.f32.partialorder %v9252_v25, 0.0  ;;  %v3622_v20 = vmul.f32 %v8943_v24, %v9252_v25 }
 0x8cb   :  { %5078 = vmatmul.mubr.msk.f32.gmra.mrb[36].mxu0 %vm2414_vm0, %v3681_v53  ;;  %v3684_v44 = vsel %vm3555_vm15, %v3491_v14, %v3620_v35  ;;  %vm3558_vm3 = vcmp.ge.f32.partialorder %v9256_v63, 0.0  ;;  %v3623_v29 = vmul.f32 %v8943_v24, %v9256_v63  ;;  %vm3559_vm4 = vcmp.ge.f32.partialorder %v9260_v52, 0.0 }
 0x8cc   :  { %5080 = vmatprep.mubr.msk.f32.mxu0 %vm2414_vm0, %v3682_v59  ;;  %v3685_v5 = vsel %vm3556_vm1, %v3492_v23, %v3621_v15  ;;  %v3624_v41 = vmul.f32 %v8943_v24, %v9260_v52  ;;  %vm3560_vm5 = vcmp.ge.f32.partialorder %v9264_v12, 0.0  ;;  %v3625_v19 = vmul.f32 %v8943_v24, %v9264_v12 }
 0x8cd   :  { %vm3561_vm6 = vcmp.ge.f32.partialorder %v9268_v33, 0.0  ;;  %v3626_v13 = vmul.f32 %v8943_v24, %v9268_v33  ;;  %vm3562_vm7 = vcmp.ge.f32.partialorder %v9272_v2, 0.0  ;;  %v3627_v14 = vmul.f32 %v8943_v24, %v9272_v2 }
 0x8ce   :  { %v3628_v23 = vmul.f32 %v8943_v24, %v9278_v62  ;;  %v3629_v51 = vmul.f32 %v8943_v24, %v9285_v28  ;;  %v3630_v31 = vmul.f32 %v8943_v24, %v9289_v43  ;;  %v3631_v17 = vmul.f32 %v8943_v24, %v9293_v36 }
 0x8cf   :  { %5081 = vmatmul.mubr.msk.f32.gmra.mrb[38].mxu0 %vm2414_vm0, %v3683_v4  ;;  %vm3563_vm8 = vcmp.ge.f32.partialorder %v9278_v62, 0.0  ;;  %vm3564_vm9 = vcmp.ge.f32.partialorder %v9285_v28, 0.0  ;;  %vm3565_vm10 = vcmp.ge.f32.partialorder %v9289_v43, 0.0  ;;  %vm3566_vm11 = vcmp.ge.f32.partialorder %v9293_v36, 0.0 }
 0x8d0   :  { %5083 = vmatprep.mubr.msk.f32.mxu0 %vm2414_vm0, %v3684_v44  ;;  %v3686_v35 = vsel %vm3557_vm2, %v9252_v25, %v3622_v20  ;;  %v3687_v15 = vsel %vm3558_vm3, %v9256_v63, %v3623_v29  ;;  %v3688_v53 = vsel %vm3559_vm4, %v9260_v52, %v3624_v41  ;;  %v3632_v59 = vmul.f32 %v8943_v24, %v9298_v9 }
 0x8d1   :  { %v3689_v4 = vsel %vm3560_vm5, %v9264_v12, %v3625_v19  ;;  %v3690_v44 = vsel %vm3561_vm6, %v9268_v33, %v3626_v13  ;;  %v3691_v25 = vsel %vm3562_vm7, %v9272_v2, %v3627_v14  ;;  %vm3567_vm12 = vcmp.ge.f32.partialorder %v9298_v9, 0.0 }
 0x8d2   :  { %v9385_v63 = vsel %vm3563_vm8, %v9278_v62, %v3628_v23  ;;  %v9388_v52 = vsel %vm3564_vm9, %v9285_v28, %v3629_v51  ;;  %v9391_v20 = vsel %vm3565_vm10, %v9289_v43, %v3630_v31  ;;  %v9394_v12 = vsel %vm3566_vm11, %v9293_v36, %v3631_v17 }
 0x8d3   :  { %5084 = vmatmul.mubr.msk.f32.gmra.mrb[40].mxu0 %vm2414_vm0, %v3685_v5  ;;  %v9399_v33 = vmul.f32 %v8943_v24, %v9302_v50  ;;  %vm3578_vm13 = vcmp.ge.f32.partialorder %v9120_v3, 0.0  ;;  %v3643_v2 = vmul.f32 %v8943_v24, %v9120_v3  ;;  %vm3579_vm14 = vcmp.ge.f32.partialorder %v9123_v11, 0.0 }
 0x8d4   :  { %5086 = vmatprep.mubr.msk.f32.mxu0 %vm2414_vm0, %v3686_v35  ;;  %v9407_v62 = vsel %vm3567_vm12, %v9298_v9, %v3632_v59  ;;  %v9411_v28 = vmul.f32 %v8943_v24, %v9306_v37  ;;  %v3644_v43 = vmul.f32 %v8943_v24, %v9123_v11  ;;  %vm3580_vm15 = vcmp.ge.f32.partialorder %v9126_v16, 0.0 }
 0x8d5   :  { %v9417_v36 = vsel %vm3578_vm13, %v9120_v3, %v3643_v2  ;;  %v3645_v29 = vmul.f32 %v8943_v24, %v9126_v16  ;;  %vm3581_vm1 = vcmp.ge.f32.partialorder %v9129_v57, 0.0  ;;  %v3646_v9 = vmul.f32 %v8943_v24, %v9129_v57 }
 0x8d6   :  { %v9425_v5 = vsel %vm3579_vm14, %v9123_v11, %v3644_v43  ;;  %vm3582_vm2 = vcmp.ge.f32.partialorder %v9132_v18, 0.0  ;;  %v3647_v41 = vmul.f32 %v8943_v24, %v9132_v18  ;;  %vm3583_vm3 = vcmp.ge.f32.partialorder %v9135_v39, 0.0 }
 0x8d7   :  { %5087 = vmatmul.mubr.msk.f32.gmra.mrb[42].mxu0 %vm2414_vm0, %v3687_v15  ;;  %v9433_v3 = vsel %vm3580_vm15, %v9126_v16, %v3645_v29  ;;  %v9436_v19 = vsel %vm3581_vm1, %v9129_v57, %v3646_v9  ;;  %v3648_v13 = vmul.f32 %v8943_v24, %v9135_v39  ;;  %vm3584_vm4 = vcmp.ge.f32.partialorder %v9138_v21, 0.0 }
 0x8d8   :  { %5089 = vmatprep.mubr.msk.f32.mxu0 %vm2414_vm0, %v3688_v53  ;;  %v9443_v11 = vsel %vm3582_vm2, %v9132_v18, %v3647_v41  ;;  %v3649_v14 = vmul.f32 %v8943_v24, %v9138_v21  ;;  %vm3585_vm5 = vcmp.ge.f32.partialorder %v9141_v27, 0.0  ;;  %v3650_v16 = vmul.f32 %v8943_v24, %v9141_v27 }
 0x8d9   :  { %v9451_v57 = vsel %vm3583_vm3, %v9135_v39, %v3648_v13  ;;  %vm3586_vm6 = vcmp.ge.f32.partialorder %v9144_v47, 0.0  ;;  %v3651_v23 = vmul.f32 %v8943_v24, %v9144_v47  ;;  %vm3587_vm7 = vcmp.ge.f32.partialorder %v9147_v46, 0.0 }
 0x8da   :  { %v9458_v18 = vsel %vm3584_vm4, %v9138_v21, %v3649_v14  ;;  %v9461_v51 = vsel %vm3585_vm5, %v9141_v27, %v3650_v16  ;;  %v3652_v31 = vmul.f32 %v8943_v24, %v9147_v46  ;;  %vm3588_vm8 = vcmp.ge.f32.partialorder %v9150_v26, 0.0  ;;  %v10444_v14 = vld [vmem:[#allocation80_spill] sm:$0xff] }
 0x8db   :  { %5090 = vmatmul.mubr.msk.f32.gmra.mrb[44].mxu0 %vm2414_vm0, %v3689_v4  ;;  %v9468_v39 = vsel %vm3586_vm6, %v9144_v47, %v3651_v23  ;;  %v3653_v17 = vmul.f32 %v8943_v24, %v9150_v26  ;;  %vm3589_vm9 = vcmp.ge.f32.partialorder %v9153_v0, 0.0  ;;  %v3654_v21 = vmul.f32 %v8943_v24, %v9153_v0  ;;  %v10445_v23 = vld [vmem:[#allocation41_spill] sm:$0xff] }
 0x8dc   :  { %5092 = vmatprep.mubr.msk.f32.mxu0 %vm2414_vm0, %v3690_v44  ;;  %v9477_v27 = vsel %vm3587_vm7, %v9147_v46, %v3652_v31  ;;  %vm3590_vm10 = vcmp.ge.f32.partialorder %v9156_v49, 0.0  ;;  %v3655_v35 = vmul.f32 %v8943_v24, %v9156_v49  ;;  %vm3591_vm11 = vcmp.ge.f32.partialorder %v9159_v58, 0.0  ;;  %v10446_v31 = vld [vmem:[#allocation82_spill] sm:$0xff] }
 0x8dd   :  { %v9484_v47 = vsel %vm3588_vm8, %v9150_v26, %v3653_v17  ;;  %v9487_v15 = vsel %vm3589_vm9, %v9153_v0, %v3654_v21  ;;  %v3656_v53 = vmul.f32 %v8943_v24, %v9159_v58  ;;  %vm3592_vm12 = vcmp.ge.f32.partialorder %v9162_v7, 0.0 }
 0x8de   :  { %v9493_v46 = vsel %vm3590_vm10, %v9156_v49, %v3655_v35  ;;  %v3657_v59 = vmul.f32 %v8943_v24, %v9162_v7  ;;  %vm3593_vm13 = vcmp.ge.f32.partialorder %v9165_v38, 0.0  ;;  %v3658_v26 = vmul.f32 %v8943_v24, %v9165_v38 }
 0x8df   :  { %5093 = vmatmul.mubr.msk.f32.gmra.mrb[46].mxu0 %vm2414_vm0, %v3691_v25  ;;  %vm3568_vm14 = vcmp.ge.f32.partialorder %v9302_v50, 0.0  ;;  %v9503_v0 = vsel %vm3591_vm11, %v9159_v58, %v3656_v53  ;;  %vm3594_vm15 = vcmp.ge.f32.partialorder %v9168_v54, 0.0  ;;  %v3659_v49 = vmul.f32 %v8943_v24, %v9168_v54 }
 0x8e0   :  { %vm3595_vm1 = vcmp.ge.f32.partialorder %v9171_v56, 0.0  ;;  %5095 = vmatprep.mubr.msk.f32.mxu0 %vm2414_vm0, %v9385_v63  ;;  %vm3569_vm2 = vcmp.ge.f32.partialorder %v9306_v37, 0.0  ;;  %v9513_v4 = vsel %vm3592_vm12, %v9162_v7, %v3657_v59  ;;  %v9516_v44 = vsel %vm3593_vm13, %v9165_v38, %v3658_v26 }
 0x8e1   :  { %v3660_v58 = vmul.f32 %v8943_v24, %v9171_v56  ;;  %vm3596_vm3 = vcmp.ge.f32.partialorder %v9174_v1, 0.0  ;;  %v9522_v25 = vsel %vm3594_vm15, %v9168_v54, %v3659_v49  ;;  %v3661_v2 = vmul.f32 %v8943_v24, %v9174_v1 }
 0x8e2   :  { %vm3597_vm4 = vcmp.ge.f32.partialorder %v9177_v32, 0.0  ;;  %v3662_v7 = vmul.f32 %v8943_v24, %v9177_v32  ;;  %vm3598_vm5 = vcmp.ge.f32.partialorder %v9180_v45, 0.0  ;;  %v3663_v38 = vmul.f32 %v8943_v24, %v9180_v45 }
 0x8e3   :  { %v9530_v63 = vsel %vm3595_vm1, %v9171_v56, %v3660_v58  ;;  %vm3599_vm6 = vcmp.ge.f32.partialorder %v9183_v8, 0.0  ;;  %5096 = vmatmul.mubr.msk.f32.gmra.mrb[48].mxu0 %vm2414_vm0, %v9388_v52  ;;  %v9539_v54 = vsel %vm3596_vm3, %v9174_v1, %v3661_v2  ;;  %v3664_v56 = vmul.f32 %v8943_v24, %v9183_v8 }
 0x8e4   :  { %v9542_v43 = vsel %vm3597_vm4, %v9177_v32, %v3662_v7  ;;  %vm3600_vm7 = vcmp.ge.f32.partialorder %v9186_v22, 0.0  ;;  %5098 = vmatprep.mubr.msk.f32.mxu0 %vm2414_vm0, %v9391_v20  ;;  %v9550_v29 = vsel %vm3598_vm5, %v9180_v45, %v3663_v38  ;;  %v3665_v52 = vmul.f32 %v8943_v24, %v9186_v22  ;;  %v10443_v20 = vld [vmem:[#allocation79_spill] sm:$0xff]  ;;  %v10449_v7 = vld [vmem:[#allocation33_spill] sm:$0xff] }
 0x8e5   :  { %vm3601_vm8 = vcmp.ge.f32.partialorder %v9189_v60, 0.0  ;;  %v3666_v1 = vmul.f32 %v8943_v24, %v9189_v60  ;;  %v9558_v32 = vsel %vm3599_vm6, %v9183_v8, %v3664_v56  ;;  %vm3602_vm9 = vcmp.ge.f32.partialorder %v9192_v55, 0.0  ;;  %v10450_v56 = vld [vmem:[#allocation75_spill] sm:$0xff] }
 0x8e6   :  { %v3667_v9 = vmul.f32 %v8943_v24, %v9192_v55  ;;  %vm3603_vm10 = vcmp.ge.f32.partialorder %v10443_v20, 0.0  ;;  %v9565_v45 = vsel %vm3600_vm7, %v9186_v22, %v3665_v52  ;;  %v3668_v13 = vmul.f32 %v8943_v24, %v10443_v20 }
 0x8e7   :  { %v9568_v41 = vsel %vm3601_vm8, %v9189_v60, %v3666_v1  ;;  %vm3604_vm11 = vcmp.ge.f32.partialorder %v10444_v14, 0.0  ;;  %5099 = vmatmul.mubr.msk.f32.gmra.mrb[50].mxu0 %vm2414_vm0, %v9394_v12  ;;  %v3669_v16 = vmul.f32 %v8943_v24, %v10444_v14  ;;  %vm3605_vm12 = vcmp.ge.f32.partialorder %v10445_v23, 0.0  ;;  %v10447_v12 = vld [vmem:[#allocation84_spill] sm:$0xff] }
 0x8e8   :  { %v9576_v8 = vsel %vm3602_vm9, %v9192_v55, %v3667_v9  ;;  %v3670_v22 = vmul.f32 %v8943_v24, %v10445_v23  ;;  %5101 = vmatprep.mubr.msk.f32.mxu0 %vm2414_vm0, %v9407_v62  ;;  %v9586_v60 = vsel %vm3603_vm10, %v10443_v20, %v3668_v13  ;;  %vm3606_vm13 = vcmp.ge.f32.partialorder %v10446_v31, 0.0  ;;  %v10448_v62 = vld [vmem:[#allocation46_spill] sm:$0xff] }
 0x8e9   :  { %v3671_v55 = vmul.f32 %v8943_v24, %v10446_v31  ;;  %vm3607_vm15 = vcmp.ge.f32.partialorder %v10447_v12, 0.0  ;;  %v9593_v17 = vsel %vm3604_vm11, %v10444_v14, %v3669_v16  ;;  %v3672_v35 = vmul.f32 %v8943_v24, %v10447_v12 }
 0x8ea   :  { %v9596_v21 = vsel %vm3605_vm12, %v10445_v23, %v3670_v22  ;;  %vm3608_vm1 = vcmp.ge.f32.partialorder %v10448_v62, 0.0  ;;  %v3697_v53 = vsel %vm3568_vm14, %v9302_v50, %v9399_v33  ;;  %v3635_v59 = vmul.f32 %v8943_v24, %v9315_v10 }
 0x8eb   :  { %v9608_v26 = vsel %vm3606_vm13, %v10446_v31, %v3671_v55  ;;  %v3673_v49 = vmul.f32 %v8943_v24, %v10448_v62  ;;  %5102 = vmatmul.mubr.msk.f32.gmra.mrb[52].mxu0 %vm2414_vm0, %v3697_v53  ;;  %v3698_v58 = vsel %vm3569_vm2, %v9306_v37, %v9411_v28  ;;  %vm3570_vm3 = vcmp.ge.f32.partialorder %v9315_v10, 0.0 }
 0x8ec   :  { %v3636_v50 = vmul.f32 %v8943_v24, %v9319_v30  ;;  %v9621_v33 = vsel %vm3607_vm15, %v10447_v12, %v3672_v35  ;;  %5104 = vmatprep.mubr.msk.f32.mxu0 %vm2414_vm0, %v3698_v58  ;;  %vm3571_vm14 = vcmp.ge.f32.partialorder %v9319_v30, 0.0  ;;  %v3444_v38 = vmul.f32 %v8941_v40, %v10449_v7 }
 0x8ed   :  { %v9626_v2 = vsel %vm3608_vm1, %v10448_v62, %v3673_v49  ;;  %v3445_v37 = vmul.f32 %v8941_v40, %v10450_v56  ;;  %v3510_v28 = vadd.f32 %v9084_v42, %v9221_v48  ;;  %v3699_v52 = vsel %vm3570_vm3, %v9315_v10, %v3635_v59 }
 0x8ee   :  { %v3637_v1 = vmul.f32 %v8943_v24, %v9324_v6  ;;  %v3511_v9 = vadd.f32 %v9084_v42, %v9225_v61  ;;  %v3700_v20 = vsel %vm3571_vm14, %v9319_v30, %v3636_v50  ;;  %vm3572_vm2 = vcmp.ge.f32.partialorder %v9324_v6, 0.0 }
 0x8ef   :  { %5105 = vmatmul.mubr.msk.f32.gmra.mrb[54].mxu0 %vm2414_vm0, %v3699_v52  ;;  %v3638_v40 = vmul.f32 %v8943_v24, %v9327_v34  ;;  %vm3573_vm4 = vcmp.ge.f32.partialorder %v9327_v34, 0.0  ;;  %v3512_v48 = vadd.f32 %v9084_v42, %v3444_v38  ;;  %v3639_v13 = vmul.f32 %v8943_v24, %v3510_v28 }
 0x8f0   :  { %5107 = vmatprep.mubr.msk.f32.mxu0 %vm2414_vm0, %v3700_v20  ;;  %v3701_v10 = vsel %vm3572_vm2, %v9324_v6, %v3637_v1  ;;  %v3513_v61 = vadd.f32 %v9084_v42, %v3445_v37  ;;  %vm3574_vm5 = vcmp.ge.f32.partialorder %v3510_v28, 0.0  ;;  %v3640_v14 = vmul.f32 %v8943_v24, %v3511_v9 }
 0x8f1   :  { %v3702_v30 = vsel %vm3573_vm4, %v9327_v34, %v3638_v40  ;;  %vm3575_vm6 = vcmp.ge.f32.partialorder %v3511_v9, 0.0  ;;  %v3703_v16 = vsel %vm3574_vm5, %v3510_v28, %v3639_v13  ;;  %v3641_v23 = vmul.f32 %v8943_v24, %v3512_v48 }
 0x8f2   :  { %v3704_v6 = vsel %vm3575_vm6, %v3511_v9, %v3640_v14  ;;  %vm3576_vm7 = vcmp.ge.f32.partialorder %v3512_v48, 0.0  ;;  %v3642_v22 = vmul.f32 %v8943_v24, %v3513_v61  ;;  %vm3577_vm8 = vcmp.ge.f32.partialorder %v3513_v61, 0.0  ;;  %v9725_v24 = vld [vmem:[%s9807_s4 + $0x4] ss:$0 sm:$0xff]  ;;  %s5579_s4 = smov [#allocation5]  }
 0x8f3   :  { %5108 = vmatmul.mubr.msk.f32.gmra.mrb[56].mxu0 %vm2414_vm0, %v3701_v10  ;;  %v3705_v42 = vsel %vm3576_vm7, %v3512_v48, %v3641_v23  ;;  %s4392_s30 = sshll.u32 %s5579_s4, 4  ;;  %s4393_s30 = int_to_ptr.vmem [resolvable:$true] %s4392_s30 }
 0x8f4   :  { %5110 = vmatprep.mubr.msk.f32.mxu0 %vm2414_vm0, %v3702_v30  ;;  %v3706_v34 = vsel %vm3577_vm8, %v3513_v61, %v3642_v22  ;;  %s5547_s1 = scalar_lea.vmem %s4393_s30, 8192  ;;  %p5552_p6 = scmp.lt.s32.totalorder %s4393_s30, %s4393_s30 }
 0x8f5   :  { %p5548_p5 = scmp.ne.s32.totalorder %s4393_s30, %s5547_s1  ;;  %p5553_p7 = scmp.lt.s32.totalorder %s5547_s1, %s5547_s1 }
 0x8f7   :  { %5111 = vmatmul.mubr.msk.f32.gmra.mrb[58].mxu0 %vm2414_vm0, %v3703_v16  ;;  %p5554_p8 = por %p5553_p7, %p5552_p6 }
 0x8f8   :  { %5113 = vmatprep.mubr.msk.f32.mxu0 %vm2414_vm0, %v3704_v6 }
 0x8f9   :  { %p5555_p9 = pnand %p5554_p8, %p5548_p5 }
 0x8fb   :  { %5114 = vmatmul.mubr.msk.f32.gmra.mrb[60].mxu0 %vm2414_vm0, %v3705_v42 }
 0x8fc   :  { %5116 = vmatprep.mubr.msk.f32.mxu0 %vm2414_vm0, %v3706_v34 }
 0x8ff   :  { %5117 = vmatmul.mubr.msk.f32.gmra.mrb[62].mxu0 %vm2414_vm0, %v9417_v36 }
 0x900   :  { %5119 = vmatprep.mubr.msk.f32.mxu0 %vm2414_vm0, %v9425_v5 }
 0x903   :  { %5120 = vmatmul.mubr.msk.f32.gmra.mrb[64].mxu0 %vm2414_vm0, %v9433_v3 }
 0x904   :  { %5122 = vmatprep.mubr.msk.f32.mxu0 %vm2414_vm0, %v9436_v19 }
 0x907   :  { %5123 = vmatmul.mubr.msk.f32.gmra.mrb[66].mxu0 %vm2414_vm0, %v9443_v11 }
 0x908   :  { %5125 = vmatprep.mubr.msk.f32.mxu0 %vm2414_vm0, %v9451_v57 }
 0x90b   :  { %5126 = vmatmul.mubr.msk.f32.gmra.mrb[68].mxu0 %vm2414_vm0, %v9458_v18 }
 0x90c   :  { %5128 = vmatprep.mubr.msk.f32.mxu0 %vm2414_vm0, %v9461_v51 }
 0x90f   :  { %5129 = vmatmul.mubr.msk.f32.gmra.mrb[70].mxu0 %vm2414_vm0, %v9468_v39 }
 0x910   :  { %5131 = vmatprep.mubr.msk.f32.mxu0 %vm2414_vm0, %v9477_v27 }
 0x913   :  { %5132 = vmatmul.mubr.msk.f32.gmra.mrb[72].mxu0 %vm2414_vm0, %v9484_v47 }
 0x914   :  { %5134 = vmatprep.mubr.msk.f32.mxu0 %vm2414_vm0, %v9487_v15 }
 0x917   :  { %5135 = vmatmul.mubr.msk.f32.gmra.mrb[74].mxu0 %vm2414_vm0, %v9493_v46 }
 0x918   :  { %5137 = vmatprep.mubr.msk.f32.mxu0 %vm2414_vm0, %v9503_v0 }
 0x91b   :  { %5138 = vmatmul.mubr.msk.f32.gmra.mrb[76].mxu0 %vm2414_vm0, %v9513_v4 }
 0x91c   :  { %5140 = vmatprep.mubr.msk.f32.mxu0 %vm2414_vm0, %v9516_v44 }
 0x91f   :  { %5141 = vmatmul.mubr.msk.f32.gmra.mrb[78].mxu0 %vm2414_vm0, %v9522_v25 }
 0x920   :  { %5143 = vmatprep.mubr.msk.f32.mxu0 %vm2414_vm0, %v9530_v63 }
 0x923   :  { %5144 = vmatmul.mubr.msk.f32.gmra.mrb[80].mxu0 %vm2414_vm0, %v9539_v54 }
 0x924   :  { %5146 = vmatprep.mubr.msk.f32.mxu0 %vm2414_vm0, %v9542_v43 }
 0x927   :  { %5147 = vmatmul.mubr.msk.f32.gmra.mrb[82].mxu0 %vm2414_vm0, %v9550_v29 }
 0x928   :  { %5149 = vmatprep.mubr.msk.f32.mxu0 %vm2414_vm0, %v9558_v32 }
 0x92b   :  { %5150 = vmatmul.mubr.msk.f32.gmra.mrb[84].mxu0 %vm2414_vm0, %v9565_v45 }
 0x92c   :  { %5152 = vmatprep.mubr.msk.f32.mxu0 %vm2414_vm0, %v9568_v41 }
 0x92f   :  { %5153 = vmatmul.mubr.msk.f32.gmra.mrb[86].mxu0 %vm2414_vm0, %v9576_v8 }
 0x930   :  { %5155 = vmatprep.mubr.msk.f32.mxu0 %vm2414_vm0, %v9586_v60 }
 0x933   :  { %5156 = vmatmul.mubr.msk.f32.gmra.mrb[88].mxu0 %vm2414_vm0, %v9593_v17 }
 0x934   :  { %5158 = vmatprep.mubr.msk.f32.mxu0 %vm2414_vm0, %v9596_v21 }
 0x937   :  { %5159 = vmatmul.mubr.msk.f32.gmra.mrb[90].mxu0 %vm2414_vm0, %v9608_v26 }
 0x938   :  { %5161 = vmatprep.mubr.msk.f32.mxu0 %vm2414_vm0, %v9621_v33 }
 0x93b   :  { %5162 = vmatmul.mubr.msk.f32.gmra.mrb[92].mxu0 %vm2414_vm0, %v9626_v2 }
 0x992   :  { %v5070_v36 = vpop.f32.mrb[30].mxu0 }
 0x993   :  { %v4010_v5 = vadd.f32 %v5070_v36, %v9725_v24  ;;  %v4004_v3 = vpop.f32.mrb[31].mxu0 }
 0x994   :  { %v4005_v19 = vadd.f32 %v9725_v24, %v4004_v3 }
 0x995   :  { %4324 = vst [vmem:[#allocation5 + $0x8] sm:$0xff] %v4010_v5 }
 0x996   :  { %4323 = vst [vmem:[#allocation5] sm:$0xff] %v4005_v19  ;;  %v5073_v11 = vpop.f32.mrb[32].mxu0 }
 0x997   :  { %v4020_v57 = vadd.f32 %v5073_v11, %v9725_v24  ;;  %v4014_v18 = vpop.f32.mrb[33].mxu0 }
 0x998   :  { %v4015_v51 = vadd.f32 %v9725_v24, %v4014_v18 }
 0x999   :  { %4326 = vst [vmem:[#allocation5 + $0x18] sm:$0xff] %v4020_v57 }
 0x99a   :  { %4325 = vst [vmem:[#allocation5 + $0x10] sm:$0xff] %v4015_v51  ;;  %v5076_v39 = vpop.f32.mrb[34].mxu0 }
 0x99b   :  { %v4030_v27 = vadd.f32 %v5076_v39, %v9725_v24  ;;  %v4024_v47 = vpop.f32.mrb[35].mxu0 }
 0x99c   :  { %v4025_v15 = vadd.f32 %v9725_v24, %v4024_v47 }
 0x99d   :  { %4328 = vst [vmem:[#allocation5 + $0x28] sm:$0xff] %v4030_v27 }
 0x99e   :  { %4327 = vst [vmem:[#allocation5 + $0x20] sm:$0xff] %v4025_v15  ;;  %v5079_v46 = vpop.f32.mrb[36].mxu0 }
 0x99f   :  { %v4040_v0 = vadd.f32 %v5079_v46, %v9725_v24  ;;  %v4034_v4 = vpop.f32.mrb[37].mxu0 }
 0x9a0   :  { %v4035_v44 = vadd.f32 %v9725_v24, %v4034_v4 }
 0x9a1   :  { %4330 = vst [vmem:[#allocation5 + $0x38] sm:$0xff] %v4040_v0 }
 0x9a2   :  { %4329 = vst [vmem:[#allocation5 + $0x30] sm:$0xff] %v4035_v44  ;;  %v5082_v25 = vpop.f32.mrb[38].mxu0 }
 0x9a3   :  { %v4050_v63 = vadd.f32 %v5082_v25, %v9725_v24  ;;  %v4044_v54 = vpop.f32.mrb[39].mxu0 }
 0x9a4   :  { %v4045_v43 = vadd.f32 %v9725_v24, %v4044_v54 }
 0x9a5   :  { %4332 = vst [vmem:[#allocation5 + $0x48] sm:$0xff] %v4050_v63 }
 0x9a6   :  { %4331 = vst [vmem:[#allocation5 + $0x40] sm:$0xff] %v4045_v43  ;;  %v5085_v29 = vpop.f32.mrb[40].mxu0 }
 0x9a7   :  { %v4060_v32 = vadd.f32 %v5085_v29, %v9725_v24  ;;  %v4054_v45 = vpop.f32.mrb[41].mxu0 }
 0x9a8   :  { %v4055_v41 = vadd.f32 %v9725_v24, %v4054_v45 }
 0x9a9   :  { %4334 = vst [vmem:[#allocation5 + $0x58] sm:$0xff] %v4060_v32 }
 0x9aa   :  { %4333 = vst [vmem:[#allocation5 + $0x50] sm:$0xff] %v4055_v41  ;;  %v5088_v8 = vpop.f32.mrb[42].mxu0 }
 0x9ab   :  { %v4070_v60 = vadd.f32 %v5088_v8, %v9725_v24  ;;  %v4064_v31 = vpop.f32.mrb[43].mxu0 }
 0x9ac   :  { %v4065_v55 = vadd.f32 %v9725_v24, %v4064_v31 }
 0x9ad   :  { %4336 = vst [vmem:[#allocation5 + $0x68] sm:$0xff] %v4070_v60 }
 0x9ae   :  { %4335 = vst [vmem:[#allocation5 + $0x60] sm:$0xff] %v4065_v55  ;;  %v5091_v12 = vpop.f32.mrb[44].mxu0 }
 0x9af   :  { %v4080_v17 = vadd.f32 %v5091_v12, %v9725_v24  ;;  %v4074_v21 = vpop.f32.mrb[45].mxu0 }
 0x9b0   :  { %v4075_v35 = vadd.f32 %v9725_v24, %v4074_v21 }
 0x9b1   :  { %4338 = vst [vmem:[#allocation5 + $0x78] sm:$0xff] %v4080_v17 }
 0x9b2   :  { %4337 = vst [vmem:[#allocation5 + $0x70] sm:$0xff] %v4075_v35  ;;  %v5094_v62 = vpop.f32.mrb[46].mxu0 }
 0x9b3   :  { %v4090_v53 = vadd.f32 %v5094_v62, %v9725_v24  ;;  %v4084_v59 = vpop.f32.mrb[47].mxu0 }
 0x9b4   :  { %v4085_v26 = vadd.f32 %v9725_v24, %v4084_v59 }
 0x9b5   :  { %4340 = vst [vmem:[#allocation5 + $0x88] sm:$0xff] %v4090_v53 }
 0x9b6   :  { %4339 = vst [vmem:[#allocation5 + $0x80] sm:$0xff] %v4085_v26  ;;  %v5097_v49 = vpop.f32.mrb[48].mxu0 }
 0x9b7   :  { %v4100_v58 = vadd.f32 %v5097_v49, %v9725_v24  ;;  %v4094_v50 = vpop.f32.mrb[49].mxu0 }
 0x9b8   :  { %v4095_v33 = vadd.f32 %v9725_v24, %v4094_v50 }
 0x9b9   :  { %4342 = vst [vmem:[#allocation5 + $0x98] sm:$0xff] %v4100_v58 }
 0x9ba   :  { %4341 = vst [vmem:[#allocation5 + $0x90] sm:$0xff] %v4095_v33  ;;  %v5100_v2 = vpop.f32.mrb[50].mxu0 }
 0x9bb   :  { %v4110_v7 = vadd.f32 %v5100_v2, %v9725_v24  ;;  %v4104_v38 = vpop.f32.mrb[51].mxu0 }
 0x9bc   :  { %v4105_v56 = vadd.f32 %v9725_v24, %v4104_v38 }
 0x9bd   :  { %4344 = vst [vmem:[#allocation5 + $0xa8] sm:$0xff] %v4110_v7 }
 0x9be   :  { %4343 = vst [vmem:[#allocation5 + $0xa0] sm:$0xff] %v4105_v56  ;;  %v5103_v37 = vpop.f32.mrb[52].mxu0 }
 0x9bf   :  { %v4120_v28 = vadd.f32 %v5103_v37, %v9725_v24  ;;  %v4114_v52 = vpop.f32.mrb[53].mxu0 }
 0x9c0   :  { %v4115_v1 = vadd.f32 %v9725_v24, %v4114_v52 }
 0x9c1   :  { %4346 = vst [vmem:[#allocation5 + $0xb8] sm:$0xff] %v4120_v28 }
 0x9c2   :  { %4345 = vst [vmem:[#allocation5 + $0xb0] sm:$0xff] %v4115_v1  ;;  %v5106_v9 = vpop.f32.mrb[54].mxu0 }
 0x9c3   :  { %v4130_v20 = vadd.f32 %v5106_v9, %v9725_v24  ;;  %v4124_v40 = vpop.f32.mrb[55].mxu0 }
 0x9c4   :  { %v4125_v48 = vadd.f32 %v9725_v24, %v4124_v40 }
 0x9c5   :  { %4348 = vst [vmem:[#allocation5 + $0xc8] sm:$0xff] %v4130_v20 }
 0x9c6   :  { %4347 = vst [vmem:[#allocation5 + $0xc0] sm:$0xff] %v4125_v48  ;;  %v5109_v10 = vpop.f32.mrb[56].mxu0 }
 0x9c7   :  { %v4140_v13 = vadd.f32 %v5109_v10, %v9725_v24  ;;  %v4134_v61 = vpop.f32.mrb[57].mxu0 }
 0x9c8   :  { %v4135_v30 = vadd.f32 %v9725_v24, %v4134_v61 }
 0x9c9   :  { %4350 = vst [vmem:[#allocation5 + $0xd8] sm:$0xff] %v4140_v13 }
 0x9ca   :  { %4349 = vst [vmem:[#allocation5 + $0xd0] sm:$0xff] %v4135_v30  ;;  %v5112_v14 = vpop.f32.mrb[58].mxu0 }
 0x9cb   :  { %v4150_v16 = vadd.f32 %v5112_v14, %v9725_v24  ;;  %v4144_v23 = vpop.f32.mrb[59].mxu0 }
 0x9cc   :  { %v4145_v6 = vadd.f32 %v9725_v24, %v4144_v23 }
 0x9cd   :  { %4352 = vst [vmem:[#allocation5 + $0xe8] sm:$0xff] %v4150_v16 }
 0x9ce   :  { %4351 = vst [vmem:[#allocation5 + $0xe0] sm:$0xff] %v4145_v6  ;;  %v5115_v22 = vpop.f32.mrb[60].mxu0 }
 0x9cf   :  { %v4160_v42 = vadd.f32 %v5115_v22, %v9725_v24  ;;  %v4154_v34 = vpop.f32.mrb[61].mxu0 }
 0x9d0   :  { %v4155_v36 = vadd.f32 %v9725_v24, %v4154_v34 }
 0x9d1   :  { %4354 = vst [vmem:[#allocation5 + $0xf8] sm:$0xff] %v4160_v42 }
 0x9d2   :  { %4353 = vst [vmem:[#allocation5 + $0xf0] sm:$0xff] %v4155_v36  ;;  %v5118_v5 = vpop.f32.mrb[62].mxu0 }
 0x9d3   :  { %v4170_v3 = vadd.f32 %v5118_v5, %v9725_v24  ;;  %v4164_v19 = vpop.f32.mrb[63].mxu0 }
 0x9d4   :  { %v4165_v11 = vadd.f32 %v9725_v24, %v4164_v19 }
 0x9d5   :  { %4356 = vst [vmem:[#allocation5 + $0x108] sm:$0xff] %v4170_v3 }
 0x9d6   :  { %4355 = vst [vmem:[#allocation5 + $0x100] sm:$0xff] %v4165_v11  ;;  %v5121_v57 = vpop.f32.mrb[64].mxu0 }
 0x9d7   :  { %v4180_v18 = vadd.f32 %v5121_v57, %v9725_v24  ;;  %v4174_v51 = vpop.f32.mrb[65].mxu0 }
 0x9d8   :  { %v4175_v39 = vadd.f32 %v9725_v24, %v4174_v51 }
 0x9d9   :  { %4358 = vst [vmem:[#allocation5 + $0x118] sm:$0xff] %v4180_v18 }
 0x9da   :  { %4357 = vst [vmem:[#allocation5 + $0x110] sm:$0xff] %v4175_v39  ;;  %v5124_v27 = vpop.f32.mrb[66].mxu0 }
 0x9db   :  { %v4190_v47 = vadd.f32 %v5124_v27, %v9725_v24  ;;  %v4184_v15 = vpop.f32.mrb[67].mxu0 }
 0x9dc   :  { %v4185_v46 = vadd.f32 %v9725_v24, %v4184_v15 }
 0x9dd   :  { %4360 = vst [vmem:[#allocation5 + $0x128] sm:$0xff] %v4190_v47 }
 0x9de   :  { %4359 = vst [vmem:[#allocation5 + $0x120] sm:$0xff] %v4185_v46  ;;  %v5127_v0 = vpop.f32.mrb[68].mxu0 }
 0x9df   :  { %v4200_v4 = vadd.f32 %v5127_v0, %v9725_v24  ;;  %v4194_v44 = vpop.f32.mrb[69].mxu0 }
 0x9e0   :  { %v4195_v25 = vadd.f32 %v9725_v24, %v4194_v44 }
 0x9e1   :  { %4362 = vst [vmem:[#allocation5 + $0x138] sm:$0xff] %v4200_v4 }
 0x9e2   :  { %4361 = vst [vmem:[#allocation5 + $0x130] sm:$0xff] %v4195_v25  ;;  %v5130_v63 = vpop.f32.mrb[70].mxu0 }
 0x9e3   :  { %v4210_v54 = vadd.f32 %v5130_v63, %v9725_v24  ;;  %v4204_v43 = vpop.f32.mrb[71].mxu0 }
 0x9e4   :  { %v4205_v29 = vadd.f32 %v9725_v24, %v4204_v43 }
 0x9e5   :  { %4364 = vst [vmem:[#allocation5 + $0x148] sm:$0xff] %v4210_v54 }
 0x9e6   :  { %4363 = vst [vmem:[#allocation5 + $0x140] sm:$0xff] %v4205_v29  ;;  %v5133_v32 = vpop.f32.mrb[72].mxu0 }
 0x9e7   :  { %v4220_v45 = vadd.f32 %v5133_v32, %v9725_v24  ;;  %v4214_v41 = vpop.f32.mrb[73].mxu0 }
 0x9e8   :  { %v4215_v8 = vadd.f32 %v9725_v24, %v4214_v41 }
 0x9e9   :  { %4366 = vst [vmem:[#allocation5 + $0x158] sm:$0xff] %v4220_v45 }
 0x9ea   :  { %4365 = vst [vmem:[#allocation5 + $0x150] sm:$0xff] %v4215_v8  ;;  %v5136_v60 = vpop.f32.mrb[74].mxu0 }
 0x9eb   :  { %v4230_v31 = vadd.f32 %v5136_v60, %v9725_v24  ;;  %v4224_v55 = vpop.f32.mrb[75].mxu0 }
 0x9ec   :  { %v4225_v12 = vadd.f32 %v9725_v24, %v4224_v55 }
 0x9ed   :  { %4368 = vst [vmem:[#allocation5 + $0x168] sm:$0xff] %v4230_v31 }
 0x9ee   :  { %4367 = vst [vmem:[#allocation5 + $0x160] sm:$0xff] %v4225_v12  ;;  %v5139_v17 = vpop.f32.mrb[76].mxu0 }
 0x9ef   :  { %v4240_v21 = vadd.f32 %v5139_v17, %v9725_v24  ;;  %v4234_v35 = vpop.f32.mrb[77].mxu0 }
 0x9f0   :  { %v4235_v62 = vadd.f32 %v9725_v24, %v4234_v35 }
 0x9f1   :  { %4370 = vst [vmem:[#allocation5 + $0x178] sm:$0xff] %v4240_v21 }
 0x9f2   :  { %4369 = vst [vmem:[#allocation5 + $0x170] sm:$0xff] %v4235_v62  ;;  %v5142_v53 = vpop.f32.mrb[78].mxu0 }
 0x9f3   :  { %v4250_v59 = vadd.f32 %v5142_v53, %v9725_v24  ;;  %v4244_v26 = vpop.f32.mrb[79].mxu0 }
 0x9f4   :  { %v4245_v49 = vadd.f32 %v9725_v24, %v4244_v26 }
 0x9f5   :  { %4372 = vst [vmem:[#allocation5 + $0x188] sm:$0xff] %v4250_v59 }
 0x9f6   :  { %4371 = vst [vmem:[#allocation5 + $0x180] sm:$0xff] %v4245_v49  ;;  %v5145_v58 = vpop.f32.mrb[80].mxu0 }
 0x9f7   :  { %v4260_v50 = vadd.f32 %v5145_v58, %v9725_v24  ;;  %v4254_v33 = vpop.f32.mrb[81].mxu0 }
 0x9f8   :  { %v4255_v2 = vadd.f32 %v9725_v24, %v4254_v33 }
 0x9f9   :  { %4374 = vst [vmem:[#allocation5 + $0x198] sm:$0xff] %v4260_v50 }
 0x9fa   :  { %4373 = vst [vmem:[#allocation5 + $0x190] sm:$0xff] %v4255_v2  ;;  %v5148_v7 = vpop.f32.mrb[82].mxu0 }
 0x9fb   :  { %v4270_v38 = vadd.f32 %v5148_v7, %v9725_v24  ;;  %v4264_v56 = vpop.f32.mrb[83].mxu0 }
 0x9fc   :  { %v4265_v37 = vadd.f32 %v9725_v24, %v4264_v56 }
 0x9fd   :  { %4376 = vst [vmem:[#allocation5 + $0x1a8] sm:$0xff] %v4270_v38 }
 0x9fe   :  { %4375 = vst [vmem:[#allocation5 + $0x1a0] sm:$0xff] %v4265_v37  ;;  %v5151_v28 = vpop.f32.mrb[84].mxu0 }
 0x9ff   :  { %v4280_v52 = vadd.f32 %v5151_v28, %v9725_v24  ;;  %v4274_v1 = vpop.f32.mrb[85].mxu0 }
 0xa00   :  { %v4275_v9 = vadd.f32 %v9725_v24, %v4274_v1 }
 0xa01   :  { %4378 = vst [vmem:[#allocation5 + $0x1b8] sm:$0xff] %v4280_v52 }
 0xa02   :  { %4377 = vst [vmem:[#allocation5 + $0x1b0] sm:$0xff] %v4275_v9  ;;  %v5154_v20 = vpop.f32.mrb[86].mxu0 }
 0xa03   :  { %v4290_v40 = vadd.f32 %v5154_v20, %v9725_v24  ;;  %v4284_v48 = vpop.f32.mrb[87].mxu0 }
 0xa04   :  { %v4285_v10 = vadd.f32 %v9725_v24, %v4284_v48 }
 0xa05   :  { %4380 = vst [vmem:[#allocation5 + $0x1c8] sm:$0xff] %v4290_v40 }
 0xa06   :  { %4379 = vst [vmem:[#allocation5 + $0x1c0] sm:$0xff] %v4285_v10  ;;  %v5157_v13 = vpop.f32.mrb[88].mxu0 }
 0xa07   :  { %v4300_v61 = vadd.f32 %v5157_v13, %v9725_v24  ;;  %v4294_v30 = vpop.f32.mrb[89].mxu0 }
 0xa08   :  { %v4295_v14 = vadd.f32 %v9725_v24, %v4294_v30 }
 0xa09   :  { %4382 = vst [vmem:[#allocation5 + $0x1d8] sm:$0xff] %v4300_v61 }
 0xa0a   :  { %4381 = vst [vmem:[#allocation5 + $0x1d0] sm:$0xff] %v4295_v14  ;;  %v5160_v16 = vpop.f32.mrb[90].mxu0 }
 0xa0b   :  { %v4310_v23 = vadd.f32 %v5160_v16, %v9725_v24  ;;  %v4304_v6 = vpop.f32.mrb[91].mxu0 }
 0xa0c   :  { %v4305_v22 = vadd.f32 %v9725_v24, %v4304_v6 }
 0xa0d   :  { %4384 = vst [vmem:[#allocation5 + $0x1e8] sm:$0xff] %v4310_v23 }
 0xa0e   :  { %4383 = vst [vmem:[#allocation5 + $0x1e0] sm:$0xff] %v4305_v22  ;;  %v5163_v42 = vpop.f32.mrb[92].mxu0 }
 0xa0f   :  { %v4320_v34 = vadd.f32 %v5163_v42, %v9725_v24  ;;  %v4314_v36 = vpop.f32.mrb[93].mxu0 }
 0xa10   :  { %v4315_v5 = vadd.f32 %v9725_v24, %v4314_v36 }
 0xa11   :  { %4386 = vst [vmem:[#allocation5 + $0x1f8] sm:$0xff] %v4320_v34 }
 0xa12   :  { %4385 = vst [vmem:[#allocation5 + $0x1f0] sm:$0xff] %v4315_v5 }
 0xa13   :  { %5558 = shalt.err (!%p5555_p9)
}
 0xa14   :  { %s5559_s9 = scalar_lea.hbm %s9809_s6, 8192 }
 0xa15   :  { %p5560_p10 = scmp.ne.s32.totalorder %s9809_s6, %s5559_s9  ;;  %p5563_p11 = scmp.lt.u32.totalorder %s5559_s9, %s9809_s6 }
 0xa17   :  { %p5565_p12 = pnand %p5563_p11, %p5560_p10 }
 0xa19   :  { %5568 = shalt.err (!%p5565_p12)
}
 0xa1a   :  { %s5580_s14 = smov 128   ;;  %s5581_s15 = smov 8  }
 0xa1b   :  { %4398 = dma.vmem_to_hbm [thread:$0]  %s4393_s30, 8192, %s9809_s6, [#allocation3], %s5580_s14, %s5580_s14, %s5581_s15  }
 0xa1c   :  { %5571 = dma.done.wait [#allocation3], 8192  }
 0xa1d   :  { %5572 = vsyncadd [#allocation3], 4294959104 }
 0xa1e   :  { %4402 = vsyncpa [#allocation3], 1 }
 0xa1f   :  { %4403 = vsyncpa [#allocation4], 1 }

</bundles_post_ra>
